<compile_context>
chip_gen: v6e
topology: v6e:2x2x1
jax: 0.10.0
libtpu: 0.0.40
codegen_flags: <defaults>
</compile_context>

<pallas_src>
import jax
import jax.numpy as jnp
from jax.experimental import pallas as pl
from jax.experimental.pallas import tpu as pltpu

IN_DIM = 32 * 32     # 1024
HID = 1000
HID_PAD = 1024       # pad hidden dim to a multiple of 128 lanes
OUT_DIM = 10
OUT_PAD = 128        # pad class dim to 128 for lane-dense output stores


def _round_up(n, m):
    return ((n + m - 1) // m) * m


def _pick_tile(b8):
    """Largest batch tile in {512,...,8} that divides the 8-rounded batch.

    Guarantees zero over-padding beyond rounding B up to a multiple of 8, and
    caps TB at 512 so VMEM stays comfortable on v7x (64 MiB physical)."""
    for tb in (512, 256, 128, 64, 32, 16, 8):
        if b8 % tb == 0:
            return tb
    return 8


def _sigmoid(h):
    # sigmoid(h) == 0.5 * tanh(0.5 * h) + 0.5
    # Single EUP transcendental (tanh); the mul/adds ride the VPU slots.
    return 0.5 * jnp.tanh(0.5 * h) + 0.5


def _mlp_kernel(x_ref, w1_ref, b1_ref, w2_ref, b2_ref, w3_ref, b3_ref, o_ref):
    # --- Layer 1: Linear(1024 -> 1024pad) + Sigmoid ---------------------------
    x = x_ref[...].astype(jnp.bfloat16)                        # bf16 MXU inputs
    h1 = jnp.dot(x, w1_ref[...], preferred_element_type=jnp.float32)
    h1 = _sigmoid(h1 + b1_ref[...])                            # (1,1024) broadcast

    # --- Layer 2: Linear(1024pad -> 1024pad) + Sigmoid ------------------------
    h2 = jnp.dot(h1.astype(jnp.bfloat16), w2_ref[...],
                 preferred_element_type=jnp.float32)
    h2 = _sigmoid(h2 + b2_ref[...])

    # --- Layer 3: Linear(1024pad -> 128pad) + Softmax over last dim -----------
    logits = jnp.dot(h2.astype(jnp.bfloat16), w3_ref[...],
                     preferred_element_type=jnp.float32)
    logits = logits + b3_ref[...]          # padded classes biased to -1e30 -> prob 0
    m = jnp.max(logits, axis=-1, keepdims=True)
    e = jnp.exp(logits - m)
    s = jnp.sum(e, axis=-1, keepdims=True)
    # Exact divide: one divide per row, negligible cost, probabilities sum to 1.
    o_ref[...] = (e / s).astype(o_ref.dtype)


def testnet_forward(x, packed_params):
    """x: (B, 1024) float32. Returns (B, 10) softmax probabilities."""
    w1, b1, w2, b2, w3, b3 = packed_params
    B = x.shape[0]

    B8 = _round_up(B, 8)
    TB = _pick_tile(B8)
    B_pad = B8                              # TB divides B8 => no extra padding
    if B_pad != B:
        x = jnp.pad(x, ((0, B_pad - B), (0, 0)))

    grid = (B_pad // TB,)

    const2d = lambda arr: pl.BlockSpec(arr.shape, lambda i: (0, 0))  # VMEM-resident

    flops = 2 * B_pad * (IN_DIM * HID_PAD + HID_PAD * HID_PAD + HID_PAD * OUT_PAD)
    transcendentals = B_pad * (2 * HID_PAD + OUT_PAD)
    bytes_accessed = (int(x.size) * 4 + B_pad * OUT_PAD * 4
                      + (int(w1.size) + int(w2.size) + int(w3.size)) * 2
                      + (int(b1.size) + int(b2.size) + int(b3.size)) * 4)

    out = pl.pallas_call(
        _mlp_kernel,
        out_shape=jax.ShapeDtypeStruct((B_pad, OUT_PAD), jnp.float32),
        grid=grid,
        in_specs=[
            pl.BlockSpec((TB, IN_DIM), lambda i: (i, 0)),   # x: tiled over batch
            const2d(w1), const2d(b1),
            const2d(w2), const2d(b2),
            const2d(w3), const2d(b3),
        ],
        out_specs=pl.BlockSpec((TB, OUT_PAD), lambda i: (i, 0)),
        compiler_params=pltpu.CompilerParams(
            dimension_semantics=("parallel",),   # megacore sharding on v7x
            vmem_limit_bytes=32 << 20,           # TB<=512 fits with headroom
        ),
        cost_estimate=pl.CostEstimate(
            flops=flops,
            transcendentals=transcendentals,
            bytes_accessed=bytes_accessed,
        ),
    )(x, w1, b1, w2, b2, w3, b3)

    return out[:B, :OUT_DIM]


def init_params(key):
    """Deterministic init mimicking nn.Linear defaults (U(-1/sqrt(fan_in), ...)).
    Logical (unpadded) f32 params, weights stored as (in, out)."""
    def linear(k, fan_in, fan_out):
        kw, kb = jax.random.split(k)
        bound = 1.0 / jnp.sqrt(fan_in)
        w = jax.random.uniform(kw, (fan_in, fan_out), jnp.float32, -bound, bound)
        b = jax.random.uniform(kb, (fan_out,), jnp.float32, -bound, bound)
        return w, b

    k1, k2, k3 = jax.random.split(key, 3)
    w1, b1 = linear(k1, IN_DIM, HID)
    w2, b2 = linear(k2, HID, HID)
    w3, b3 = linear(k3, HID, OUT_DIM)
    return (w1, b1, w2, b2, w3, b3)


def pack_params(params):
    """Pad HID->1024 / OUT->128 and cast weights to bf16 (biases stay f32).

    Padding is numerically inert: padded w1/w2 output cols + bias entries are
    zero (padded activations become sigmoid(0)=0.5), padded w2/w3 *rows* are
    zero so those activations never contribute, and padded w3 cols get bias
    -1e30 so their softmax probability is exactly 0.
    """
    w1, b1, w2, b2, w3, b3 = params
    w1p = jnp.zeros((IN_DIM, HID_PAD), jnp.float32).at[:, :HID].set(w1)
    b1p = jnp.zeros((1, HID_PAD), jnp.float32).at[0, :HID].set(b1)
    w2p = jnp.zeros((HID_PAD, HID_PAD), jnp.float32).at[:HID, :HID].set(w2)
    b2p = jnp.zeros((1, HID_PAD), jnp.float32).at[0, :HID].set(b2)
    w3p = jnp.zeros((HID_PAD, OUT_PAD), jnp.float32).at[:HID, :OUT_DIM].set(w3)
    b3p = jnp.full((1, OUT_PAD), -1e30, jnp.float32).at[0, :OUT_DIM].set(b3)
    return (w1p.astype(jnp.bfloat16), b1p,
            w2p.astype(jnp.bfloat16), b2p,
            w3p.astype(jnp.bfloat16), b3p)


def _reference(x, packed_params):
    """Pure-JAX reference mirroring the kernel's bf16-weight quantization."""
    w1, b1, w2, b2, w3, b3 = packed_params

    def mm(a, w):
        return jnp.dot(a.astype(jnp.bfloat16), w,
                       preferred_element_type=jnp.float32)

    h1 = jax.nn.sigmoid(mm(x, w1) + b1)
    h2 = jax.nn.sigmoid(mm(h1, w2) + b2)
    logits = mm(h2, w3) + b3
    return jax.nn.softmax(logits, axis=-1)[:, :OUT_DIM]


if __name__ == "__main__":
    key = jax.random.PRNGKey(0)
    kp, kx = jax.random.split(key)
    params = init_params(kp)
    packed = pack_params(params)

    B = 8  # small batch
    x = jax.random.normal(kx, (B, IN_DIM), jnp.float32)

    out = testnet_forward(x, packed)
    out = jax.block_until_ready(out)

    ref = _reference(x, packed)
    assert out.shape == (B, OUT_DIM)
    assert jnp.allclose(out, ref, atol=5e-3, rtol=0.0), (
        float(jnp.max(jnp.abs(out - ref))))
    assert jnp.allclose(jnp.sum(out, axis=-1), 1.0, atol=2e-3)

    print("KERNEL_OK")
</pallas_src>

<mosaic_0001>
module attributes {stable_mosaic.version = 11 : i64} {
  func.func @_mlp_kernel(%arg0: i32, %arg1: memref<8x1024xf32, #tpu.memory_space<vmem>>, %arg2: memref<1024x1024xbf16, #tpu.memory_space<vmem>>, %arg3: memref<1x1024xf32, #tpu.memory_space<vmem>>, %arg4: memref<1024x1024xbf16, #tpu.memory_space<vmem>>, %arg5: memref<1x1024xf32, #tpu.memory_space<vmem>>, %arg6: memref<1024x128xbf16, #tpu.memory_space<vmem>>, %arg7: memref<1x128xf32, #tpu.memory_space<vmem>>, %arg8: memref<8x128xf32, #tpu.memory_space<vmem>>) attributes {dimension_semantics = [#tpu.dimension_semantics<parallel>], iteration_bounds = array<i64: 1>, scalar_prefetch = 0 : i64, scratch_operands = 0 : i64, tpu.core_type = #tpu.core_type<tc>, window_params = [{transform_indices = @transform_0, window_bounds = array<i64: 8, 1024>}, {pipeline_mode = #tpu.pipeline_mode<synchronous>, transform_indices = @transform_1, window_bounds = array<i64: 1024, 1024>}, {pipeline_mode = #tpu.pipeline_mode<synchronous>, transform_indices = @transform_2, window_bounds = array<i64: 1, 1024>}, {pipeline_mode = #tpu.pipeline_mode<synchronous>, transform_indices = @transform_3, window_bounds = array<i64: 1024, 1024>}, {pipeline_mode = #tpu.pipeline_mode<synchronous>, transform_indices = @transform_4, window_bounds = array<i64: 1, 1024>}, {pipeline_mode = #tpu.pipeline_mode<synchronous>, transform_indices = @transform_5, window_bounds = array<i64: 1024, 128>}, {pipeline_mode = #tpu.pipeline_mode<synchronous>, transform_indices = @transform_6, window_bounds = array<i64: 1, 128>}, {transform_indices = @transform_7, window_bounds = array<i64: 8, 128>}]} {
    %c0 = arith.constant 0 : index
    %c0_0 = arith.constant 0 : index
    %0 = vector.load %arg1[%c0, %c0_0] : memref<8x1024xf32, #tpu.memory_space<vmem>>, vector<8x1024xf32>
    %1 = arith.truncf %0 : vector<8x1024xf32> to vector<8x1024xbf16>
    %c0_1 = arith.constant 0 : index
    %c0_2 = arith.constant 0 : index
    %2 = vector.load %arg2[%c0_1, %c0_2] : memref<1024x1024xbf16, #tpu.memory_space<vmem>>, vector<1024x1024xbf16>
    %cst = arith.constant dense<0.000000e+00> : vector<8x1024xf32>
    %3 = tpu.matmul %1, %2, %cst {dimension_numbers = #tpu.dot_dimension_numbers<[1], [0], [0], [1], [0, 0, 1, 1], [], []>} : vector<8x1024xbf16>, vector<1024x1024xbf16>, vector<8x1024xf32> -> vector<8x1024xf32>
    %c0_3 = arith.constant 0 : index
    %c0_4 = arith.constant 0 : index
    %4 = vector.load %arg3[%c0_3, %c0_4] : memref<1x1024xf32, #tpu.memory_space<vmem>>, vector<1x1024xf32>
    %5 = vector.broadcast %4 : vector<1x1024xf32> to vector<8x1024xf32>
    %6 = arith.addf %3, %5 : vector<8x1024xf32>
    %cst_5 = arith.constant 5.000000e-01 : f32
    %7 = vector.broadcast %cst_5 : f32 to vector<8x1024xf32>
    %8 = arith.mulf %7, %6 : vector<8x1024xf32>
    %9 = math.tanh %8 : vector<8x1024xf32>
    %cst_6 = arith.constant 5.000000e-01 : f32
    %10 = vector.broadcast %cst_6 : f32 to vector<8x1024xf32>
    %11 = arith.mulf %10, %9 : vector<8x1024xf32>
    %cst_7 = arith.constant 5.000000e-01 : f32
    %12 = vector.broadcast %cst_7 : f32 to vector<8x1024xf32>
    %13 = arith.addf %11, %12 : vector<8x1024xf32>
    %14 = arith.truncf %13 : vector<8x1024xf32> to vector<8x1024xbf16>
    %c0_8 = arith.constant 0 : index
    %c0_9 = arith.constant 0 : index
    %15 = vector.load %arg4[%c0_8, %c0_9] : memref<1024x1024xbf16, #tpu.memory_space<vmem>>, vector<1024x1024xbf16>
    %cst_10 = arith.constant dense<0.000000e+00> : vector<8x1024xf32>
    %16 = tpu.matmul %14, %15, %cst_10 {dimension_numbers = #tpu.dot_dimension_numbers<[1], [0], [0], [1], [0, 0, 1, 1], [], []>} : vector<8x1024xbf16>, vector<1024x1024xbf16>, vector<8x1024xf32> -> vector<8x1024xf32>
    %c0_11 = arith.constant 0 : index
    %c0_12 = arith.constant 0 : index
    %17 = vector.load %arg5[%c0_11, %c0_12] : memref<1x1024xf32, #tpu.memory_space<vmem>>, vector<1x1024xf32>
    %18 = vector.broadcast %17 : vector<1x1024xf32> to vector<8x1024xf32>
    %19 = arith.addf %16, %18 : vector<8x1024xf32>
    %cst_13 = arith.constant 5.000000e-01 : f32
    %20 = vector.broadcast %cst_13 : f32 to vector<8x1024xf32>
    %21 = arith.mulf %20, %19 : vector<8x1024xf32>
    %22 = math.tanh %21 : vector<8x1024xf32>
    %cst_14 = arith.constant 5.000000e-01 : f32
    %23 = vector.broadcast %cst_14 : f32 to vector<8x1024xf32>
    %24 = arith.mulf %23, %22 : vector<8x1024xf32>
    %cst_15 = arith.constant 5.000000e-01 : f32
    %25 = vector.broadcast %cst_15 : f32 to vector<8x1024xf32>
    %26 = arith.addf %24, %25 : vector<8x1024xf32>
    %27 = arith.truncf %26 : vector<8x1024xf32> to vector<8x1024xbf16>
    %c0_16 = arith.constant 0 : index
    %c0_17 = arith.constant 0 : index
    %28 = vector.load %arg6[%c0_16, %c0_17] : memref<1024x128xbf16, #tpu.memory_space<vmem>>, vector<1024x128xbf16>
    %cst_18 = arith.constant dense<0.000000e+00> : vector<8x128xf32>
    %29 = tpu.matmul %27, %28, %cst_18 {dimension_numbers = #tpu.dot_dimension_numbers<[1], [0], [0], [1], [0, 0, 1, 1], [], []>} : vector<8x1024xbf16>, vector<1024x128xbf16>, vector<8x128xf32> -> vector<8x128xf32>
    %c0_19 = arith.constant 0 : index
    %c0_20 = arith.constant 0 : index
    %30 = vector.load %arg7[%c0_19, %c0_20] : memref<1x128xf32, #tpu.memory_space<vmem>>, vector<1x128xf32>
    %31 = vector.broadcast %30 : vector<1x128xf32> to vector<8x128xf32>
    %32 = arith.addf %29, %31 : vector<8x128xf32>
    %cst_21 = arith.constant dense<0xFF800000> : vector<8xf32>
    %33 = vector.multi_reduction <maximumf>, %32, %cst_21 [1] : vector<8x128xf32> to vector<8xf32>
    %34 = vector.shape_cast %33 : vector<8xf32> to vector<8x1xf32>
    %35 = vector.broadcast %34 : vector<8x1xf32> to vector<8x128xf32>
    %36 = arith.subf %32, %35 : vector<8x128xf32>
    %37 = math.exp %36 : vector<8x128xf32>
    %cst_22 = arith.constant dense<0.000000e+00> : vector<8xf32>
    %38 = vector.multi_reduction <add>, %37, %cst_22 [1] : vector<8x128xf32> to vector<8xf32>
    %39 = vector.shape_cast %38 : vector<8xf32> to vector<8x1xf32>
    %40 = vector.broadcast %39 : vector<8x1xf32> to vector<8x128xf32>
    %41 = arith.divf %37, %40 : vector<8x128xf32>
    %c0_23 = arith.constant 0 : index
    %c0_24 = arith.constant 0 : index
    %42 = vector.load %arg8[%c0_23, %c0_24] : memref<8x128xf32, #tpu.memory_space<vmem>>, vector<8x128xf32>
    tpu.vector_store %arg8[%c0_23, %c0_24], %41 {strides = array<i32>} : memref<8x128xf32, #tpu.memory_space<vmem>>, vector<8x128xf32>,
    return
  }
  func.func @transform_0(%arg0: i32) -> (i32, i32) {
    %c0_i32 = arith.constant 0 : i32
    %c0_i32_0 = arith.constant 0 : i32
    return %arg0, %c0_i32 : i32, i32
  }
  func.func @transform_1(%arg0: i32) -> (i32, i32) {
    %c0_i32 = arith.constant 0 : i32
    %c0_i32_0 = arith.constant 0 : i32
    %c0_i32_1 = arith.constant 0 : i32
    return %c0_i32, %c0_i32_0 : i32, i32
  }
  func.func @transform_2(%arg0: i32) -> (i32, i32) {
    %c0_i32 = arith.constant 0 : i32
    %c0_i32_0 = arith.constant 0 : i32
    %c0_i32_1 = arith.constant 0 : i32
    return %c0_i32, %c0_i32_0 : i32, i32
  }
  func.func @transform_3(%arg0: i32) -> (i32, i32) {
    %c0_i32 = arith.constant 0 : i32
    %c0_i32_0 = arith.constant 0 : i32
    %c0_i32_1 = arith.constant 0 : i32
    return %c0_i32, %c0_i32_0 : i32, i32
  }
  func.func @transform_4(%arg0: i32) -> (i32, i32) {
    %c0_i32 = arith.constant 0 : i32
    %c0_i32_0 = arith.constant 0 : i32
    %c0_i32_1 = arith.constant 0 : i32
    return %c0_i32, %c0_i32_0 : i32, i32
  }
  func.func @transform_5(%arg0: i32) -> (i32, i32) {
    %c0_i32 = arith.constant 0 : i32
    %c0_i32_0 = arith.constant 0 : i32
    %c0_i32_1 = arith.constant 0 : i32
    return %c0_i32, %c0_i32_0 : i32, i32
  }
  func.func @transform_6(%arg0: i32) -> (i32, i32) {
    %c0_i32 = arith.constant 0 : i32
    %c0_i32_0 = arith.constant 0 : i32
    %c0_i32_1 = arith.constant 0 : i32
    return %c0_i32, %c0_i32_0 : i32, i32
  }
  func.func @transform_7(%arg0: i32) -> (i32, i32) {
    %c0_i32 = arith.constant 0 : i32
    %c0_i32_0 = arith.constant 0 : i32
    return %arg0, %c0_i32 : i32, i32
  }
}

</mosaic_0001>

<bundles_post_ra>
// kernel: tpu_custom_call.1
= control target key start
LH: loop header
LB: loop body
LE: loop exit
PB: predicated region body
PF: predicated region fallthrough
CT: control target
= control target key end

     0   :  { %12 = vsyncpa [#allocation3], 0  ;;  %s10271_s0 = inlined_call_operand.hbm [shape: f32[8,1024], index: 0, kind: input, shape index: {}]   ;;  %s10272_s1 = inlined_call_operand.hbm [shape: bf16[1024,1024], index: 1, kind: input, shape index: {}]   ;;  %s10273_s2 = inlined_call_operand.hbm [shape: f32[1,1024], index: 2, kind: input, shape index: {}]   ;;  %s10274_s3 = inlined_call_operand.hbm [shape: bf16[1024,1024], index: 3, kind: input, shape index: {}]   ;;  %s10275_s4 = inlined_call_operand.hbm [shape: f32[1,1024], index: 4, kind: input, shape index: {}]   ;;  %s10276_s5 = inlined_call_operand.hbm [shape: bf16[1024,128], index: 5, kind: input, shape index: {}]   ;;  %s10277_s6 = inlined_call_operand.hbm [shape: f32[1,128], index: 6, kind: input, shape index: {}]   ;;  %s10278_s7 = inlined_call_operand.hbm [shape: f32[8,128], index: 7, kind: output, shape index: {}]  }
   0x1   :  { %13 = vsyncpa [#allocation6], 0 }
   0x2   :  { %14 = vsyncpa [#allocation9], 0 }
   0x3   :  { %15 = vsyncpa [#allocation12], 0 }
   0x4   :  { %16 = vsyncpa [#allocation4], 0  ;;  %s9920_s24 = smov [#allocation5]  }
   0x5   :  { %s32_s25 = sshll.u32 %s9920_s24, 4  ;;  %s33_s25 = int_to_ptr.vmem [resolvable:$true] %s32_s25 }
   0x6   :  { %s9758_s26 = scalar_lea.vmem %s33_s25, 65536  ;;  %p9763_p1 = scmp.lt.s32.totalorder %s33_s25, %s33_s25 }
   0x7   :  { %p9759_p0 = scmp.ne.s32.totalorder %s33_s25, %s9758_s26  ;;  %p9764_p2 = scmp.lt.s32.totalorder %s9758_s26, %s9758_s26 }
   0x9   :  { %p9765_p3 = por %p9764_p2, %p9763_p1 }
   0xb   :  { %p9766_p4 = pnand %p9765_p3, %p9759_p0 }
   0xd   :  { %9769 = shalt.err (!%p9766_p4)
}
   0xe   :  { %s9921_s27 = smov 512   ;;  %s9922_s28 = smov 32  }
   0xf   :  { %38 = dma.hbm_to_vmem [thread:$0]  %s10272_s1, 65536, %s33_s25, [#allocation6], %s9921_s27, %s9921_s27, %s9922_s28  }
  0x10   :  { %s9923_s8 = smov [#allocation8]   ;;  %s9924_s10 = smov [#allocation11]  }
  0x11   :  { %s54_s9 = sshll.u32 %s9923_s8, 4  ;;  %s76_s11 = sshll.u32 %s9924_s10, 4  ;;  %s55_s9 = int_to_ptr.vmem [resolvable:$true] %s54_s9  ;;  %s77_s11 = int_to_ptr.vmem [resolvable:$true] %s76_s11 }
  0x12   :  { %s9778_s12 = scalar_lea.vmem %s55_s9, 65536  ;;  %p9783_p6 = scmp.lt.s32.totalorder %s55_s9, %s55_s9 }
  0x13   :  { %p9779_p5 = scmp.ne.s32.totalorder %s55_s9, %s9778_s12  ;;  %p9784_p7 = scmp.lt.s32.totalorder %s9778_s12, %s9778_s12 }
  0x15   :  { %p9785_p8 = por %p9784_p7, %p9783_p6 }
  0x17   :  { %p9786_p9 = pnand %p9785_p8, %p9779_p5 }
  0x19   :  { %9789 = shalt.err (!%p9786_p9)
}
  0x1a   :  { %60 = dma.hbm_to_vmem [thread:$0]  %s10274_s3, 65536, %s55_s9, [#allocation9], %s9921_s27, %s9921_s27, %s9922_s28  }
  0x1b   :  { %s9798_s15 = scalar_lea.vmem %s77_s11, 8192  ;;  %p9803_p11 = scmp.lt.s32.totalorder %s77_s11, %s77_s11 }
  0x1c   :  { %p9799_p10 = scmp.ne.s32.totalorder %s77_s11, %s9798_s15  ;;  %p9804_p12 = scmp.lt.s32.totalorder %s9798_s15, %s9798_s15 }
  0x1e   :  { %p9805_p13 = por %p9804_p12, %p9803_p11 }
  0x20   :  { %p9806_p0 = pnand %p9805_p13, %p9799_p10 }
  0x22   :  { %9809 = shalt.err (!%p9806_p0)
}
  0x23   :  { %s9925_s1 = smov 64   ;;  %s9926_s16 = smov 4  }
  0x24   :  { %82 = dma.hbm_to_vmem [thread:$0]  %s10276_s5, 8192, %s77_s11, [#allocation12], %s9925_s1, %s9925_s1, %s9926_s16  }
  0x25   :  { %s9927_s19 = smov [#allocation2]   ;;  %s9928_s21 = smov [#allocation7]  }
  0x26   :  { %s23_s20 = sshll.u32 %s9927_s19, 4  ;;  %s45_s22 = sshll.u32 %s9928_s21, 4  ;;  %s24_s20 = int_to_ptr.vmem [resolvable:$true] %s23_s20  ;;  %s46_s22 = int_to_ptr.vmem [resolvable:$true] %s45_s22 }
  0x27   :  { %s9818_s3 = scalar_lea.vmem %s24_s20, 1024  ;;  %p9823_p2 = scmp.lt.s32.totalorder %s24_s20, %s24_s20 }
  0x28   :  { %p9819_p1 = scmp.ne.s32.totalorder %s24_s20, %s9818_s3  ;;  %p9824_p3 = scmp.lt.s32.totalorder %s9818_s3, %s9818_s3 }
  0x2a   :  { %p9825_p4 = por %p9824_p3, %p9823_p2 }
  0x2c   :  { %p9826_p5 = pnand %p9825_p4, %p9819_p1 }
  0x2e   :  { %9829 = shalt.err (!%p9826_p5)
}
  0x2f   :  { %26 = dma.hbm_to_vmem [thread:$0]  %s10271_s0, 1024, %s24_s20, [#allocation3]  }
  0x30   :  { %s9838_s25 = scalar_lea.vmem %s46_s22, 128  ;;  %p9843_p7 = scmp.lt.s32.totalorder %s46_s22, %s46_s22 }
  0x31   :  { %p9839_p6 = scmp.ne.s32.totalorder %s46_s22, %s9838_s25  ;;  %p9844_p8 = scmp.lt.s32.totalorder %s9838_s25, %s9838_s25 }
  0x33   :  { %p9845_p9 = por %p9844_p8, %p9843_p7 }
  0x35   :  { %p9846_p10 = pnand %p9845_p9, %p9839_p6 }
  0x37   :  { %9849 = shalt.err (!%p9846_p10)
}
  0x38   :  { %48 = dma.hbm_to_vmem [thread:$0]  %s10273_s2, 128, %s46_s22, [#allocation6]  }
  0x39   :  { %s9929_s27 = smov [#allocation10]   ;;  %s9930_s29 = smov [#allocation13]  }
  0x3a   :  { %s67_s28 = sshll.u32 %s9929_s27, 4  ;;  %s89_s30 = sshll.u32 %s9930_s29, 4  ;;  %s68_s28 = int_to_ptr.vmem [resolvable:$true] %s67_s28  ;;  %s90_s30 = int_to_ptr.vmem [resolvable:$true] %s89_s30 }
  0x3b   :  { %s9858_s8 = scalar_lea.vmem %s68_s28, 128  ;;  %p9863_p12 = scmp.lt.s32.totalorder %s68_s28, %s68_s28 }
  0x3c   :  { %p9859_p11 = scmp.ne.s32.totalorder %s68_s28, %s9858_s8  ;;  %p9864_p13 = scmp.lt.s32.totalorder %s9858_s8, %s9858_s8 }
  0x3e   :  { %p9865_p0 = por %p9864_p13, %p9863_p12 }
  0x40   :  { %p9866_p1 = pnand %p9865_p0, %p9859_p11 }
  0x42   :  { %9869 = shalt.err (!%p9866_p1)
}
  0x43   :  { %70 = dma.hbm_to_vmem [thread:$0]  %s10275_s4, 128, %s68_s28, [#allocation9]  }
  0x44   :  { %s9878_s10 = scalar_lea.vmem %s90_s30, 16  ;;  %s9882_s2 = scalar_lea.vmem %s90_s30, 32 }
  0x45   :  { %p9879_p2 = scmp.ne.s32.totalorder %s90_s30, %s9878_s10  ;;  %p9883_p3 = scmp.lt.s32.totalorder %s90_s30, %s90_s30 }
  0x46   :  { %p9884_p4 = scmp.lt.s32.totalorder %s9882_s2, %s9878_s10 }
  0x48   :  { %p9885_p5 = por %p9884_p4, %p9883_p3 }
  0x4a   :  { %p9886_p6 = pnand %p9885_p5, %p9879_p2 }
  0x4c   :  { %9889 = shalt.err (!%p9886_p6)
}
  0x4d   :  { %92 = dma.hbm_to_vmem [thread:$0]  %s10277_s6, 16, %s90_s30, [#allocation12]  }
  0x4e   :  { %9910 = dma.done.wait [#allocation3], 1024  }
  0x4f   :  { %9911 = vsyncadd [#allocation3], 4294966272 }
  0x50   :  { %9912 = dma.done.wait [#allocation6], 65664  }
  0x51   :  { %9913 = vsyncadd [#allocation6], 4294901632 }
  0x52   :  { %9914 = dma.done.wait [#allocation9], 65664  }
  0x53   :  { %9915 = vsyncadd [#allocation9], 4294901632 }
  0x54   :  { %9916 = dma.done.wait [#allocation12], 8208  }
  0x55   :  { %9917 = vsyncadd [#allocation12], 4294959088  ;;  %v187_v0 = vld [vmem:[#allocation5 + $0x1c0] sm:$0xff]  ;;  %v116_v53 = vld [vmem:[#allocation2 + $0x8] sm:$0xff]  ;;  %s9931_s4 = smov [#allocation14]  }
  0x56   :  { %v191_v1 = vld [vmem:[#allocation5 + $0x1e0] sm:$0xff]  ;;  %v118_v54 = vld [vmem:[#allocation2 + $0x18] sm:$0xff]  ;;  %v9993_v58 = vpack.c.bf16 %v116_v53, %v116_v53  ;;  %s8446_s6 = sshll.u32 %s9931_s4, 4  ;;  %s8447_s6 = int_to_ptr.vmem [resolvable:$true] %s8446_s6 }
  0x57   :  { %v315_v2 = vld [vmem:[#allocation5 + $0x5c0] sm:$0xff]  ;;  %v8515_v3 = vcombine.high %v187_v0, %v191_v1  ;;  %v8514_v5 = vcombine.low %v187_v0, %v191_v1  ;;  %v9995_v59 = vpack.c.bf16 %v118_v54, %v118_v54  ;;  %s9890_s13 = scalar_lea.vmem %s8447_s6, 128  ;;  %p9895_p8 = scmp.lt.s32.totalorder %s8447_s6, %s8447_s6 }
  0x58   :  { %v319_v4 = vld [vmem:[#allocation5 + $0x5e0] sm:$0xff]  ;;  %3277 = vmatprep.mubr.bf16.mxu0 %v9993_v58  ;;  %p9891_p7 = scmp.ne.s32.totalorder %s8447_s6, %s9890_s13  ;;  %p9896_p9 = scmp.lt.s32.totalorder %s9890_s13, %s9890_s13 }
  0x59   :  { %v179_v6 = vld [vmem:[#allocation5 + $0x180] sm:$0xff]  ;;  %v8643_v8 = vcombine.high %v315_v2, %v319_v4  ;;  %v8642_v9 = vcombine.low %v315_v2, %v319_v4  ;;  %3245 = vmatprep.subr.bf16.mxu0 %v8515_v3  ;;  %3318 = vmatprep.mubr.bf16.mxu1 %v9995_v59 }
  0x5a   :  { %v183_v7 = vld [vmem:[#allocation5 + $0x1a0] sm:$0xff]  ;;  %3246 = vmatpush1.bf16.msra.mxu0 %v8514_v5  ;;  %p9897_p10 = por %p9896_p9, %p9895_p8 }
  0x5b   :  { %v8507_v10 = vcombine.high %v179_v6, %v183_v7  ;;  %v307_v11 = vld [vmem:[#allocation5 + $0x580] sm:$0xff]  ;;  %3286 = vmatprep.subr.bf16.mxu1 %v8643_v8  ;;  %v8506_v18 = vcombine.low %v179_v6, %v183_v7 }
  0x5c   :  { %v311_v12 = vld [vmem:[#allocation5 + $0x5a0] sm:$0xff]  ;;  %3287 = vmatpush1.bf16.msra.mxu1 %v8642_v9  ;;  %p9898_p11 = pnand %p9897_p10, %p9891_p7 }
  0x5d   :  { %v171_v13 = vld [vmem:[#allocation5 + $0x140] sm:$0xff]  ;;  %v8635_v14 = vcombine.high %v307_v11, %v311_v12  ;;  %3247 = vmatprep.subr.bf16.mxu0 %v8507_v10  ;;  %v8634_v19 = vcombine.low %v307_v11, %v311_v12 }
  0x5e   :  { %v175_v15 = vld [vmem:[#allocation5 + $0x160] sm:$0xff]  ;;  %3248 = vmatpush1.bf16.msra.mxu0 %v8506_v18 }
  0x5f   :  { %v299_v16 = vld [vmem:[#allocation5 + $0x540] sm:$0xff]  ;;  %v8499_v20 = vcombine.high %v171_v13, %v175_v15  ;;  %3288 = vmatprep.subr.bf16.mxu1 %v8635_v14  ;;  %v8498_v26 = vcombine.low %v171_v13, %v175_v15 }
  0x60   :  { %v303_v17 = vld [vmem:[#allocation5 + $0x560] sm:$0xff]  ;;  %3289 = vmatpush1.bf16.msra.mxu1 %v8634_v19 }
  0x61   :  { %v8627_v21 = vcombine.high %v299_v16, %v303_v17  ;;  %v163_v22 = vld [vmem:[#allocation5 + $0x100] sm:$0xff]  ;;  %3249 = vmatprep.subr.bf16.mxu0 %v8499_v20  ;;  %v8626_v27 = vcombine.low %v299_v16, %v303_v17 }
  0x62   :  { %v167_v23 = vld [vmem:[#allocation5 + $0x120] sm:$0xff]  ;;  %3250 = vmatpush1.bf16.msra.mxu0 %v8498_v26 }
  0x63   :  { %v291_v24 = vld [vmem:[#allocation5 + $0x500] sm:$0xff]  ;;  %v8491_v28 = vcombine.high %v163_v22, %v167_v23  ;;  %3290 = vmatprep.subr.bf16.mxu1 %v8627_v21  ;;  %v8490_v34 = vcombine.low %v163_v22, %v167_v23 }
  0x64   :  { %v295_v25 = vld [vmem:[#allocation5 + $0x520] sm:$0xff]  ;;  %3291 = vmatpush1.bf16.msra.mxu1 %v8626_v27 }
  0x65   :  { %v8619_v29 = vcombine.high %v291_v24, %v295_v25  ;;  %v155_v30 = vld [vmem:[#allocation5 + $0xc0] sm:$0xff]  ;;  %3251 = vmatprep.subr.bf16.mxu0 %v8491_v28  ;;  %v8618_v35 = vcombine.low %v291_v24, %v295_v25 }
  0x66   :  { %v159_v31 = vld [vmem:[#allocation5 + $0xe0] sm:$0xff]  ;;  %3252 = vmatpush1.bf16.msra.mxu0 %v8490_v34 }
  0x67   :  { %v283_v32 = vld [vmem:[#allocation5 + $0x4c0] sm:$0xff]  ;;  %v8483_v36 = vcombine.high %v155_v30, %v159_v31  ;;  %3292 = vmatprep.subr.bf16.mxu1 %v8619_v29  ;;  %v8482_v42 = vcombine.low %v155_v30, %v159_v31 }
  0x68   :  { %v287_v33 = vld [vmem:[#allocation5 + $0x4e0] sm:$0xff]  ;;  %3293 = vmatpush1.bf16.msra.mxu1 %v8618_v35 }
  0x69   :  { %v8611_v37 = vcombine.high %v283_v32, %v287_v33  ;;  %v147_v38 = vld [vmem:[#allocation5 + $0x80] sm:$0xff]  ;;  %3253 = vmatprep.subr.bf16.mxu0 %v8483_v36  ;;  %v8610_v43 = vcombine.low %v283_v32, %v287_v33 }
  0x6a   :  { %v151_v39 = vld [vmem:[#allocation5 + $0xa0] sm:$0xff]  ;;  %3254 = vmatpush1.bf16.msra.mxu0 %v8482_v42 }
  0x6b   :  { %v275_v40 = vld [vmem:[#allocation5 + $0x480] sm:$0xff]  ;;  %v8475_v44 = vcombine.high %v147_v38, %v151_v39  ;;  %3294 = vmatprep.subr.bf16.mxu1 %v8611_v37  ;;  %v8474_v50 = vcombine.low %v147_v38, %v151_v39 }
  0x6c   :  { %v279_v41 = vld [vmem:[#allocation5 + $0x4a0] sm:$0xff]  ;;  %3295 = vmatpush1.bf16.msra.mxu1 %v8610_v43 }
  0x6d   :  { %v8603_v45 = vcombine.high %v275_v40, %v279_v41  ;;  %v139_v46 = vld [vmem:[#allocation5 + $0x40] sm:$0xff]  ;;  %3255 = vmatprep.subr.bf16.mxu0 %v8475_v44  ;;  %v8602_v51 = vcombine.low %v275_v40, %v279_v41 }
  0x6e   :  { %v143_v47 = vld [vmem:[#allocation5 + $0x60] sm:$0xff]  ;;  %3256 = vmatpush1.bf16.msra.mxu0 %v8474_v50 }
  0x6f   :  { %v267_v48 = vld [vmem:[#allocation5 + $0x440] sm:$0xff]  ;;  %v8467_v52 = vcombine.high %v139_v46, %v143_v47  ;;  %3296 = vmatprep.subr.bf16.mxu1 %v8603_v45  ;;  %v8466_v62 = vcombine.low %v139_v46, %v143_v47 }
  0x70   :  { %v271_v49 = vld [vmem:[#allocation5 + $0x460] sm:$0xff]  ;;  %3297 = vmatpush1.bf16.msra.mxu1 %v8602_v51 }
  0x71   :  { %v8595_v55 = vcombine.high %v267_v48, %v271_v49  ;;  %v131_v56 = vld [vmem:[#allocation5] sm:$0xff]  ;;  %3257 = vmatprep.subr.bf16.mxu0 %v8467_v52  ;;  %v8594_v63 = vcombine.low %v267_v48, %v271_v49 }
  0x72   :  { %v135_v57 = vld [vmem:[#allocation5 + $0x20] sm:$0xff]  ;;  %3258 = vmatpush1.bf16.msra.mxu0 %v8466_v62 }
  0x73   :  { %v259_v60 = vld [vmem:[#allocation5 + $0x400] sm:$0xff]  ;;  %v8459_v0 = vcombine.high %v131_v56, %v135_v57  ;;  %3298 = vmatprep.subr.bf16.mxu1 %v8595_v55  ;;  %v8458_v6 = vcombine.low %v131_v56, %v135_v57 }
  0x74   :  { %v263_v61 = vld [vmem:[#allocation5 + $0x420] sm:$0xff]  ;;  %3299 = vmatpush1.bf16.msra.mxu1 %v8594_v63 }
  0x75   :  { %v8587_v1 = vcombine.high %v259_v60, %v263_v61  ;;  %v251_v2 = vld [vmem:[#allocation5 + $0x3c0] sm:$0xff]  ;;  %3259 = vmatprep.subr.bf16.mxu0 %v8459_v0  ;;  %v8586_v7 = vcombine.low %v259_v60, %v263_v61 }
  0x76   :  { %v255_v3 = vld [vmem:[#allocation5 + $0x3e0] sm:$0xff]  ;;  %3260 = vmatpush1.bf16.msra.mxu0 %v8458_v6 }
  0x77   :  { %v379_v4 = vld [vmem:[#allocation5 + $0x7c0] sm:$0xff]  ;;  %v8579_v8 = vcombine.high %v251_v2, %v255_v3  ;;  %3300 = vmatprep.subr.bf16.mxu1 %v8587_v1  ;;  %v8578_v14 = vcombine.low %v251_v2, %v255_v3 }
  0x78   :  { %v383_v5 = vld [vmem:[#allocation5 + $0x7e0] sm:$0xff]  ;;  %3301 = vmatpush1.bf16.msra.mxu1 %v8586_v7 }
  0x79   :  { %v8707_v9 = vcombine.high %v379_v4, %v383_v5  ;;  %v243_v10 = vld [vmem:[#allocation5 + $0x380] sm:$0xff]  ;;  %3261 = vmatprep.subr.bf16.mxu0 %v8579_v8  ;;  %v8706_v15 = vcombine.low %v379_v4, %v383_v5 }
  0x7a   :  { %v247_v11 = vld [vmem:[#allocation5 + $0x3a0] sm:$0xff]  ;;  %3262 = vmatpush2.bf16.msra.mxu0 %v8578_v14 }
  0x7b   :  { %v371_v12 = vld [vmem:[#allocation5 + $0x780] sm:$0xff]  ;;  %v8571_v16 = vcombine.high %v243_v10, %v247_v11  ;;  %3302 = vmatprep.subr.bf16.mxu1 %v8707_v9  ;;  %v8570_v22 = vcombine.low %v243_v10, %v247_v11  ;;  %v117_v11 = vld [vmem:[#allocation2 + $0x10] sm:$0xff] }
  0x7c   :  { %v375_v13 = vld [vmem:[#allocation5 + $0x7a0] sm:$0xff]  ;;  %3303 = vmatpush2.bf16.msra.mxu1 %v8706_v15 }
  0x7d   :  { %v8699_v17 = vcombine.high %v371_v12, %v375_v13  ;;  %v235_v18 = vld [vmem:[#allocation5 + $0x340] sm:$0xff]  ;;  %3263 = vmatprep.subr.bf16.mxu0 %v8571_v16  ;;  %v8698_v23 = vcombine.low %v371_v12, %v375_v13 }
  0x7e   :  { %v239_v19 = vld [vmem:[#allocation5 + $0x360] sm:$0xff]  ;;  %3264 = vmatpush2.bf16.msra.mxu0 %v8570_v22  ;;  %v122_v22 = vld [vmem:[#allocation2 + $0x38] sm:$0xff] }
  0x7f   :  { %v363_v20 = vld [vmem:[#allocation5 + $0x740] sm:$0xff]  ;;  %v8563_v24 = vcombine.high %v235_v18, %v239_v19  ;;  %3304 = vmatprep.subr.bf16.mxu1 %v8699_v17  ;;  %v8562_v30 = vcombine.low %v235_v18, %v239_v19  ;;  %v120_v19 = vld [vmem:[#allocation2 + $0x28] sm:$0xff] }
  0x80   :  { %v367_v21 = vld [vmem:[#allocation5 + $0x760] sm:$0xff]  ;;  %3305 = vmatpush2.bf16.msra.mxu1 %v8698_v23 }
  0x81   :  { %v8691_v25 = vcombine.high %v363_v20, %v367_v21  ;;  %v227_v26 = vld [vmem:[#allocation5 + $0x300] sm:$0xff]  ;;  %3265 = vmatprep.subr.bf16.mxu0 %v8563_v24  ;;  %v8690_v31 = vcombine.low %v363_v20, %v367_v21  ;;  %v10001_v20 = vpack.c.bf16 %v117_v11, %v117_v11 }
  0x82   :  { %v231_v27 = vld [vmem:[#allocation5 + $0x320] sm:$0xff]  ;;  %3266 = vmatpush2.bf16.msra.mxu0 %v8562_v30 }
  0x83   :  { %v355_v28 = vld [vmem:[#allocation5 + $0x700] sm:$0xff]  ;;  %v8555_v32 = vcombine.high %v227_v26, %v231_v27  ;;  %3306 = vmatprep.subr.bf16.mxu1 %v8691_v25  ;;  %v8554_v38 = vcombine.low %v227_v26, %v231_v27 }
  0x84   :  { %v359_v29 = vld [vmem:[#allocation5 + $0x720] sm:$0xff]  ;;  %3307 = vmatpush2.bf16.msra.mxu1 %v8690_v31  ;;  %v10006_v31 = vpack.c.bf16 %v122_v22, %v122_v22 }
  0x85   :  { %v8683_v33 = vcombine.high %v355_v28, %v359_v29  ;;  %v219_v34 = vld [vmem:[#allocation5 + $0x2c0] sm:$0xff]  ;;  %3267 = vmatprep.subr.bf16.mxu0 %v8555_v32  ;;  %v8682_v39 = vcombine.low %v355_v28, %v359_v29  ;;  %v10003_v28 = vpack.c.bf16 %v120_v19, %v120_v19 }
  0x86   :  { %v223_v35 = vld [vmem:[#allocation5 + $0x2e0] sm:$0xff]  ;;  %3268 = vmatpush2.bf16.msra.mxu0 %v8554_v38 }
  0x87   :  { %v347_v36 = vld [vmem:[#allocation5 + $0x6c0] sm:$0xff]  ;;  %v8547_v40 = vcombine.high %v219_v34, %v223_v35  ;;  %3308 = vmatprep.subr.bf16.mxu1 %v8683_v33  ;;  %v8546_v46 = vcombine.low %v219_v34, %v223_v35 }
  0x88   :  { %v351_v37 = vld [vmem:[#allocation5 + $0x6e0] sm:$0xff]  ;;  %3309 = vmatpush2.bf16.msra.mxu1 %v8682_v39 }
  0x89   :  { %v8675_v41 = vcombine.high %v347_v36, %v351_v37  ;;  %v211_v42 = vld [vmem:[#allocation5 + $0x280] sm:$0xff]  ;;  %3269 = vmatprep.subr.bf16.mxu0 %v8547_v40  ;;  %v8674_v47 = vcombine.low %v347_v36, %v351_v37 }
  0x8a   :  { %v215_v43 = vld [vmem:[#allocation5 + $0x2a0] sm:$0xff]  ;;  %3270 = vmatpush2.bf16.msra.mxu0 %v8546_v46 }
  0x8b   :  { %v339_v44 = vld [vmem:[#allocation5 + $0x680] sm:$0xff]  ;;  %v8539_v48 = vcombine.high %v211_v42, %v215_v43  ;;  %3310 = vmatprep.subr.bf16.mxu1 %v8675_v41  ;;  %v8538_v54 = vcombine.low %v211_v42, %v215_v43 }
  0x8c   :  { %v343_v45 = vld [vmem:[#allocation5 + $0x6a0] sm:$0xff]  ;;  %3311 = vmatpush2.bf16.msra.mxu1 %v8674_v47 }
  0x8d   :  { %v8667_v49 = vcombine.high %v339_v44, %v343_v45  ;;  %v203_v50 = vld [vmem:[#allocation5 + $0x240] sm:$0xff]  ;;  %3271 = vmatprep.subr.bf16.mxu0 %v8539_v48  ;;  %v8666_v55 = vcombine.low %v339_v44, %v343_v45 }
  0x8e   :  { %v207_v51 = vld [vmem:[#allocation5 + $0x260] sm:$0xff]  ;;  %3272 = vmatpush2.bf16.msra.mxu0 %v8538_v54 }
  0x8f   :  { %v331_v52 = vld [vmem:[#allocation5 + $0x640] sm:$0xff]  ;;  %v8531_v56 = vcombine.high %v203_v50, %v207_v51  ;;  %3312 = vmatprep.subr.bf16.mxu1 %v8667_v49  ;;  %v8530_v0 = vcombine.low %v203_v50, %v207_v51 }
  0x90   :  { %v335_v53 = vld [vmem:[#allocation5 + $0x660] sm:$0xff]  ;;  %3313 = vmatpush2.bf16.msra.mxu1 %v8666_v55 }
  0x91   :  { %v8659_v57 = vcombine.high %v331_v52, %v335_v53  ;;  %v195_v60 = vld [vmem:[#allocation5 + $0x200] sm:$0xff]  ;;  %3273 = vmatprep.subr.bf16.mxu0 %v8531_v56  ;;  %v8658_v1 = vcombine.low %v331_v52, %v335_v53 }
  0x92   :  { %v199_v61 = vld [vmem:[#allocation5 + $0x220] sm:$0xff]  ;;  %3274 = vmatpush2.bf16.msra.mxu0 %v8530_v0 }
  0x93   :  { %v323_v62 = vld [vmem:[#allocation5 + $0x600] sm:$0xff]  ;;  %v8523_v2 = vcombine.high %v195_v60, %v199_v61  ;;  %3314 = vmatprep.subr.bf16.mxu1 %v8659_v57  ;;  %v8522_v8 = vcombine.low %v195_v60, %v199_v61 }
  0x94   :  { %v327_v63 = vld [vmem:[#allocation5 + $0x620] sm:$0xff]  ;;  %3315 = vmatpush2.bf16.msra.mxu1 %v8658_v1 }
  0x95   :  { %v8651_v3 = vcombine.high %v323_v62, %v327_v63  ;;  %v443_v4 = vld [vmem:[#allocation5 + $0x9c0] sm:$0xff]  ;;  %3275 = vmatprep.subr.bf16.mxu0 %v8523_v2  ;;  %v8650_v10 = vcombine.low %v323_v62, %v327_v63 }
  0x96   :  { %v447_v5 = vld [vmem:[#allocation5 + $0x9e0] sm:$0xff]  ;;  %3276 = vmatpush2.bf16.msra.mxu0 %v8522_v8 }
  0x97   :  { %v571_v6 = vld [vmem:[#allocation5 + $0xdc0] sm:$0xff]  ;;  %v8771_v12 = vcombine.high %v443_v4, %v447_v5  ;;  %3316 = vmatprep.subr.bf16.mxu1 %v8651_v3  ;;  %v8770_v21 = vcombine.low %v443_v4, %v447_v5 }
  0x98   :  { %v575_v7 = vld [vmem:[#allocation5 + $0xde0] sm:$0xff]  ;;  %3317 = vmatpush2.bf16.msra.mxu1 %v8650_v10 }
  0x99   :  { %v115_v9 = vld [vmem:[#allocation2] sm:$0xff]  ;;  %v8899_v13 = vcombine.high %v571_v6, %v575_v7  ;;  %3327 = vmatprep.subr.bf16.mxu0 %v8771_v12  ;;  %v8898_v23 = vcombine.low %v571_v6, %v575_v7 }
  0x9a   :  { %v435_v14 = vld [vmem:[#allocation5 + $0x980] sm:$0xff]  ;;  %v9999_v16 = vpack.c.bf16 %v115_v9, %v115_v9 }
  0x9b   :  { %v439_v15 = vld [vmem:[#allocation5 + $0x9a0] sm:$0xff]  ;;  %3368 = vmatprep.subr.bf16.mxu1 %v8899_v13  ;;  %3319 = vmatmul.mubr.bf16.vlgmr.msra.gmra.mxu1 %v10001_v20 }
  0x9c   :  { %v563_v17 = vld [vmem:[#allocation5 + $0xd80] sm:$0xff]  ;;  %v8763_v24 = vcombine.high %v435_v14, %v439_v15  ;;  %3278 = vmatmul.mubr.bf16.vlgmr.msra.gmra.mxu0 %v9999_v16  ;;  %v8762_v32 = vcombine.low %v435_v14, %v439_v15  ;;  %3369 = vmatpush1.bf16.msra.mxu1 %v8898_v23 }
  0x9d   :  { %v567_v18 = vld [vmem:[#allocation5 + $0xda0] sm:$0xff]  ;;  %3328 = vmatpush1.bf16.msra.mxu0 %v8770_v21  ;;  %3359 = vmatprep.mubr.bf16.mxu0 %v10003_v28 }
  0x9e   :  { %v8891_v25 = vcombine.high %v563_v17, %v567_v18  ;;  %v427_v26 = vld [vmem:[#allocation5 + $0x940] sm:$0xff]  ;;  %3329 = vmatprep.subr.bf16.mxu0 %v8763_v24  ;;  %v8890_v33 = vcombine.low %v563_v17, %v567_v18  ;;  %3400 = vmatprep.mubr.bf16.mxu1 %v10006_v31 }
  0x9f   :  { %v431_v27 = vld [vmem:[#allocation5 + $0x960] sm:$0xff] }
  0xa0   :  { %v555_v29 = vld [vmem:[#allocation5 + $0xd40] sm:$0xff]  ;;  %v8755_v34 = vcombine.high %v427_v26, %v431_v27  ;;  %3370 = vmatprep.subr.bf16.mxu1 %v8891_v25  ;;  %v8754_v40 = vcombine.low %v427_v26, %v431_v27 }
  0xa1   :  { %v559_v30 = vld [vmem:[#allocation5 + $0xd60] sm:$0xff]  ;;  %3330 = vmatpush1.bf16.msra.mxu0 %v8762_v32  ;;  %3371 = vmatpush1.bf16.msra.mxu1 %v8890_v33 }
  0xa2   :  { %v419_v35 = vld [vmem:[#allocation5 + $0x900] sm:$0xff]  ;;  %v8883_v38 = vcombine.high %v555_v29, %v559_v30  ;;  %3331 = vmatprep.subr.bf16.mxu0 %v8755_v34  ;;  %v8882_v41 = vcombine.low %v555_v29, %v559_v30 }
  0xa3   :  { %v423_v36 = vld [vmem:[#allocation5 + $0x920] sm:$0xff] }
  0xa4   :  { %v547_v37 = vld [vmem:[#allocation5 + $0xd00] sm:$0xff]  ;;  %v8747_v42 = vcombine.high %v419_v35, %v423_v36  ;;  %3372 = vmatprep.subr.bf16.mxu1 %v8883_v38  ;;  %v8746_v48 = vcombine.low %v419_v35, %v423_v36 }
  0xa5   :  { %v551_v39 = vld [vmem:[#allocation5 + $0xd20] sm:$0xff]  ;;  %3332 = vmatpush1.bf16.msra.mxu0 %v8754_v40  ;;  %3373 = vmatpush1.bf16.msra.mxu1 %v8882_v41 }
  0xa6   :  { %v411_v43 = vld [vmem:[#allocation5 + $0x8c0] sm:$0xff]  ;;  %v8875_v46 = vcombine.high %v547_v37, %v551_v39  ;;  %3333 = vmatprep.subr.bf16.mxu0 %v8747_v42  ;;  %v8874_v49 = vcombine.low %v547_v37, %v551_v39 }
  0xa7   :  { %v415_v44 = vld [vmem:[#allocation5 + $0x8e0] sm:$0xff] }
  0xa8   :  { %v539_v45 = vld [vmem:[#allocation5 + $0xcc0] sm:$0xff]  ;;  %v8739_v50 = vcombine.high %v411_v43, %v415_v44  ;;  %3374 = vmatprep.subr.bf16.mxu1 %v8875_v46  ;;  %v8738_v56 = vcombine.low %v411_v43, %v415_v44 }
  0xa9   :  { %v543_v47 = vld [vmem:[#allocation5 + $0xce0] sm:$0xff]  ;;  %3334 = vmatpush1.bf16.msra.mxu0 %v8746_v48  ;;  %3375 = vmatpush1.bf16.msra.mxu1 %v8874_v49 }
  0xaa   :  { %v403_v51 = vld [vmem:[#allocation5 + $0x880] sm:$0xff]  ;;  %v8867_v54 = vcombine.high %v539_v45, %v543_v47  ;;  %3335 = vmatprep.subr.bf16.mxu0 %v8739_v50  ;;  %v8866_v57 = vcombine.low %v539_v45, %v543_v47 }
  0xab   :  { %v407_v52 = vld [vmem:[#allocation5 + $0x8a0] sm:$0xff] }
  0xac   :  { %v531_v53 = vld [vmem:[#allocation5 + $0xc80] sm:$0xff]  ;;  %v8731_v60 = vcombine.high %v403_v51, %v407_v52  ;;  %3376 = vmatprep.subr.bf16.mxu1 %v8867_v54  ;;  %v8730_v2 = vcombine.low %v403_v51, %v407_v52 }
  0xad   :  { %v535_v55 = vld [vmem:[#allocation5 + $0xca0] sm:$0xff]  ;;  %3336 = vmatpush1.bf16.msra.mxu0 %v8738_v56  ;;  %3377 = vmatpush1.bf16.msra.mxu1 %v8866_v57 }
  0xae   :  { %v395_v61 = vld [vmem:[#allocation5 + $0x840] sm:$0xff]  ;;  %v8859_v0 = vcombine.high %v531_v53, %v535_v55  ;;  %3337 = vmatprep.subr.bf16.mxu0 %v8731_v60  ;;  %v8858_v3 = vcombine.low %v531_v53, %v535_v55 }
  0xaf   :  { %v399_v62 = vld [vmem:[#allocation5 + $0x860] sm:$0xff] }
  0xb0   :  { %v523_v63 = vld [vmem:[#allocation5 + $0xc40] sm:$0xff]  ;;  %v8723_v4 = vcombine.high %v395_v61, %v399_v62  ;;  %3378 = vmatprep.subr.bf16.mxu1 %v8859_v0  ;;  %v8722_v10 = vcombine.low %v395_v61, %v399_v62 }
  0xb1   :  { %v527_v1 = vld [vmem:[#allocation5 + $0xc60] sm:$0xff]  ;;  %3338 = vmatpush1.bf16.msra.mxu0 %v8730_v2  ;;  %3379 = vmatpush1.bf16.msra.mxu1 %v8858_v3 }
  0xb2   :  { %v387_v5 = vld [vmem:[#allocation5 + $0x800] sm:$0xff]  ;;  %v8851_v8 = vcombine.high %v523_v63, %v527_v1  ;;  %3339 = vmatprep.subr.bf16.mxu0 %v8723_v4  ;;  %v8850_v11 = vcombine.low %v523_v63, %v527_v1 }
  0xb3   :  { %v391_v6 = vld [vmem:[#allocation5 + $0x820] sm:$0xff] }
  0xb4   :  { %v515_v7 = vld [vmem:[#allocation5 + $0xc00] sm:$0xff]  ;;  %v8715_v12 = vcombine.high %v387_v5, %v391_v6  ;;  %3380 = vmatprep.subr.bf16.mxu1 %v8851_v8  ;;  %v8714_v19 = vcombine.low %v387_v5, %v391_v6 }
  0xb5   :  { %v519_v9 = vld [vmem:[#allocation5 + $0xc20] sm:$0xff]  ;;  %3340 = vmatpush1.bf16.msra.mxu0 %v8722_v10  ;;  %3381 = vmatpush1.bf16.msra.mxu1 %v8850_v11 }
  0xb6   :  { %v507_v13 = vld [vmem:[#allocation5 + $0xbc0] sm:$0xff]  ;;  %v8843_v17 = vcombine.high %v515_v7, %v519_v9  ;;  %3341 = vmatprep.subr.bf16.mxu0 %v8715_v12  ;;  %v8842_v21 = vcombine.low %v515_v7, %v519_v9 }
  0xb7   :  { %v511_v14 = vld [vmem:[#allocation5 + $0xbe0] sm:$0xff] }
  0xb8   :  { %v635_v15 = vld [vmem:[#allocation5 + $0xfc0] sm:$0xff]  ;;  %v8835_v22 = vcombine.high %v507_v13, %v511_v14  ;;  %3382 = vmatprep.subr.bf16.mxu1 %v8843_v17  ;;  %v8834_v29 = vcombine.low %v507_v13, %v511_v14 }
  0xb9   :  { %v639_v18 = vld [vmem:[#allocation5 + $0xfe0] sm:$0xff]  ;;  %3342 = vmatpush1.bf16.msra.mxu0 %v8714_v19  ;;  %3383 = vmatpush1.bf16.msra.mxu1 %v8842_v21  ;;  %v188_v21 = vld [vmem:[#allocation5 + $0x1c8] sm:$0xff] }
  0xba   :  { %v499_v23 = vld [vmem:[#allocation5 + $0xb80] sm:$0xff]  ;;  %v8963_v26 = vcombine.high %v635_v15, %v639_v18  ;;  %3343 = vmatprep.subr.bf16.mxu0 %v8835_v22  ;;  %v8962_v30 = vcombine.low %v635_v15, %v639_v18  ;;  %v192_v22 = vld [vmem:[#allocation5 + $0x1e8] sm:$0xff] }
  0xbb   :  { %v503_v24 = vld [vmem:[#allocation5 + $0xba0] sm:$0xff] }
  0xbc   :  { %v627_v25 = vld [vmem:[#allocation5 + $0xf80] sm:$0xff]  ;;  %v8827_v32 = vcombine.high %v499_v23, %v503_v24  ;;  %3384 = vmatprep.subr.bf16.mxu1 %v8963_v26  ;;  %v8826_v38 = vcombine.low %v499_v23, %v503_v24  ;;  %v316_v23 = vld [vmem:[#allocation5 + $0x5c8] sm:$0xff] }
  0xbd   :  { %v631_v27 = vld [vmem:[#allocation5 + $0xfa0] sm:$0xff]  ;;  %3344 = vmatpush2.bf16.msra.mxu0 %v8834_v29  ;;  %3385 = vmatpush2.bf16.msra.mxu1 %v8962_v30  ;;  %v320_v26 = vld [vmem:[#allocation5 + $0x5e8] sm:$0xff] }
  0xbe   :  { %v491_v33 = vld [vmem:[#allocation5 + $0xb40] sm:$0xff]  ;;  %v8955_v36 = vcombine.high %v627_v25, %v631_v27  ;;  %3345 = vmatprep.subr.bf16.mxu0 %v8827_v32  ;;  %v8954_v39 = vcombine.low %v627_v25, %v631_v27  ;;  %v121_v27 = vld [vmem:[#allocation2 + $0x30] sm:$0xff]  ;;  %v8517_v32 = vcombine.high %v188_v21, %v192_v22 }
  0xbf   :  { %v495_v34 = vld [vmem:[#allocation5 + $0xb60] sm:$0xff] }
  0xc0   :  { %v619_v35 = vld [vmem:[#allocation5 + $0xf40] sm:$0xff]  ;;  %v8819_v40 = vcombine.high %v491_v33, %v495_v34  ;;  %3386 = vmatprep.subr.bf16.mxu1 %v8955_v36  ;;  %v8818_v46 = vcombine.low %v491_v33, %v495_v34  ;;  %v180_v33 = vld [vmem:[#allocation5 + $0x188] sm:$0xff]  ;;  %v8645_v36 = vcombine.high %v316_v23, %v320_v26 }
  0xc1   :  { %v623_v37 = vld [vmem:[#allocation5 + $0xf60] sm:$0xff]  ;;  %3346 = vmatpush2.bf16.msra.mxu0 %v8826_v38  ;;  %3387 = vmatpush2.bf16.msra.mxu1 %v8954_v39  ;;  %v184_v34 = vld [vmem:[#allocation5 + $0x1a8] sm:$0xff]  ;;  %v10013_v39 = vpack.c.bf16 %v121_v27, %v121_v27 }
  0xc2   :  { %v483_v41 = vld [vmem:[#allocation5 + $0xb00] sm:$0xff]  ;;  %v8947_v44 = vcombine.high %v619_v35, %v623_v37  ;;  %3347 = vmatprep.subr.bf16.mxu0 %v8819_v40  ;;  %v8946_v47 = vcombine.low %v619_v35, %v623_v37  ;;  %v308_v35 = vld [vmem:[#allocation5 + $0x588] sm:$0xff]  ;;  %v8516_v40 = vcombine.low %v188_v21, %v192_v22 }
  0xc3   :  { %v487_v42 = vld [vmem:[#allocation5 + $0xb20] sm:$0xff]  ;;  %v312_v37 = vld [vmem:[#allocation5 + $0x5a8] sm:$0xff] }
  0xc4   :  { %v611_v43 = vld [vmem:[#allocation5 + $0xf00] sm:$0xff]  ;;  %v8811_v48 = vcombine.high %v483_v41, %v487_v42  ;;  %3388 = vmatprep.subr.bf16.mxu1 %v8947_v44  ;;  %v8810_v54 = vcombine.low %v483_v41, %v487_v42  ;;  %v8644_v41 = vcombine.low %v316_v23, %v320_v26  ;;  %v8509_v42 = vcombine.high %v180_v33, %v184_v34  ;;  %v260_v26 = vld [vmem:[#allocation5 + $0x408] sm:$0xff] }
  0xc5   :  { %v615_v45 = vld [vmem:[#allocation5 + $0xf20] sm:$0xff]  ;;  %3348 = vmatpush2.bf16.msra.mxu0 %v8818_v46  ;;  %3389 = vmatpush2.bf16.msra.mxu1 %v8946_v47  ;;  %v8637_v44 = vcombine.high %v308_v35, %v312_v37  ;;  %v300_v46 = vld [vmem:[#allocation5 + $0x548] sm:$0xff] }
  0xc6   :  { %v475_v49 = vld [vmem:[#allocation5 + $0xac0] sm:$0xff]  ;;  %v8939_v52 = vcombine.high %v611_v43, %v615_v45  ;;  %3349 = vmatprep.subr.bf16.mxu0 %v8811_v48  ;;  %v8938_v55 = vcombine.low %v611_v43, %v615_v45  ;;  %v172_v43 = vld [vmem:[#allocation5 + $0x148] sm:$0xff]  ;;  %v8508_v48 = vcombine.low %v180_v33, %v184_v34 }
  0xc7   :  { %v479_v50 = vld [vmem:[#allocation5 + $0xae0] sm:$0xff]  ;;  %v176_v45 = vld [vmem:[#allocation5 + $0x168] sm:$0xff] }
  0xc8   :  { %v603_v51 = vld [vmem:[#allocation5 + $0xec0] sm:$0xff]  ;;  %v8803_v56 = vcombine.high %v475_v49, %v479_v50  ;;  %3390 = vmatprep.subr.bf16.mxu1 %v8939_v52  ;;  %v8802_v0 = vcombine.low %v475_v49, %v479_v50  ;;  %v304_v47 = vld [vmem:[#allocation5 + $0x568] sm:$0xff]  ;;  %v8636_v49 = vcombine.low %v308_v35, %v312_v37  ;;  %v8501_v50 = vcombine.high %v172_v43, %v176_v45 }
  0xc9   :  { %v607_v53 = vld [vmem:[#allocation5 + $0xee0] sm:$0xff]  ;;  %3350 = vmatpush2.bf16.msra.mxu0 %v8810_v54  ;;  %3391 = vmatpush2.bf16.msra.mxu1 %v8938_v55  ;;  %v164_v52 = vld [vmem:[#allocation5 + $0x108] sm:$0xff] }
  0xca   :  { %v467_v57 = vld [vmem:[#allocation5 + $0xa80] sm:$0xff]  ;;  %v8931_v62 = vcombine.high %v603_v51, %v607_v53  ;;  %3351 = vmatprep.subr.bf16.mxu0 %v8803_v56  ;;  %v8930_v1 = vcombine.low %v603_v51, %v607_v53  ;;  %v8629_v51 = vcombine.high %v300_v46, %v304_v47  ;;  %v168_v53 = vld [vmem:[#allocation5 + $0x128] sm:$0xff]  ;;  %v8500_v56 = vcombine.low %v172_v43, %v176_v45 }
  0xcb   :  { %v471_v60 = vld [vmem:[#allocation5 + $0xaa0] sm:$0xff]  ;;  %v292_v54 = vld [vmem:[#allocation5 + $0x508] sm:$0xff] }
  0xcc   :  { %v595_v61 = vld [vmem:[#allocation5 + $0xe80] sm:$0xff]  ;;  %v8795_v2 = vcombine.high %v467_v57, %v471_v60  ;;  %3392 = vmatprep.subr.bf16.mxu1 %v8931_v62  ;;  %v8794_v8 = vcombine.low %v467_v57, %v471_v60  ;;  %v296_v55 = vld [vmem:[#allocation5 + $0x528] sm:$0xff]  ;;  %v8628_v57 = vcombine.low %v300_v46, %v304_v47  ;;  %v8493_v60 = vcombine.high %v164_v52, %v168_v53 }
  0xcd   :  { %v599_v63 = vld [vmem:[#allocation5 + $0xea0] sm:$0xff]  ;;  %3352 = vmatpush2.bf16.msra.mxu0 %v8802_v0  ;;  %3393 = vmatpush2.bf16.msra.mxu1 %v8930_v1  ;;  %v156_v62 = vld [vmem:[#allocation5 + $0xc8] sm:$0xff] }
  0xce   :  { %v459_v3 = vld [vmem:[#allocation5 + $0xa40] sm:$0xff]  ;;  %v8923_v6 = vcombine.high %v595_v61, %v599_v63  ;;  %3353 = vmatprep.subr.bf16.mxu0 %v8795_v2  ;;  %v8922_v9 = vcombine.low %v595_v61, %v599_v63  ;;  %v8621_v61 = vcombine.high %v292_v54, %v296_v55  ;;  %v160_v63 = vld [vmem:[#allocation5 + $0xe8] sm:$0xff]  ;;  %v8492_v2 = vcombine.low %v164_v52, %v168_v53 }
  0xcf   :  { %v463_v4 = vld [vmem:[#allocation5 + $0xa60] sm:$0xff]  ;;  %v284_v0 = vld [vmem:[#allocation5 + $0x4c8] sm:$0xff] }
  0xd0   :  { %v587_v5 = vld [vmem:[#allocation5 + $0xe40] sm:$0xff]  ;;  %v8787_v10 = vcombine.high %v459_v3, %v463_v4  ;;  %3394 = vmatprep.subr.bf16.mxu1 %v8923_v6  ;;  %v8786_v17 = vcombine.low %v459_v3, %v463_v4  ;;  %v288_v1 = vld [vmem:[#allocation5 + $0x4e8] sm:$0xff]  ;;  %v8620_v3 = vcombine.low %v292_v54, %v296_v55  ;;  %v8485_v4 = vcombine.high %v156_v62, %v160_v63 }
  0xd1   :  { %v591_v7 = vld [vmem:[#allocation5 + $0xe60] sm:$0xff]  ;;  %3354 = vmatpush2.bf16.msra.mxu0 %v8794_v8  ;;  %3395 = vmatpush2.bf16.msra.mxu1 %v8922_v9  ;;  %v148_v6 = vld [vmem:[#allocation5 + $0x88] sm:$0xff] }
  0xd2   :  { %v451_v11 = vld [vmem:[#allocation5 + $0xa00] sm:$0xff]  ;;  %v8915_v14 = vcombine.high %v587_v5, %v591_v7  ;;  %3355 = vmatprep.subr.bf16.mxu0 %v8787_v10  ;;  %v8914_v18 = vcombine.low %v587_v5, %v591_v7  ;;  %v8613_v5 = vcombine.high %v284_v0, %v288_v1  ;;  %v152_v7 = vld [vmem:[#allocation5 + $0xa8] sm:$0xff]  ;;  %v8484_v10 = vcombine.low %v156_v62, %v160_v63 }
  0xd3   :  { %v455_v12 = vld [vmem:[#allocation5 + $0xa20] sm:$0xff]  ;;  %v276_v8 = vld [vmem:[#allocation5 + $0x488] sm:$0xff] }
  0xd4   :  { %v579_v13 = vld [vmem:[#allocation5 + $0xe00] sm:$0xff]  ;;  %v8779_v19 = vcombine.high %v451_v11, %v455_v12  ;;  %3396 = vmatprep.subr.bf16.mxu1 %v8915_v14  ;;  %v8778_v29 = vcombine.low %v451_v11, %v455_v12  ;;  %v280_v9 = vld [vmem:[#allocation5 + $0x4a8] sm:$0xff]  ;;  %v8612_v11 = vcombine.low %v284_v0, %v288_v1  ;;  %v8477_v12 = vcombine.high %v148_v6, %v152_v7 }
  0xd5   :  { %v583_v15 = vld [vmem:[#allocation5 + $0xe20] sm:$0xff]  ;;  %3356 = vmatpush2.bf16.msra.mxu0 %v8786_v17  ;;  %3397 = vmatpush2.bf16.msra.mxu1 %v8914_v18  ;;  %v140_v14 = vld [vmem:[#allocation5 + $0x48] sm:$0xff]  ;;  %v8604_v21 = vcombine.low %v276_v8, %v280_v9 }
  0xd6   :  { %v8907_v24 = vcombine.high %v579_v13, %v583_v15  ;;  %v119_v25 = vld [vmem:[#allocation2 + $0x20] sm:$0xff]  ;;  %3357 = vmatprep.subr.bf16.mxu0 %v8779_v19  ;;  %v8906_v30 = vcombine.low %v579_v13, %v583_v15  ;;  %v8605_v13 = vcombine.high %v276_v8, %v280_v9  ;;  %v144_v15 = vld [vmem:[#allocation5 + $0x68] sm:$0xff]  ;;  %v8476_v19 = vcombine.low %v148_v6, %v152_v7 }
  0xd7   :  { %v10011_v38 = vpack.c.bf16 %v119_v25, %v119_v25  ;;  %v268_v17 = vld [vmem:[#allocation5 + $0x448] sm:$0xff]  ;;  %v8469_v22 = vcombine.high %v140_v14, %v144_v15 }
  0xd8   :  { %3398 = vmatprep.subr.bf16.mxu1 %v8907_v24  ;;  %v272_v18 = vld [vmem:[#allocation5 + $0x468] sm:$0xff] }
  0xd9   :  { %3358 = vmatpush2.bf16.msra.mxu0 %v8778_v29  ;;  %3399 = vmatpush2.bf16.msra.mxu1 %v8906_v30  ;;  %v8597_v23 = vcombine.high %v268_v17, %v272_v18  ;;  %v132_v24 = vld [vmem:[#allocation5 + $0x8] sm:$0xff]  ;;  %v8468_v29 = vcombine.low %v140_v14, %v144_v15  ;;  %v8596_v30 = vcombine.low %v268_v17, %v272_v18 }
  0xda   :  { %3409 = vmatprep.subr.bf16.mxu0 %v8517_v32  ;;  %3450 = vmatprep.subr.bf16.mxu1 %v8645_v36  ;;  %v136_v25 = vld [vmem:[#allocation5 + $0x28] sm:$0xff] }
  0xdb   :  { %v264_v27 = vld [vmem:[#allocation5 + $0x428] sm:$0xff]  ;;  %v8461_v32 = vcombine.high %v132_v24, %v136_v25 }
  0xdc   :  { %3360 = vmatmul.mubr.bf16.vlgmr.msra.gmra.mxu0 %v10011_v38  ;;  %3401 = vmatmul.mubr.bf16.vlgmr.msra.gmra.mxu1 %v10013_v39  ;;  %v8589_v33 = vcombine.high %v260_v26, %v264_v27  ;;  %v252_v34 = vld [vmem:[#allocation5 + $0x3c8] sm:$0xff] }
  0xdd   :  { %3410 = vmatpush1.bf16.msra.mxu0 %v8516_v40  ;;  %3451 = vmatpush1.bf16.msra.mxu1 %v8644_v41  ;;  %v256_v35 = vld [vmem:[#allocation5 + $0x3e8] sm:$0xff]  ;;  %v8460_v40 = vcombine.low %v132_v24, %v136_v25  ;;  %v8588_v41 = vcombine.low %v260_v26, %v264_v27 }
  0xde   :  { %3411 = vmatprep.subr.bf16.mxu0 %v8509_v42  ;;  %3452 = vmatprep.subr.bf16.mxu1 %v8637_v44  ;;  %v380_v36 = vld [vmem:[#allocation5 + $0x7c8] sm:$0xff]  ;;  %v8581_v42 = vcombine.high %v252_v34, %v256_v35 }
  0xdf   :  { %3441 = vmatprep.mubr.bf16.mxu0 %v9993_v58  ;;  %3482 = vmatprep.mubr.bf16.mxu1 %v9995_v59  ;;  %v384_v37 = vld [vmem:[#allocation5 + $0x7e8] sm:$0xff] }
  0xe0   :  { %v8709_v43 = vcombine.high %v380_v36, %v384_v37  ;;  %v244_v44 = vld [vmem:[#allocation5 + $0x388] sm:$0xff] }
  0xe1   :  { %3412 = vmatpush1.bf16.msra.mxu0 %v8508_v48  ;;  %3453 = vmatpush1.bf16.msra.mxu1 %v8636_v49  ;;  %v248_v45 = vld [vmem:[#allocation5 + $0x3a8] sm:$0xff]  ;;  %v8580_v48 = vcombine.low %v252_v34, %v256_v35  ;;  %v8708_v49 = vcombine.low %v380_v36, %v384_v37 }
  0xe2   :  { %3413 = vmatprep.subr.bf16.mxu0 %v8501_v50  ;;  %3454 = vmatprep.subr.bf16.mxu1 %v8629_v51  ;;  %v372_v46 = vld [vmem:[#allocation5 + $0x788] sm:$0xff]  ;;  %v8573_v50 = vcombine.high %v244_v44, %v248_v45 }
  0xe3   :  { %v376_v47 = vld [vmem:[#allocation5 + $0x7a8] sm:$0xff] }
  0xe4   :  { %v8701_v51 = vcombine.high %v372_v46, %v376_v47  ;;  %v236_v52 = vld [vmem:[#allocation5 + $0x348] sm:$0xff] }
  0xe5   :  { %3414 = vmatpush1.bf16.msra.mxu0 %v8500_v56  ;;  %3455 = vmatpush1.bf16.msra.mxu1 %v8628_v57  ;;  %v240_v53 = vld [vmem:[#allocation5 + $0x368] sm:$0xff]  ;;  %v8572_v56 = vcombine.low %v244_v44, %v248_v45  ;;  %v8700_v57 = vcombine.low %v372_v46, %v376_v47 }
  0xe6   :  { %3415 = vmatprep.subr.bf16.mxu0 %v8493_v60  ;;  %3456 = vmatprep.subr.bf16.mxu1 %v8621_v61  ;;  %v364_v54 = vld [vmem:[#allocation5 + $0x748] sm:$0xff]  ;;  %v8565_v60 = vcombine.high %v236_v52, %v240_v53 }
  0xe7   :  { %v368_v55 = vld [vmem:[#allocation5 + $0x768] sm:$0xff] }
  0xe8   :  { %v8693_v61 = vcombine.high %v364_v54, %v368_v55  ;;  %v228_v62 = vld [vmem:[#allocation5 + $0x308] sm:$0xff] }
  0xe9   :  { %3416 = vmatpush1.bf16.msra.mxu0 %v8492_v2  ;;  %3457 = vmatpush1.bf16.msra.mxu1 %v8620_v3  ;;  %v232_v63 = vld [vmem:[#allocation5 + $0x328] sm:$0xff]  ;;  %v8564_v2 = vcombine.low %v236_v52, %v240_v53  ;;  %v8692_v3 = vcombine.low %v364_v54, %v368_v55 }
  0xea   :  { %3417 = vmatprep.subr.bf16.mxu0 %v8485_v4  ;;  %3458 = vmatprep.subr.bf16.mxu1 %v8613_v5  ;;  %v356_v0 = vld [vmem:[#allocation5 + $0x708] sm:$0xff]  ;;  %v8557_v4 = vcombine.high %v228_v62, %v232_v63 }
  0xeb   :  { %v360_v1 = vld [vmem:[#allocation5 + $0x728] sm:$0xff] }
  0xec   :  { %v8685_v5 = vcombine.high %v356_v0, %v360_v1  ;;  %v220_v6 = vld [vmem:[#allocation5 + $0x2c8] sm:$0xff] }
  0xed   :  { %3418 = vmatpush1.bf16.msra.mxu0 %v8484_v10  ;;  %3459 = vmatpush1.bf16.msra.mxu1 %v8612_v11  ;;  %v224_v7 = vld [vmem:[#allocation5 + $0x2e8] sm:$0xff]  ;;  %v8556_v10 = vcombine.low %v228_v62, %v232_v63  ;;  %v8684_v11 = vcombine.low %v356_v0, %v360_v1 }
  0xee   :  { %3419 = vmatprep.subr.bf16.mxu0 %v8477_v12  ;;  %3460 = vmatprep.subr.bf16.mxu1 %v8605_v13  ;;  %v348_v8 = vld [vmem:[#allocation5 + $0x6c8] sm:$0xff]  ;;  %v8549_v12 = vcombine.high %v220_v6, %v224_v7 }
  0xef   :  { %v352_v9 = vld [vmem:[#allocation5 + $0x6e8] sm:$0xff] }
  0xf0   :  { %v8677_v13 = vcombine.high %v348_v8, %v352_v9  ;;  %v212_v14 = vld [vmem:[#allocation5 + $0x288] sm:$0xff] }
  0xf1   :  { %3420 = vmatpush1.bf16.msra.mxu0 %v8476_v19  ;;  %3461 = vmatpush1.bf16.msra.mxu1 %v8604_v21  ;;  %v216_v15 = vld [vmem:[#allocation5 + $0x2a8] sm:$0xff]  ;;  %v8548_v19 = vcombine.low %v220_v6, %v224_v7  ;;  %v8676_v21 = vcombine.low %v348_v8, %v352_v9 }
  0xf2   :  { %3421 = vmatprep.subr.bf16.mxu0 %v8469_v22  ;;  %3462 = vmatprep.subr.bf16.mxu1 %v8597_v23  ;;  %v340_v17 = vld [vmem:[#allocation5 + $0x688] sm:$0xff]  ;;  %v8541_v22 = vcombine.high %v212_v14, %v216_v15 }
  0xf3   :  { %v344_v18 = vld [vmem:[#allocation5 + $0x6a8] sm:$0xff] }
  0xf4   :  { %v8669_v23 = vcombine.high %v340_v17, %v344_v18  ;;  %v204_v24 = vld [vmem:[#allocation5 + $0x248] sm:$0xff] }
  0xf5   :  { %3422 = vmatpush1.bf16.msra.mxu0 %v8468_v29  ;;  %3463 = vmatpush1.bf16.msra.mxu1 %v8596_v30  ;;  %v208_v25 = vld [vmem:[#allocation5 + $0x268] sm:$0xff]  ;;  %v8540_v29 = vcombine.low %v212_v14, %v216_v15  ;;  %v8668_v30 = vcombine.low %v340_v17, %v344_v18 }
  0xf6   :  { %3423 = vmatprep.subr.bf16.mxu0 %v8461_v32  ;;  %3464 = vmatprep.subr.bf16.mxu1 %v8589_v33  ;;  %v332_v26 = vld [vmem:[#allocation5 + $0x648] sm:$0xff]  ;;  %v8533_v32 = vcombine.high %v204_v24, %v208_v25 }
  0xf7   :  { %v336_v27 = vld [vmem:[#allocation5 + $0x668] sm:$0xff] }
  0xf8   :  { %v8661_v33 = vcombine.high %v332_v26, %v336_v27  ;;  %v196_v34 = vld [vmem:[#allocation5 + $0x208] sm:$0xff] }
  0xf9   :  { %3424 = vmatpush1.bf16.msra.mxu0 %v8460_v40  ;;  %3465 = vmatpush1.bf16.msra.mxu1 %v8588_v41  ;;  %v200_v35 = vld [vmem:[#allocation5 + $0x228] sm:$0xff]  ;;  %v8532_v40 = vcombine.low %v204_v24, %v208_v25  ;;  %v8660_v41 = vcombine.low %v332_v26, %v336_v27 }
  0xfa   :  { %3425 = vmatprep.subr.bf16.mxu0 %v8581_v42  ;;  %3466 = vmatprep.subr.bf16.mxu1 %v8709_v43  ;;  %v324_v36 = vld [vmem:[#allocation5 + $0x608] sm:$0xff]  ;;  %v8525_v42 = vcombine.high %v196_v34, %v200_v35 }
  0xfb   :  { %v328_v37 = vld [vmem:[#allocation5 + $0x628] sm:$0xff] }
  0xfc   :  { %v8653_v43 = vcombine.high %v324_v36, %v328_v37  ;;  %v444_v44 = vld [vmem:[#allocation5 + $0x9c8] sm:$0xff] }
  0xfd   :  { %3426 = vmatpush2.bf16.msra.mxu0 %v8580_v48  ;;  %3467 = vmatpush2.bf16.msra.mxu1 %v8708_v49  ;;  %v448_v45 = vld [vmem:[#allocation5 + $0x9e8] sm:$0xff]  ;;  %v8524_v48 = vcombine.low %v196_v34, %v200_v35  ;;  %v8652_v49 = vcombine.low %v324_v36, %v328_v37 }
  0xfe   :  { %3427 = vmatprep.subr.bf16.mxu0 %v8573_v50  ;;  %3468 = vmatprep.subr.bf16.mxu1 %v8701_v51  ;;  %v572_v46 = vld [vmem:[#allocation5 + $0xdc8] sm:$0xff]  ;;  %v8773_v50 = vcombine.high %v444_v44, %v448_v45 }
  0xff   :  { %v576_v47 = vld [vmem:[#allocation5 + $0xde8] sm:$0xff] }
 0x100   :  { %v8901_v51 = vcombine.high %v572_v46, %v576_v47  ;;  %v436_v52 = vld [vmem:[#allocation5 + $0x988] sm:$0xff] }
 0x101   :  { %3428 = vmatpush2.bf16.msra.mxu0 %v8572_v56  ;;  %3469 = vmatpush2.bf16.msra.mxu1 %v8700_v57  ;;  %v440_v53 = vld [vmem:[#allocation5 + $0x9a8] sm:$0xff]  ;;  %v8772_v56 = vcombine.low %v444_v44, %v448_v45  ;;  %v8900_v57 = vcombine.low %v572_v46, %v576_v47 }
 0x102   :  { %3429 = vmatprep.subr.bf16.mxu0 %v8565_v60  ;;  %3470 = vmatprep.subr.bf16.mxu1 %v8693_v61  ;;  %v564_v54 = vld [vmem:[#allocation5 + $0xd88] sm:$0xff]  ;;  %v8765_v60 = vcombine.high %v436_v52, %v440_v53 }
 0x103   :  { %v568_v55 = vld [vmem:[#allocation5 + $0xda8] sm:$0xff] }
 0x104   :  { %v8893_v61 = vcombine.high %v564_v54, %v568_v55  ;;  %v428_v62 = vld [vmem:[#allocation5 + $0x948] sm:$0xff] }
 0x105   :  { %3430 = vmatpush2.bf16.msra.mxu0 %v8564_v2  ;;  %3471 = vmatpush2.bf16.msra.mxu1 %v8692_v3  ;;  %v432_v63 = vld [vmem:[#allocation5 + $0x968] sm:$0xff]  ;;  %v8764_v2 = vcombine.low %v436_v52, %v440_v53  ;;  %v8892_v3 = vcombine.low %v564_v54, %v568_v55 }
 0x106   :  { %3431 = vmatprep.subr.bf16.mxu0 %v8557_v4  ;;  %3472 = vmatprep.subr.bf16.mxu1 %v8685_v5  ;;  %v556_v0 = vld [vmem:[#allocation5 + $0xd48] sm:$0xff]  ;;  %v8757_v4 = vcombine.high %v428_v62, %v432_v63 }
 0x107   :  { %v560_v1 = vld [vmem:[#allocation5 + $0xd68] sm:$0xff] }
 0x108   :  { %v8885_v5 = vcombine.high %v556_v0, %v560_v1  ;;  %v420_v6 = vld [vmem:[#allocation5 + $0x908] sm:$0xff] }
 0x109   :  { %3432 = vmatpush2.bf16.msra.mxu0 %v8556_v10  ;;  %3473 = vmatpush2.bf16.msra.mxu1 %v8684_v11  ;;  %v424_v7 = vld [vmem:[#allocation5 + $0x928] sm:$0xff]  ;;  %v8756_v10 = vcombine.low %v428_v62, %v432_v63  ;;  %v8884_v11 = vcombine.low %v556_v0, %v560_v1 }
 0x10a   :  { %3433 = vmatprep.subr.bf16.mxu0 %v8549_v12  ;;  %3474 = vmatprep.subr.bf16.mxu1 %v8677_v13  ;;  %v548_v8 = vld [vmem:[#allocation5 + $0xd08] sm:$0xff]  ;;  %v8749_v12 = vcombine.high %v420_v6, %v424_v7 }
 0x10b   :  { %v552_v9 = vld [vmem:[#allocation5 + $0xd28] sm:$0xff] }
 0x10c   :  { %v8877_v13 = vcombine.high %v548_v8, %v552_v9  ;;  %v412_v14 = vld [vmem:[#allocation5 + $0x8c8] sm:$0xff] }
 0x10d   :  { %3434 = vmatpush2.bf16.msra.mxu0 %v8548_v19  ;;  %3475 = vmatpush2.bf16.msra.mxu1 %v8676_v21  ;;  %v416_v15 = vld [vmem:[#allocation5 + $0x8e8] sm:$0xff]  ;;  %v8748_v19 = vcombine.low %v420_v6, %v424_v7  ;;  %v8876_v21 = vcombine.low %v548_v8, %v552_v9 }
 0x10e   :  { %3435 = vmatprep.subr.bf16.mxu0 %v8541_v22  ;;  %3476 = vmatprep.subr.bf16.mxu1 %v8669_v23  ;;  %v540_v17 = vld [vmem:[#allocation5 + $0xcc8] sm:$0xff]  ;;  %v8741_v22 = vcombine.high %v412_v14, %v416_v15 }
 0x10f   :  { %v544_v18 = vld [vmem:[#allocation5 + $0xce8] sm:$0xff] }
 0x110   :  { %v8869_v23 = vcombine.high %v540_v17, %v544_v18  ;;  %v404_v24 = vld [vmem:[#allocation5 + $0x888] sm:$0xff] }
 0x111   :  { %3436 = vmatpush2.bf16.msra.mxu0 %v8540_v29  ;;  %3477 = vmatpush2.bf16.msra.mxu1 %v8668_v30  ;;  %v408_v25 = vld [vmem:[#allocation5 + $0x8a8] sm:$0xff]  ;;  %v8740_v29 = vcombine.low %v412_v14, %v416_v15  ;;  %v8868_v30 = vcombine.low %v540_v17, %v544_v18 }
 0x112   :  { %3437 = vmatprep.subr.bf16.mxu0 %v8533_v32  ;;  %3478 = vmatprep.subr.bf16.mxu1 %v8661_v33  ;;  %v532_v26 = vld [vmem:[#allocation5 + $0xc88] sm:$0xff]  ;;  %v8733_v32 = vcombine.high %v404_v24, %v408_v25 }
 0x113   :  { %v536_v27 = vld [vmem:[#allocation5 + $0xca8] sm:$0xff] }
 0x114   :  { %v8861_v33 = vcombine.high %v532_v26, %v536_v27  ;;  %v396_v34 = vld [vmem:[#allocation5 + $0x848] sm:$0xff] }
 0x115   :  { %3438 = vmatpush2.bf16.msra.mxu0 %v8532_v40  ;;  %3479 = vmatpush2.bf16.msra.mxu1 %v8660_v41  ;;  %v400_v35 = vld [vmem:[#allocation5 + $0x868] sm:$0xff]  ;;  %v8732_v40 = vcombine.low %v404_v24, %v408_v25  ;;  %v8860_v41 = vcombine.low %v532_v26, %v536_v27 }
 0x116   :  { %3439 = vmatprep.subr.bf16.mxu0 %v8525_v42  ;;  %3480 = vmatprep.subr.bf16.mxu1 %v8653_v43  ;;  %v524_v36 = vld [vmem:[#allocation5 + $0xc48] sm:$0xff]  ;;  %v8725_v42 = vcombine.high %v396_v34, %v400_v35 }
 0x117   :  { %v528_v37 = vld [vmem:[#allocation5 + $0xc68] sm:$0xff] }
 0x118   :  { %v8853_v43 = vcombine.high %v524_v36, %v528_v37  ;;  %v388_v44 = vld [vmem:[#allocation5 + $0x808] sm:$0xff] }
 0x119   :  { %3440 = vmatpush2.bf16.msra.mxu0 %v8524_v48  ;;  %3481 = vmatpush2.bf16.msra.mxu1 %v8652_v49  ;;  %v392_v45 = vld [vmem:[#allocation5 + $0x828] sm:$0xff]  ;;  %v8724_v48 = vcombine.low %v396_v34, %v400_v35  ;;  %v8852_v49 = vcombine.low %v524_v36, %v528_v37 }
 0x11a   :  { %3491 = vmatprep.subr.bf16.mxu0 %v8773_v50  ;;  %3532 = vmatprep.subr.bf16.mxu1 %v8901_v51  ;;  %v516_v46 = vld [vmem:[#allocation5 + $0xc08] sm:$0xff]  ;;  %v8717_v50 = vcombine.high %v388_v44, %v392_v45 }
 0x11b   :  { %v520_v47 = vld [vmem:[#allocation5 + $0xc28] sm:$0xff] }
 0x11c   :  { %3442 = vmatmul.mubr.bf16.vlgmr.msra.gmra.mxu0 %v9999_v16  ;;  %3483 = vmatmul.mubr.bf16.vlgmr.msra.gmra.mxu1 %v10001_v20  ;;  %v8845_v51 = vcombine.high %v516_v46, %v520_v47  ;;  %v508_v52 = vld [vmem:[#allocation5 + $0xbc8] sm:$0xff] }
 0x11d   :  { %3492 = vmatpush1.bf16.msra.mxu0 %v8772_v56  ;;  %3533 = vmatpush1.bf16.msra.mxu1 %v8900_v57  ;;  %v512_v53 = vld [vmem:[#allocation5 + $0xbe8] sm:$0xff]  ;;  %v8716_v56 = vcombine.low %v388_v44, %v392_v45  ;;  %v8844_v57 = vcombine.low %v516_v46, %v520_v47 }
 0x11e   :  { %3493 = vmatprep.subr.bf16.mxu0 %v8765_v60  ;;  %3534 = vmatprep.subr.bf16.mxu1 %v8893_v61  ;;  %v636_v54 = vld [vmem:[#allocation5 + $0xfc8] sm:$0xff]  ;;  %v8837_v60 = vcombine.high %v508_v52, %v512_v53 }
 0x11f   :  { %3523 = vmatprep.mubr.bf16.mxu0 %v10003_v28  ;;  %3564 = vmatprep.mubr.bf16.mxu1 %v10006_v31  ;;  %v640_v55 = vld [vmem:[#allocation5 + $0xfe8] sm:$0xff] }
 0x120   :  { %v8965_v61 = vcombine.high %v636_v54, %v640_v55  ;;  %v500_v62 = vld [vmem:[#allocation5 + $0xb88] sm:$0xff] }
 0x121   :  { %3494 = vmatpush1.bf16.msra.mxu0 %v8764_v2  ;;  %3535 = vmatpush1.bf16.msra.mxu1 %v8892_v3  ;;  %v504_v63 = vld [vmem:[#allocation5 + $0xba8] sm:$0xff]  ;;  %v8836_v2 = vcombine.low %v508_v52, %v512_v53  ;;  %v8964_v3 = vcombine.low %v636_v54, %v640_v55 }
 0x122   :  { %3495 = vmatprep.subr.bf16.mxu0 %v8757_v4  ;;  %3536 = vmatprep.subr.bf16.mxu1 %v8885_v5  ;;  %v628_v0 = vld [vmem:[#allocation5 + $0xf88] sm:$0xff]  ;;  %v8829_v4 = vcombine.high %v500_v62, %v504_v63 }
 0x123   :  { %v632_v1 = vld [vmem:[#allocation5 + $0xfa8] sm:$0xff] }
 0x124   :  { %v8957_v5 = vcombine.high %v628_v0, %v632_v1  ;;  %v492_v6 = vld [vmem:[#allocation5 + $0xb48] sm:$0xff] }
 0x125   :  { %3496 = vmatpush1.bf16.msra.mxu0 %v8756_v10  ;;  %3537 = vmatpush1.bf16.msra.mxu1 %v8884_v11  ;;  %v496_v7 = vld [vmem:[#allocation5 + $0xb68] sm:$0xff]  ;;  %v8828_v10 = vcombine.low %v500_v62, %v504_v63  ;;  %v8956_v11 = vcombine.low %v628_v0, %v632_v1  ;;  %v189_v0 = vld [vmem:[#allocation5 + $0x1d0] sm:$0xff] }
 0x126   :  { %3497 = vmatprep.subr.bf16.mxu0 %v8749_v12  ;;  %3538 = vmatprep.subr.bf16.mxu1 %v8877_v13  ;;  %v620_v8 = vld [vmem:[#allocation5 + $0xf48] sm:$0xff]  ;;  %v8821_v12 = vcombine.high %v492_v6, %v496_v7  ;;  %v193_v1 = vld [vmem:[#allocation5 + $0x1f0] sm:$0xff] }
 0x127   :  { %v624_v9 = vld [vmem:[#allocation5 + $0xf68] sm:$0xff] }
 0x128   :  { %v8949_v13 = vcombine.high %v620_v8, %v624_v9  ;;  %v484_v14 = vld [vmem:[#allocation5 + $0xb08] sm:$0xff] }
 0x129   :  { %3498 = vmatpush1.bf16.msra.mxu0 %v8748_v19  ;;  %3539 = vmatpush1.bf16.msra.mxu1 %v8876_v21  ;;  %v488_v15 = vld [vmem:[#allocation5 + $0xb28] sm:$0xff]  ;;  %v8820_v19 = vcombine.low %v492_v6, %v496_v7  ;;  %v8948_v21 = vcombine.low %v620_v8, %v624_v9  ;;  %v10026_v7 = vld [vmem:[#allocation7] sm:$0xff]  ;;  %v8519_v8 = vcombine.high %v189_v0, %v193_v1 }
 0x12a   :  { %3499 = vmatprep.subr.bf16.mxu0 %v8741_v22  ;;  %3540 = vmatprep.subr.bf16.mxu1 %v8869_v23  ;;  %v612_v17 = vld [vmem:[#allocation5 + $0xf08] sm:$0xff]  ;;  %v8813_v22 = vcombine.high %v484_v14, %v488_v15 }
 0x12b   :  { %v616_v18 = vld [vmem:[#allocation5 + $0xf28] sm:$0xff] }
 0x12c   :  { %v8941_v23 = vcombine.high %v612_v17, %v616_v18  ;;  %v476_v24 = vld [vmem:[#allocation5 + $0xac8] sm:$0xff] }
 0x12d   :  { %3500 = vmatpush1.bf16.msra.mxu0 %v8740_v29  ;;  %3541 = vmatpush1.bf16.msra.mxu1 %v8868_v30  ;;  %v480_v25 = vld [vmem:[#allocation5 + $0xae8] sm:$0xff]  ;;  %v8812_v29 = vcombine.low %v484_v14, %v488_v15  ;;  %v8940_v30 = vcombine.low %v612_v17, %v616_v18  ;;  %v313_v14 = vld [vmem:[#allocation5 + $0x5b0] sm:$0xff]  ;;  %v8518_v17 = vcombine.low %v189_v0, %v193_v1 }
 0x12e   :  { %3501 = vmatprep.subr.bf16.mxu0 %v8733_v32  ;;  %3542 = vmatprep.subr.bf16.mxu1 %v8861_v33  ;;  %v604_v26 = vld [vmem:[#allocation5 + $0xec8] sm:$0xff]  ;;  %v8805_v32 = vcombine.high %v476_v24, %v480_v25 }
 0x12f   :  { %v608_v27 = vld [vmem:[#allocation5 + $0xee8] sm:$0xff] }
 0x130   :  { %v8933_v33 = vcombine.high %v604_v26, %v608_v27  ;;  %v468_v34 = vld [vmem:[#allocation5 + $0xa88] sm:$0xff] }
 0x131   :  { %3502 = vmatpush1.bf16.msra.mxu0 %v8732_v40  ;;  %3543 = vmatpush1.bf16.msra.mxu1 %v8860_v41  ;;  %v472_v35 = vld [vmem:[#allocation5 + $0xaa8] sm:$0xff]  ;;  %v8804_v40 = vcombine.low %v476_v24, %v480_v25  ;;  %v8932_v41 = vcombine.low %v604_v26, %v608_v27  ;;  %v177_v24 = vld [vmem:[#allocation5 + $0x170] sm:$0xff] }
 0x132   :  { %3503 = vmatprep.subr.bf16.mxu0 %v8725_v42  ;;  %3544 = vmatprep.subr.bf16.mxu1 %v8853_v43  ;;  %v596_v36 = vld [vmem:[#allocation5 + $0xe88] sm:$0xff]  ;;  %v8797_v42 = vcombine.high %v468_v34, %v472_v35  ;;  %v301_v26 = vld [vmem:[#allocation5 + $0x550] sm:$0xff] }
 0x133   :  { %v600_v37 = vld [vmem:[#allocation5 + $0xea8] sm:$0xff]  ;;  %v305_v27 = vld [vmem:[#allocation5 + $0x570] sm:$0xff] }
 0x134   :  { %v8925_v43 = vcombine.high %v596_v36, %v600_v37  ;;  %v460_v44 = vld [vmem:[#allocation5 + $0xa48] sm:$0xff] }
 0x135   :  { %3504 = vmatpush1.bf16.msra.mxu0 %v8724_v48  ;;  %3545 = vmatpush1.bf16.msra.mxu1 %v8852_v49  ;;  %v464_v45 = vld [vmem:[#allocation5 + $0xa68] sm:$0xff]  ;;  %v8796_v48 = vcombine.low %v468_v34, %v472_v35  ;;  %v645_v49 = vlaneseq }
 0x136   :  { %3505 = vmatprep.subr.bf16.mxu0 %v8717_v50  ;;  %3546 = vmatprep.subr.bf16.mxu1 %v8845_v51  ;;  %v588_v46 = vld [vmem:[#allocation5 + $0xe48] sm:$0xff]  ;;  %v8924_v50 = vcombine.low %v596_v36, %v600_v37  ;;  %v8789_v51 = vcombine.high %v460_v44, %v464_v45 }
 0x137   :  { %v592_v47 = vld [vmem:[#allocation5 + $0xe68] sm:$0xff] }
 0x138   :  { %v8917_v52 = vcombine.high %v588_v46, %v592_v47  ;;  %v452_v53 = vld [vmem:[#allocation5 + $0xa08] sm:$0xff] }
 0x139   :  { %3506 = vmatpush1.bf16.msra.mxu0 %v8716_v56  ;;  %3547 = vmatpush1.bf16.msra.mxu1 %v8844_v57  ;;  %v456_v54 = vld [vmem:[#allocation5 + $0xa28] sm:$0xff]  ;;  %v8788_v57 = vcombine.low %v460_v44, %v464_v45  ;;  %v293_v45 = vld [vmem:[#allocation5 + $0x510] sm:$0xff] }
 0x13a   :  { %3507 = vmatprep.subr.bf16.mxu0 %v8837_v60  ;;  %3548 = vmatprep.subr.bf16.mxu1 %v8965_v61  ;;  %v580_v55 = vld [vmem:[#allocation5 + $0xe08] sm:$0xff]  ;;  %v10023_v60 = vshrl.u32 %v645_v49, 7  ;;  %v8916_v61 = vcombine.low %v588_v46, %v592_v47  ;;  %v8781_v62 = vcombine.high %v452_v53, %v456_v54  ;;  %v297_v46 = vld [vmem:[#allocation5 + $0x530] sm:$0xff] }
 0x13b   :  { %v584_v56 = vld [vmem:[#allocation5 + $0xe28] sm:$0xff] }
 0x13c   :  { %v8909_v63 = vcombine.high %v580_v55, %v584_v56  ;;  %v8908_v6 = vcombine.low %v580_v55, %v584_v56  ;;  %v157_v55 = vld [vmem:[#allocation5 + $0xd0] sm:$0xff] }
 0x13d   :  { %3508 = vmatpush2.bf16.msra.mxu0 %v8836_v2  ;;  %3549 = vmatpush2.bf16.msra.mxu1 %v8964_v3  ;;  %v317_v2 = vld [vmem:[#allocation5 + $0x5d0] sm:$0xff] }
 0x13e   :  { %3509 = vmatprep.subr.bf16.mxu0 %v8829_v4  ;;  %3550 = vmatprep.subr.bf16.mxu1 %v8957_v5  ;;  %v321_v3 = vld [vmem:[#allocation5 + $0x5f0] sm:$0xff]  ;;  %v8780_v4 = vcombine.low %v452_v53, %v456_v54  ;;  %v647_v5 = vsub.s32 0, %v10023_v60  ;;  %v8623_v54 = vcombine.high %v293_v45, %v297_v46 }
 0x13f   :  { %v8647_v9 = vcombine.high %v317_v2, %v321_v3  ;;  %v8646_v18 = vcombine.low %v317_v2, %v321_v3  ;;  %v161_v56 = vld [vmem:[#allocation5 + $0xf0] sm:$0xff] }
 0x140   :  { %v648_v15 = vrot.slane %v10026_v7, %v647_v5  ;;  %v8487_v0 = vcombine.high %v157_v55, %v161_v56  ;;  %v149_v2 = vld [vmem:[#allocation5 + $0x90] sm:$0xff] }
 0x141   :  { %3510 = vmatpush2.bf16.msra.mxu0 %v8828_v10  ;;  %3551 = vmatpush2.bf16.msra.mxu1 %v8956_v11  ;;  %v651_v10 = vsub.s32 1, %v10023_v60  ;;  %v181_v11 = vld [vmem:[#allocation5 + $0x190] sm:$0xff] }
 0x142   :  { %3511 = vmatprep.subr.bf16.mxu0 %v8821_v12  ;;  %3552 = vmatprep.subr.bf16.mxu1 %v8949_v13  ;;  %v185_v12 = vld [vmem:[#allocation5 + $0x1b0] sm:$0xff] }
 0x143   :  { %v309_v13 = vld [vmem:[#allocation5 + $0x590] sm:$0xff] }
 0x144   :  { %v8638_v34 = vcombine.low %v309_v13, %v313_v14  ;;  %v153_v3 = vld [vmem:[#allocation5 + $0xb0] sm:$0xff] }
 0x145   :  { %3512 = vmatpush2.bf16.msra.mxu0 %v8820_v19  ;;  %3553 = vmatpush2.bf16.msra.mxu1 %v8948_v21  ;;  %v8511_v19 = vcombine.high %v181_v11, %v185_v12  ;;  %v652_v21 = vrot.slane %v10026_v7, %v651_v10 }
 0x146   :  { %3513 = vmatprep.subr.bf16.mxu0 %v8813_v22  ;;  %3554 = vmatprep.subr.bf16.mxu1 %v8941_v23  ;;  %v8639_v22 = vcombine.high %v309_v13, %v313_v14  ;;  %v173_v23 = vld [vmem:[#allocation5 + $0x150] sm:$0xff] }
 0x147   :  { %v8503_v35 = vcombine.high %v173_v23, %v177_v24  ;;  %v8502_v49 = vcombine.low %v173_v23, %v177_v24  ;;  %v141_v13 = vld [vmem:[#allocation5 + $0x50] sm:$0xff] }
 0x148   :  { %v145_v14 = vld [vmem:[#allocation5 + $0x70] sm:$0xff] }
 0x149   :  { %3514 = vmatpush2.bf16.msra.mxu0 %v8812_v29  ;;  %3555 = vmatpush2.bf16.msra.mxu1 %v8940_v30  ;;  %v133_v23 = vld [vmem:[#allocation5 + $0x10] sm:$0xff] }
 0x14a   :  { %3515 = vmatprep.subr.bf16.mxu0 %v8805_v32  ;;  %3556 = vmatprep.subr.bf16.mxu1 %v8933_v33  ;;  %v8510_v32 = vcombine.low %v181_v11, %v185_v12  ;;  %v8479_v11 = vcombine.high %v149_v2, %v153_v3  ;;  %v137_v24 = vld [vmem:[#allocation5 + $0x30] sm:$0xff] }
 0x14d   :  { %3516 = vmatpush2.bf16.msra.mxu0 %v8804_v40  ;;  %3557 = vmatpush2.bf16.msra.mxu1 %v8932_v41  ;;  %v8631_v41 = vcombine.high %v301_v26, %v305_v27 }
 0x14e   :  { %3517 = vmatprep.subr.bf16.mxu0 %v8797_v42  ;;  %3558 = vmatprep.subr.bf16.mxu1 %v8925_v43  ;;  %v165_v42 = vld [vmem:[#allocation5 + $0x110] sm:$0xff] }
 0x14f   :  { %v169_v43 = vld [vmem:[#allocation5 + $0x130] sm:$0xff] }
 0x151   :  { %3518 = vmatpush2.bf16.msra.mxu0 %v8796_v48  ;;  %3559 = vmatpush2.bf16.msra.mxu1 %v8924_v50 }
 0x152   :  { %3519 = vmatprep.subr.bf16.mxu0 %v8789_v51  ;;  %3560 = vmatprep.subr.bf16.mxu1 %v8917_v52  ;;  %v8630_v51 = vcombine.low %v301_v26, %v305_v27  ;;  %v8495_v52 = vcombine.high %v165_v42, %v169_v43  ;;  %v265_v26 = vld [vmem:[#allocation5 + $0x430] sm:$0xff]  ;;  %v8470_v27 = vcombine.low %v141_v13, %v145_v14 }
 0x155   :  { %3520 = vmatpush2.bf16.msra.mxu0 %v8788_v57  ;;  %3561 = vmatpush2.bf16.msra.mxu1 %v8916_v61  ;;  %v285_v57 = vld [vmem:[#allocation5 + $0x4d0] sm:$0xff] }
 0x156   :  { %3521 = vmatprep.subr.bf16.mxu0 %v8781_v62  ;;  %3562 = vmatprep.subr.bf16.mxu1 %v8909_v63  ;;  %v289_v61 = vld [vmem:[#allocation5 + $0x4f0] sm:$0xff]  ;;  %v8494_v62 = vcombine.low %v165_v42, %v169_v43  ;;  %v8622_v63 = vcombine.low %v293_v45, %v297_v46 }
 0x157   :  { %v8615_v1 = vcombine.high %v285_v57, %v289_v61  ;;  %v249_v45 = vld [vmem:[#allocation5 + $0x3b0] sm:$0xff] }
 0x158   :  { %v373_v46 = vld [vmem:[#allocation5 + $0x790] sm:$0xff] }
 0x159   :  { %3522 = vmatpush2.bf16.msra.mxu0 %v8780_v4  ;;  %3563 = vmatpush2.bf16.msra.mxu1 %v8908_v6  ;;  %v277_v4 = vld [vmem:[#allocation5 + $0x490] sm:$0xff] }
 0x15a   :  { %3573 = vmatprep.subr.bf16.mxu0 %v8519_v8  ;;  %3614 = vmatprep.subr.bf16.mxu1 %v8647_v9  ;;  %v281_v6 = vld [vmem:[#allocation5 + $0x4b0] sm:$0xff]  ;;  %v8486_v8 = vcombine.low %v157_v55, %v161_v56  ;;  %v8614_v9 = vcombine.low %v285_v57, %v289_v61 }
 0x15b   :  { %v3320_v30 = vpop.f32.mrf.mxu1  ;;  %v8607_v12 = vcombine.high %v277_v4, %v281_v6  ;;  %v365_v55 = vld [vmem:[#allocation5 + $0x750] sm:$0xff] }
 0x15c   :  { %v3279_v25 = vpop.f32.mrf.mxu0  ;;  %3524 = vmatmul.mubr.bf16.vlgmr.msra.gmra.mxu0 %v10011_v38  ;;  %3565 = vmatmul.mubr.bf16.vlgmr.msra.gmra.mxu1 %v10013_v39  ;;  %v369_v56 = vld [vmem:[#allocation5 + $0x770] sm:$0xff] }
 0x15d   :  { %v3280_v29 = vadd.f32 %v3279_v25, %v648_v15  ;;  %3574 = vmatpush1.bf16.msra.mxu0 %v8518_v17  ;;  %3615 = vmatpush1.bf16.msra.mxu1 %v8646_v18  ;;  %v3322_v40 = vpop.f32.mrf.mxu1  ;;  %v269_v15 = vld [vmem:[#allocation5 + $0x450] sm:$0xff]  ;;  %v8478_v18 = vcombine.low %v149_v2, %v153_v3 }
 0x15e   :  { %v3281_v33 = vpop.f32.mrf.mxu0  ;;  %3575 = vmatprep.subr.bf16.mxu0 %v8511_v19  ;;  %3616 = vmatprep.subr.bf16.mxu1 %v8639_v22  ;;  %v273_v17 = vld [vmem:[#allocation5 + $0x470] sm:$0xff]  ;;  %v8606_v19 = vcombine.low %v277_v4, %v281_v6  ;;  %v8694_v6 = vcombine.low %v365_v55, %v369_v56 }
 0x15f   :  { %v10037_v36 = vadd.f32 %v3320_v30, %v3280_v29  ;;  %v3282_v37 = vadd.f32 %v3281_v33, %v652_v21  ;;  %3605 = vmatprep.mubr.bf16.mxu0 %v9993_v58  ;;  %3646 = vmatprep.mubr.bf16.mxu1 %v9995_v59  ;;  %v3324_v48 = vpop.f32.mrf.mxu1  ;;  %v8471_v21 = vcombine.high %v141_v13, %v145_v14  ;;  %v261_v25 = vld [vmem:[#allocation5 + $0x410] sm:$0xff] }
 0x160   :  { %v3283_v44 = vpop.f32.mrf.mxu0  ;;  %v8599_v22 = vcombine.high %v269_v15, %v273_v17  ;;  %v8598_v29 = vcombine.low %v269_v15, %v273_v17  ;;  %v8463_v30 = vcombine.high %v133_v23, %v137_v24  ;;  %v253_v33 = vld [vmem:[#allocation5 + $0x3d0] sm:$0xff] }
 0x161   :  { %v10041_v47 = vadd.f32 %v3322_v40, %v3282_v37  ;;  %3576 = vmatpush1.bf16.msra.mxu0 %v8510_v32  ;;  %3617 = vmatpush1.bf16.msra.mxu1 %v8638_v34  ;;  %v3325_v53 = vpop.f32.mrf.mxu1  ;;  %v8591_v32 = vcombine.high %v261_v25, %v265_v26  ;;  %v257_v34 = vld [vmem:[#allocation5 + $0x3f0] sm:$0xff]  ;;  %v8462_v40 = vcombine.low %v133_v23, %v137_v24 }
 0x162   :  { %v3284_v50 = vpop.f32.mrf.mxu0  ;;  %3577 = vmatprep.subr.bf16.mxu0 %v8503_v35  ;;  %3618 = vmatprep.subr.bf16.mxu1 %v8631_v41  ;;  %v381_v35 = vld [vmem:[#allocation5 + $0x7d0] sm:$0xff]  ;;  %v8590_v41 = vcombine.low %v261_v25, %v265_v26  ;;  %v8583_v42 = vcombine.high %v253_v33, %v257_v34 }
 0x163   :  { %v385_v37 = vld [vmem:[#allocation5 + $0x7f0] sm:$0xff] }
 0x164   :  { %v8711_v43 = vcombine.high %v381_v35, %v385_v37  ;;  %v245_v44 = vld [vmem:[#allocation5 + $0x390] sm:$0xff]  ;;  %v8710_v50 = vcombine.low %v381_v35, %v385_v37 }
 0x165   :  { %3578 = vmatpush1.bf16.msra.mxu0 %v8502_v49  ;;  %3619 = vmatpush1.bf16.msra.mxu1 %v8630_v51  ;;  %v377_v48 = vld [vmem:[#allocation5 + $0x7b0] sm:$0xff]  ;;  %v8582_v49 = vcombine.low %v253_v33, %v257_v34  ;;  %v8575_v51 = vcombine.high %v245_v44, %v249_v45  ;;  %v8574_v57 = vcombine.low %v245_v44, %v249_v45 }
 0x166   :  { %3579 = vmatprep.subr.bf16.mxu0 %v8495_v52  ;;  %3620 = vmatprep.subr.bf16.mxu1 %v8623_v54  ;;  %v8703_v52 = vcombine.high %v373_v46, %v377_v48  ;;  %v237_v53 = vld [vmem:[#allocation5 + $0x350] sm:$0xff]  ;;  %v8702_v61 = vcombine.low %v373_v46, %v377_v48 }
 0x167   :  { %v241_v54 = vld [vmem:[#allocation5 + $0x370] sm:$0xff] }
 0x168   :  { %v357_v2 = vld [vmem:[#allocation5 + $0x710] sm:$0xff]  ;;  %v8566_v4 = vcombine.low %v237_v53, %v241_v54 }
 0x169   :  { %3580 = vmatpush1.bf16.msra.mxu0 %v8494_v62  ;;  %3621 = vmatpush1.bf16.msra.mxu1 %v8622_v63  ;;  %v8567_v62 = vcombine.high %v237_v53, %v241_v54  ;;  %v8695_v63 = vcombine.high %v365_v55, %v369_v56  ;;  %v361_v3 = vld [vmem:[#allocation5 + $0x730] sm:$0xff] }
 0x16a   :  { %3581 = vmatprep.subr.bf16.mxu0 %v8487_v0  ;;  %3622 = vmatprep.subr.bf16.mxu1 %v8615_v1  ;;  %v229_v0 = vld [vmem:[#allocation5 + $0x310] sm:$0xff]  ;;  %v8686_v17 = vcombine.low %v357_v2, %v361_v3 }
 0x16b   :  { %v233_v1 = vld [vmem:[#allocation5 + $0x330] sm:$0xff] }
 0x16c   :  { %v349_v13 = vld [vmem:[#allocation5 + $0x6d0] sm:$0xff]  ;;  %v8558_v15 = vcombine.low %v229_v0, %v233_v1 }
 0x16d   :  { %3582 = vmatpush1.bf16.msra.mxu0 %v8486_v8  ;;  %3623 = vmatpush1.bf16.msra.mxu1 %v8614_v9  ;;  %v8559_v8 = vcombine.high %v229_v0, %v233_v1  ;;  %v8687_v9 = vcombine.high %v357_v2, %v361_v3  ;;  %v353_v14 = vld [vmem:[#allocation5 + $0x6f0] sm:$0xff] }
 0x16e   :  { %3583 = vmatprep.subr.bf16.mxu0 %v8479_v11  ;;  %3624 = vmatprep.subr.bf16.mxu1 %v8607_v12  ;;  %v221_v11 = vld [vmem:[#allocation5 + $0x2d0] sm:$0xff]  ;;  %v8678_v26 = vcombine.low %v349_v13, %v353_v14 }
 0x16f   :  { %v225_v12 = vld [vmem:[#allocation5 + $0x2f0] sm:$0xff] }
 0x170   :  { %v341_v23 = vld [vmem:[#allocation5 + $0x690] sm:$0xff]  ;;  %v8550_v25 = vcombine.low %v221_v11, %v225_v12 }
 0x171   :  { %3584 = vmatpush1.bf16.msra.mxu0 %v8478_v18  ;;  %3625 = vmatpush1.bf16.msra.mxu1 %v8606_v19  ;;  %v8551_v18 = vcombine.high %v221_v11, %v225_v12  ;;  %v8679_v19 = vcombine.high %v349_v13, %v353_v14  ;;  %v345_v24 = vld [vmem:[#allocation5 + $0x6b0] sm:$0xff] }
 0x172   :  { %3585 = vmatprep.subr.bf16.mxu0 %v8471_v21  ;;  %3626 = vmatprep.subr.bf16.mxu1 %v8599_v22  ;;  %v213_v21 = vld [vmem:[#allocation5 + $0x290] sm:$0xff]  ;;  %v8670_v37 = vcombine.low %v341_v23, %v345_v24 }
 0x173   :  { %v217_v22 = vld [vmem:[#allocation5 + $0x2b0] sm:$0xff] }
 0x174   :  { %v333_v33 = vld [vmem:[#allocation5 + $0x650] sm:$0xff]  ;;  %v8542_v35 = vcombine.low %v213_v21, %v217_v22 }
 0x175   :  { %3586 = vmatpush1.bf16.msra.mxu0 %v8470_v27  ;;  %3627 = vmatpush1.bf16.msra.mxu1 %v8598_v29  ;;  %v8543_v27 = vcombine.high %v213_v21, %v217_v22  ;;  %v8671_v29 = vcombine.high %v341_v23, %v345_v24  ;;  %v337_v34 = vld [vmem:[#allocation5 + $0x670] sm:$0xff] }
 0x176   :  { %3587 = vmatprep.subr.bf16.mxu0 %v8463_v30  ;;  %3628 = vmatprep.subr.bf16.mxu1 %v8591_v32  ;;  %v205_v30 = vld [vmem:[#allocation5 + $0x250] sm:$0xff]  ;;  %v8662_v48 = vcombine.low %v333_v33, %v337_v34 }
 0x177   :  { %v209_v32 = vld [vmem:[#allocation5 + $0x270] sm:$0xff] }
 0x178   :  { %v325_v44 = vld [vmem:[#allocation5 + $0x610] sm:$0xff]  ;;  %v8534_v46 = vcombine.low %v205_v30, %v209_v32 }
 0x179   :  { %3588 = vmatpush1.bf16.msra.mxu0 %v8462_v40  ;;  %3629 = vmatpush1.bf16.msra.mxu1 %v8590_v41  ;;  %v8535_v40 = vcombine.high %v205_v30, %v209_v32  ;;  %v8663_v41 = vcombine.high %v333_v33, %v337_v34  ;;  %v329_v45 = vld [vmem:[#allocation5 + $0x630] sm:$0xff] }
 0x17a   :  { %3589 = vmatprep.subr.bf16.mxu0 %v8583_v42  ;;  %3630 = vmatprep.subr.bf16.mxu1 %v8711_v43  ;;  %v197_v42 = vld [vmem:[#allocation5 + $0x210] sm:$0xff]  ;;  %v8654_v56 = vcombine.low %v325_v44, %v329_v45 }
 0x17b   :  { %v201_v43 = vld [vmem:[#allocation5 + $0x230] sm:$0xff] }
 0x17c   :  { %v573_v53 = vld [vmem:[#allocation5 + $0xdd0] sm:$0xff]  ;;  %v8526_v55 = vcombine.low %v197_v42, %v201_v43 }
 0x17d   :  { %3590 = vmatpush2.bf16.msra.mxu0 %v8582_v49  ;;  %3631 = vmatpush2.bf16.msra.mxu1 %v8710_v50  ;;  %v8527_v49 = vcombine.high %v197_v42, %v201_v43  ;;  %v8655_v50 = vcombine.high %v325_v44, %v329_v45  ;;  %v577_v54 = vld [vmem:[#allocation5 + $0xdf0] sm:$0xff] }
 0x17e   :  { %3591 = vmatprep.subr.bf16.mxu0 %v8575_v51  ;;  %3632 = vmatprep.subr.bf16.mxu1 %v8703_v52  ;;  %v445_v51 = vld [vmem:[#allocation5 + $0x9d0] sm:$0xff]  ;;  %v8902_v3 = vcombine.low %v573_v53, %v577_v54 }
 0x17f   :  { %v449_v52 = vld [vmem:[#allocation5 + $0x9f0] sm:$0xff] }
 0x180   :  { %v565_v0 = vld [vmem:[#allocation5 + $0xd90] sm:$0xff]  ;;  %v8774_v2 = vcombine.low %v445_v51, %v449_v52 }
 0x181   :  { %3592 = vmatpush2.bf16.msra.mxu0 %v8574_v57  ;;  %3633 = vmatpush2.bf16.msra.mxu1 %v8702_v61  ;;  %v8775_v57 = vcombine.high %v445_v51, %v449_v52  ;;  %v8903_v61 = vcombine.high %v573_v53, %v577_v54  ;;  %v569_v1 = vld [vmem:[#allocation5 + $0xdb0] sm:$0xff] }
 0x182   :  { %3593 = vmatprep.subr.bf16.mxu0 %v8567_v62  ;;  %3634 = vmatprep.subr.bf16.mxu1 %v8695_v63  ;;  %v437_v62 = vld [vmem:[#allocation5 + $0x990] sm:$0xff] }
 0x183   :  { %v441_v63 = vld [vmem:[#allocation5 + $0x9b0] sm:$0xff] }
 0x184   :  { %v557_v12 = vld [vmem:[#allocation5 + $0xd50] sm:$0xff] }
 0x185   :  { %3594 = vmatpush2.bf16.msra.mxu0 %v8566_v4  ;;  %3635 = vmatpush2.bf16.msra.mxu1 %v8694_v6  ;;  %v8767_v4 = vcombine.high %v437_v62, %v441_v63  ;;  %v8895_v6 = vcombine.high %v565_v0, %v569_v1  ;;  %v561_v13 = vld [vmem:[#allocation5 + $0xd70] sm:$0xff] }
 0x186   :  { %3595 = vmatprep.subr.bf16.mxu0 %v8559_v8  ;;  %3636 = vmatprep.subr.bf16.mxu1 %v8687_v9  ;;  %v429_v8 = vld [vmem:[#allocation5 + $0x950] sm:$0xff] }
 0x187   :  { %v433_v9 = vld [vmem:[#allocation5 + $0x970] sm:$0xff] }
 0x188   :  { %v8759_v21 = vcombine.high %v429_v8, %v433_v9  ;;  %v553_v30 = vld [vmem:[#allocation5 + $0xd30] sm:$0xff]  ;;  %v8758_v34 = vcombine.low %v429_v8, %v433_v9 }
 0x189   :  { %3596 = vmatpush2.bf16.msra.mxu0 %v8558_v15  ;;  %3637 = vmatpush2.bf16.msra.mxu1 %v8686_v17  ;;  %v8766_v17 = vcombine.low %v437_v62, %v441_v63  ;;  %v413_v42 = vld [vmem:[#allocation5 + $0x8d0] sm:$0xff] }
 0x18a   :  { %3597 = vmatprep.subr.bf16.mxu0 %v8551_v18  ;;  %3638 = vmatprep.subr.bf16.mxu1 %v8679_v19  ;;  %v8894_v19 = vcombine.low %v565_v0, %v569_v1  ;;  %v417_v43 = vld [vmem:[#allocation5 + $0x8f0] sm:$0xff] }
 0x18b   :  { %v541_v44 = vld [vmem:[#allocation5 + $0xcd0] sm:$0xff] }
 0x18c   :  { %v545_v45 = vld [vmem:[#allocation5 + $0xcf0] sm:$0xff] }
 0x18d   :  { %3598 = vmatpush2.bf16.msra.mxu0 %v8550_v25  ;;  %3639 = vmatpush2.bf16.msra.mxu1 %v8678_v26  ;;  %v8887_v25 = vcombine.high %v557_v12, %v561_v13  ;;  %v421_v26 = vld [vmem:[#allocation5 + $0x910] sm:$0xff] }
 0x18e   :  { %3599 = vmatprep.subr.bf16.mxu0 %v8543_v27  ;;  %3640 = vmatprep.subr.bf16.mxu1 %v8671_v29  ;;  %v425_v27 = vld [vmem:[#allocation5 + $0x930] sm:$0xff] }
 0x18f   :  { %v549_v29 = vld [vmem:[#allocation5 + $0xd10] sm:$0xff] }
 0x190   :  { %v405_v51 = vld [vmem:[#allocation5 + $0x890] sm:$0xff] }
 0x191   :  { %3600 = vmatpush2.bf16.msra.mxu0 %v8542_v35  ;;  %3641 = vmatpush2.bf16.msra.mxu1 %v8670_v37  ;;  %v8751_v37 = vcombine.high %v421_v26, %v425_v27  ;;  %v409_v52 = vld [vmem:[#allocation5 + $0x8b0] sm:$0xff] }
 0x192   :  { %3601 = vmatprep.subr.bf16.mxu0 %v8535_v40  ;;  %3642 = vmatprep.subr.bf16.mxu1 %v8663_v41  ;;  %v8879_v41 = vcombine.high %v549_v29, %v553_v30  ;;  %v533_v53 = vld [vmem:[#allocation5 + $0xc90] sm:$0xff] }
 0x193   :  { %v537_v54 = vld [vmem:[#allocation5 + $0xcb0] sm:$0xff] }
 0x194   :  { %v397_v62 = vld [vmem:[#allocation5 + $0x850] sm:$0xff] }
 0x195   :  { %3602 = vmatpush2.bf16.msra.mxu0 %v8534_v46  ;;  %3643 = vmatpush2.bf16.msra.mxu1 %v8662_v48  ;;  %v8750_v46 = vcombine.low %v421_v26, %v425_v27  ;;  %v8878_v48 = vcombine.low %v549_v29, %v553_v30  ;;  %v401_v63 = vld [vmem:[#allocation5 + $0x870] sm:$0xff] }
 0x196   :  { %3603 = vmatprep.subr.bf16.mxu0 %v8527_v49  ;;  %3644 = vmatprep.subr.bf16.mxu1 %v8655_v50  ;;  %v8743_v49 = vcombine.high %v413_v42, %v417_v43  ;;  %v8871_v50 = vcombine.high %v541_v44, %v545_v45  ;;  %v525_v0 = vld [vmem:[#allocation5 + $0xc50] sm:$0xff] }
 0x197   :  { %v529_v1 = vld [vmem:[#allocation5 + $0xc70] sm:$0xff] }
 0x198   :  { %v389_v8 = vld [vmem:[#allocation5 + $0x810] sm:$0xff] }
 0x199   :  { %3604 = vmatpush2.bf16.msra.mxu0 %v8526_v55  ;;  %3645 = vmatpush2.bf16.msra.mxu1 %v8654_v56  ;;  %v8742_v55 = vcombine.low %v413_v42, %v417_v43  ;;  %v8870_v56 = vcombine.low %v541_v44, %v545_v45  ;;  %v393_v9 = vld [vmem:[#allocation5 + $0x830] sm:$0xff] }
 0x19a   :  { %3655 = vmatprep.subr.bf16.mxu0 %v8775_v57  ;;  %3696 = vmatprep.subr.bf16.mxu1 %v8903_v61  ;;  %v8735_v57 = vcombine.high %v405_v51, %v409_v52  ;;  %v8863_v61 = vcombine.high %v533_v53, %v537_v54  ;;  %v505_v29 = vld [vmem:[#allocation5 + $0xbb0] sm:$0xff] }
 0x19b   :  { %v629_v30 = vld [vmem:[#allocation5 + $0xf90] sm:$0xff] }
 0x19c   :  { %v3361_v11 = vpop.f32.mrf.mxu0  ;;  %3606 = vmatmul.mubr.bf16.vlgmr.msra.gmra.mxu0 %v9999_v16  ;;  %v3402_v15 = vpop.f32.mrf.mxu1  ;;  %3647 = vmatmul.mubr.bf16.vlgmr.msra.gmra.mxu1 %v10001_v20  ;;  %v621_v42 = vld [vmem:[#allocation5 + $0xf50] sm:$0xff] }
 0x19d   :  { %v3362_v14 = vadd.f32 %v3361_v11, %v10037_v36  ;;  %3656 = vmatpush1.bf16.msra.mxu0 %v8774_v2  ;;  %3697 = vmatpush1.bf16.msra.mxu1 %v8902_v3  ;;  %v8734_v2 = vcombine.low %v405_v51, %v409_v52  ;;  %v8862_v3 = vcombine.low %v533_v53, %v537_v54  ;;  %v517_v11 = vld [vmem:[#allocation5 + $0xc10] sm:$0xff] }
 0x19e   :  { %v3363_v18 = vpop.f32.mrf.mxu0  ;;  %3657 = vmatprep.subr.bf16.mxu0 %v8767_v4  ;;  %v3404_v24 = vpop.f32.mrf.mxu1  ;;  %3698 = vmatprep.subr.bf16.mxu1 %v8895_v6  ;;  %v8727_v4 = vcombine.high %v397_v62, %v401_v63  ;;  %v8855_v6 = vcombine.high %v525_v0, %v529_v1  ;;  %v625_v43 = vld [vmem:[#allocation5 + $0xf70] sm:$0xff] }
 0x19f   :  { %v10046_v22 = vadd.f32 %v3402_v15, %v3362_v14  ;;  %v3364_v23 = vadd.f32 %v3363_v18, %v10041_v47  ;;  %3687 = vmatprep.mubr.bf16.mxu0 %v10003_v28  ;;  %3728 = vmatprep.mubr.bf16.mxu1 %v10006_v31  ;;  %v8886_v47 = vcombine.low %v557_v12, %v561_v13  ;;  %v521_v12 = vld [vmem:[#allocation5 + $0xc30] sm:$0xff] }
 0x1a0   :  { %v3365_v36 = vpop.f32.mrf.mxu0  ;;  %v3406_v33 = vpop.f32.mrf.mxu1  ;;  %v8726_v13 = vcombine.low %v397_v62, %v401_v63  ;;  %v8854_v14 = vcombine.low %v525_v0, %v529_v1  ;;  %v8719_v15 = vcombine.high %v389_v8, %v393_v9  ;;  %v509_v18 = vld [vmem:[#allocation5 + $0xbd0] sm:$0xff]  ;;  %v8950_v54 = vcombine.low %v621_v42, %v625_v43 }
 0x1a1   :  { %v10051_v32 = vadd.f32 %v3404_v24, %v3364_v23  ;;  %3658 = vmatpush1.bf16.msra.mxu0 %v8766_v17  ;;  %3699 = vmatpush1.bf16.msra.mxu1 %v8894_v19  ;;  %v8847_v17 = vcombine.high %v517_v11, %v521_v12  ;;  %v513_v19 = vld [vmem:[#allocation5 + $0xbf0] sm:$0xff]  ;;  %v8718_v24 = vcombine.low %v389_v8, %v393_v9 }
 0x1a2   :  { %v3366_v35 = vpop.f32.mrf.mxu0  ;;  %3659 = vmatprep.subr.bf16.mxu0 %v8759_v21  ;;  %v3407_v40 = vpop.f32.mrf.mxu1  ;;  %3700 = vmatprep.subr.bf16.mxu1 %v8887_v25  ;;  %v637_v21 = vld [vmem:[#allocation5 + $0xfd0] sm:$0xff]  ;;  %v8846_v25 = vcombine.low %v517_v11, %v521_v12  ;;  %v8839_v26 = vcombine.high %v509_v18, %v513_v19 }
 0x1a3   :  { %v641_v23 = vld [vmem:[#allocation5 + $0xff0] sm:$0xff] }
 0x1a4   :  { %v8967_v27 = vcombine.high %v637_v21, %v641_v23  ;;  %v501_v36 = vld [vmem:[#allocation5 + $0xb90] sm:$0xff]  ;;  %v8966_v35 = vcombine.low %v637_v21, %v641_v23 }
 0x1a5   :  { %3660 = vmatpush1.bf16.msra.mxu0 %v8758_v34  ;;  %3701 = vmatpush1.bf16.msra.mxu1 %v8886_v47  ;;  %v633_v33 = vld [vmem:[#allocation5 + $0xfb0] sm:$0xff]  ;;  %v8838_v34 = vcombine.low %v509_v18, %v513_v19  ;;  %v8831_v47 = vcombine.high %v501_v36, %v505_v29  ;;  %v8830_v44 = vcombine.low %v501_v36, %v505_v29 }
 0x1a6   :  { %3661 = vmatprep.subr.bf16.mxu0 %v8751_v37  ;;  %3702 = vmatprep.subr.bf16.mxu1 %v8879_v41  ;;  %v8959_v37 = vcombine.high %v629_v30, %v633_v33  ;;  %v493_v40 = vld [vmem:[#allocation5 + $0xb50] sm:$0xff]  ;;  %v8958_v45 = vcombine.low %v629_v30, %v633_v33 }
 0x1a7   :  { %v497_v41 = vld [vmem:[#allocation5 + $0xb70] sm:$0xff] }
 0x1a8   :  { %v613_v51 = vld [vmem:[#allocation5 + $0xf10] sm:$0xff]  ;;  %v8822_v53 = vcombine.low %v493_v40, %v497_v41 }
 0x1a9   :  { %3662 = vmatpush1.bf16.msra.mxu0 %v8750_v46  ;;  %3703 = vmatpush1.bf16.msra.mxu1 %v8878_v48  ;;  %v8823_v46 = vcombine.high %v493_v40, %v497_v41  ;;  %v8951_v48 = vcombine.high %v621_v42, %v625_v43  ;;  %v617_v52 = vld [vmem:[#allocation5 + $0xf30] sm:$0xff]  ;;  %v318_v40 = vld [vmem:[#allocation5 + $0x5d8] sm:$0xff]  ;;  %v655_v43 = vsub.s32 2, %v10023_v60 }
 0x1aa   :  { %3663 = vmatprep.subr.bf16.mxu0 %v8743_v49  ;;  %3704 = vmatprep.subr.bf16.mxu1 %v8871_v50  ;;  %v485_v49 = vld [vmem:[#allocation5 + $0xb10] sm:$0xff]  ;;  %v8942_v1 = vcombine.low %v613_v51, %v617_v52  ;;  %v322_v41 = vld [vmem:[#allocation5 + $0x5f8] sm:$0xff] }
 0x1ab   :  { %v489_v50 = vld [vmem:[#allocation5 + $0xb30] sm:$0xff] }
 0x1ac   :  { %v605_v62 = vld [vmem:[#allocation5 + $0xed0] sm:$0xff]  ;;  %v8814_v0 = vcombine.low %v485_v49, %v489_v50 }
 0x1ad   :  { %3664 = vmatpush1.bf16.msra.mxu0 %v8742_v55  ;;  %3705 = vmatpush1.bf16.msra.mxu1 %v8870_v56  ;;  %v8815_v55 = vcombine.high %v485_v49, %v489_v50  ;;  %v8943_v56 = vcombine.high %v613_v51, %v617_v52  ;;  %v609_v63 = vld [vmem:[#allocation5 + $0xef0] sm:$0xff]  ;;  %v182_v49 = vld [vmem:[#allocation5 + $0x198] sm:$0xff] }
 0x1ae   :  { %3665 = vmatprep.subr.bf16.mxu0 %v8735_v57  ;;  %3706 = vmatprep.subr.bf16.mxu1 %v8863_v61  ;;  %v477_v57 = vld [vmem:[#allocation5 + $0xad0] sm:$0xff]  ;;  %v8934_v12 = vcombine.low %v605_v62, %v609_v63  ;;  %v186_v50 = vld [vmem:[#allocation5 + $0x1b8] sm:$0xff] }
 0x1af   :  { %v481_v61 = vld [vmem:[#allocation5 + $0xaf0] sm:$0xff]  ;;  %v310_v51 = vld [vmem:[#allocation5 + $0x598] sm:$0xff] }
 0x1b0   :  { %v597_v8 = vld [vmem:[#allocation5 + $0xe90] sm:$0xff]  ;;  %v8806_v11 = vcombine.low %v477_v57, %v481_v61  ;;  %v314_v52 = vld [vmem:[#allocation5 + $0x5b8] sm:$0xff] }
 0x1b1   :  { %3666 = vmatpush1.bf16.msra.mxu0 %v8734_v2  ;;  %3707 = vmatpush1.bf16.msra.mxu1 %v8862_v3  ;;  %v8807_v2 = vcombine.high %v477_v57, %v481_v61  ;;  %v8935_v3 = vcombine.high %v605_v62, %v609_v63  ;;  %v601_v9 = vld [vmem:[#allocation5 + $0xeb0] sm:$0xff]  ;;  %v8641_v61 = vcombine.high %v310_v51, %v314_v52  ;;  %v174_v62 = vld [vmem:[#allocation5 + $0x158] sm:$0xff] }
 0x1b2   :  { %3667 = vmatprep.subr.bf16.mxu0 %v8727_v4  ;;  %3708 = vmatprep.subr.bf16.mxu1 %v8855_v6  ;;  %v469_v4 = vld [vmem:[#allocation5 + $0xa90] sm:$0xff]  ;;  %v8926_v23 = vcombine.low %v597_v8, %v601_v9  ;;  %v178_v63 = vld [vmem:[#allocation5 + $0x178] sm:$0xff] }
 0x1b3   :  { %v473_v6 = vld [vmem:[#allocation5 + $0xab0] sm:$0xff] }
 0x1b4   :  { %v589_v18 = vld [vmem:[#allocation5 + $0xe50] sm:$0xff]  ;;  %v8798_v21 = vcombine.low %v469_v4, %v473_v6 }
 0x1b5   :  { %3668 = vmatpush1.bf16.msra.mxu0 %v8726_v13  ;;  %3709 = vmatpush1.bf16.msra.mxu1 %v8854_v14  ;;  %v8799_v13 = vcombine.high %v469_v4, %v473_v6  ;;  %v8927_v14 = vcombine.high %v597_v8, %v601_v9  ;;  %v593_v19 = vld [vmem:[#allocation5 + $0xe70] sm:$0xff]  ;;  %v8512_v6 = vcombine.low %v182_v49, %v186_v50 }
 0x1b6   :  { %3669 = vmatprep.subr.bf16.mxu0 %v8719_v15  ;;  %3710 = vmatprep.subr.bf16.mxu1 %v8847_v17  ;;  %v461_v15 = vld [vmem:[#allocation5 + $0xa50] sm:$0xff]  ;;  %v8918_v33 = vcombine.low %v589_v18, %v593_v19  ;;  %v8640_v9 = vcombine.low %v310_v51, %v314_v52  ;;  %v142_v52 = vld [vmem:[#allocation5 + $0x58] sm:$0xff] }
 0x1b7   :  { %v465_v17 = vld [vmem:[#allocation5 + $0xa70] sm:$0xff] }
 0x1b8   :  { %v581_v36 = vld [vmem:[#allocation5 + $0xe10] sm:$0xff]  ;;  %v8790_v30 = vcombine.low %v461_v15, %v465_v17 }
 0x1b9   :  { %3670 = vmatpush1.bf16.msra.mxu0 %v8718_v24  ;;  %3711 = vmatpush1.bf16.msra.mxu1 %v8846_v25  ;;  %v8791_v24 = vcombine.high %v461_v15, %v465_v17  ;;  %v8919_v25 = vcombine.high %v589_v18, %v593_v19  ;;  %v585_v29 = vld [vmem:[#allocation5 + $0xe30] sm:$0xff]  ;;  %v166_v15 = vld [vmem:[#allocation5 + $0x118] sm:$0xff] }
 0x1ba   :  { %3671 = vmatprep.subr.bf16.mxu0 %v8839_v26  ;;  %3712 = vmatprep.subr.bf16.mxu1 %v8967_v27  ;;  %v453_v26 = vld [vmem:[#allocation5 + $0xa10] sm:$0xff]  ;;  %v170_v17 = vld [vmem:[#allocation5 + $0x138] sm:$0xff] }
 0x1bb   :  { %v457_v27 = vld [vmem:[#allocation5 + $0xa30] sm:$0xff]  ;;  %v294_v19 = vld [vmem:[#allocation5 + $0x518] sm:$0xff] }
 0x1bc   :  { %v8782_v42 = vcombine.low %v453_v26, %v457_v27 }
 0x1bd   :  { %3672 = vmatpush2.bf16.msra.mxu0 %v8838_v34  ;;  %3713 = vmatpush2.bf16.msra.mxu1 %v8966_v35  ;;  %v8783_v34 = vcombine.high %v453_v26, %v457_v27  ;;  %v8911_v35 = vcombine.high %v581_v36, %v585_v29 }
 0x1be   :  { %3673 = vmatprep.subr.bf16.mxu0 %v8831_v47  ;;  %3714 = vmatprep.subr.bf16.mxu1 %v8959_v37  ;;  %v190_v47 = vld [vmem:[#allocation5 + $0x1d8] sm:$0xff] }
 0x1bf   :  { %v194_v37 = vld [vmem:[#allocation5 + $0x1f8] sm:$0xff] }
 0x1c1   :  { %3674 = vmatpush2.bf16.msra.mxu0 %v8830_v44  ;;  %3715 = vmatpush2.bf16.msra.mxu1 %v8958_v45  ;;  %v8910_v44 = vcombine.low %v581_v36, %v585_v29  ;;  %v8521_v45 = vcombine.high %v190_v47, %v194_v37  ;;  %v8497_v36 = vcombine.high %v166_v15, %v170_v17 }
 0x1c2   :  { %3675 = vmatprep.subr.bf16.mxu0 %v8823_v46  ;;  %3716 = vmatprep.subr.bf16.mxu1 %v8951_v48  ;;  %v8649_v46 = vcombine.high %v318_v40, %v322_v41  ;;  %v659_v48 = vsub.s32 3, %v10023_v60 }
 0x1c4   :  { %v660_v57 = vrot.slane %v10026_v7, %v659_v48 }
 0x1c5   :  { %3676 = vmatpush2.bf16.msra.mxu0 %v8822_v53  ;;  %3717 = vmatpush2.bf16.msra.mxu1 %v8950_v54  ;;  %v656_v53 = vrot.slane %v10026_v7, %v655_v43  ;;  %v8520_v54 = vcombine.low %v190_v47, %v194_v37  ;;  %v8496_v47 = vcombine.low %v166_v15, %v170_v17 }
 0x1c6   :  { %3677 = vmatprep.subr.bf16.mxu0 %v8815_v55  ;;  %3718 = vmatprep.subr.bf16.mxu1 %v8943_v56  ;;  %v8648_v55 = vcombine.low %v318_v40, %v322_v41  ;;  %v8513_v56 = vcombine.high %v182_v49, %v186_v50  ;;  %v150_v41 = vld [vmem:[#allocation5 + $0x98] sm:$0xff] }
 0x1c9   :  { %3678 = vmatpush2.bf16.msra.mxu0 %v8814_v0  ;;  %3719 = vmatpush2.bf16.msra.mxu1 %v8942_v1  ;;  %v302_v1 = vld [vmem:[#allocation5 + $0x558] sm:$0xff] }
 0x1ca   :  { %3679 = vmatprep.subr.bf16.mxu0 %v8807_v2  ;;  %3720 = vmatprep.subr.bf16.mxu1 %v8935_v3  ;;  %v306_v2 = vld [vmem:[#allocation5 + $0x578] sm:$0xff] }
 0x1cb   :  { %v8632_v27 = vcombine.low %v302_v1, %v306_v2 }
 0x1cd   :  { %3680 = vmatpush2.bf16.msra.mxu0 %v8806_v11  ;;  %3721 = vmatpush2.bf16.msra.mxu1 %v8934_v12  ;;  %v8505_v11 = vcombine.high %v174_v62, %v178_v63 }
 0x1ce   :  { %3681 = vmatprep.subr.bf16.mxu0 %v8799_v13  ;;  %3722 = vmatprep.subr.bf16.mxu1 %v8927_v14  ;;  %v8633_v14 = vcombine.high %v302_v1, %v306_v2  ;;  %v262_v1 = vld [vmem:[#allocation5 + $0x418] sm:$0xff] }
 0x1cf   :  { %v266_v2 = vld [vmem:[#allocation5 + $0x438] sm:$0xff] }
 0x1d0   :  { %v8592_v15 = vcombine.low %v262_v1, %v266_v2 }
 0x1d1   :  { %3682 = vmatpush2.bf16.msra.mxu0 %v8798_v21  ;;  %3723 = vmatpush2.bf16.msra.mxu1 %v8926_v23  ;;  %v298_v21 = vld [vmem:[#allocation5 + $0x538] sm:$0xff] }
 0x1d2   :  { %3683 = vmatprep.subr.bf16.mxu0 %v8791_v24  ;;  %3724 = vmatprep.subr.bf16.mxu1 %v8919_v25  ;;  %v8504_v25 = vcombine.low %v174_v62, %v178_v63  ;;  %v134_v63 = vld [vmem:[#allocation5 + $0x18] sm:$0xff] }
 0x1d5   :  { %3684 = vmatpush2.bf16.msra.mxu0 %v8790_v30  ;;  %3725 = vmatpush2.bf16.msra.mxu1 %v8918_v33  ;;  %v8625_v30 = vcombine.high %v294_v19, %v298_v21  ;;  %v158_v33 = vld [vmem:[#allocation5 + $0xd8] sm:$0xff] }
 0x1d6   :  { %3685 = vmatprep.subr.bf16.mxu0 %v8783_v34  ;;  %3726 = vmatprep.subr.bf16.mxu1 %v8911_v35  ;;  %v286_v34 = vld [vmem:[#allocation5 + $0x4d8] sm:$0xff] }
 0x1d7   :  { %v290_v35 = vld [vmem:[#allocation5 + $0x4f8] sm:$0xff] }
 0x1d8   :  { %v8617_v40 = vcombine.high %v286_v34, %v290_v35  ;;  %v8616_v49 = vcombine.low %v286_v34, %v290_v35  ;;  %v370_v34 = vld [vmem:[#allocation5 + $0x778] sm:$0xff] }
 0x1d9   :  { %3686 = vmatpush2.bf16.msra.mxu0 %v8782_v42  ;;  %3727 = vmatpush2.bf16.msra.mxu1 %v8910_v44  ;;  %v154_v42 = vld [vmem:[#allocation5 + $0xb8] sm:$0xff] }
 0x1da   :  { %3737 = vmatprep.subr.bf16.mxu0 %v8521_v45  ;;  %3778 = vmatprep.subr.bf16.mxu1 %v8649_v46  ;;  %v278_v44 = vld [vmem:[#allocation5 + $0x498] sm:$0xff]  ;;  %v8481_v50 = vcombine.high %v150_v41, %v154_v42 }
 0x1db   :  { %v282_v45 = vld [vmem:[#allocation5 + $0x4b8] sm:$0xff] }
 0x1dc   :  { %v3443_v0 = vpop.f32.mrf.mxu0  ;;  %3688 = vmatmul.mubr.bf16.vlgmr.msra.gmra.mxu0 %v10011_v38  ;;  %v3484_v4 = vpop.f32.mrf.mxu1  ;;  %3729 = vmatmul.mubr.bf16.vlgmr.msra.gmra.mxu1 %v10013_v39  ;;  %v8609_v51 = vcombine.high %v278_v44, %v282_v45 }
 0x1dd   :  { %v3444_v3 = vadd.f32 %v3443_v0, %v656_v53  ;;  %3738 = vmatpush1.bf16.msra.mxu0 %v8520_v54  ;;  %3779 = vmatpush1.bf16.msra.mxu1 %v8648_v55  ;;  %v146_v53 = vld [vmem:[#allocation5 + $0x78] sm:$0xff] }
 0x1de   :  { %v3445_v8 = vpop.f32.mrf.mxu0  ;;  %3739 = vmatprep.subr.bf16.mxu0 %v8513_v56  ;;  %v3486_v13 = vpop.f32.mrf.mxu1  ;;  %3780 = vmatprep.subr.bf16.mxu1 %v8641_v61  ;;  %v270_v54 = vld [vmem:[#allocation5 + $0x458] sm:$0xff]  ;;  %v8480_v56 = vcombine.low %v150_v41, %v154_v42  ;;  %v8473_v61 = vcombine.high %v142_v52, %v146_v53 }
 0x1df   :  { %v10063_v7 = vadd.f32 %v3484_v4, %v3444_v3  ;;  %v3446_v12 = vadd.f32 %v3445_v8, %v660_v57  ;;  %3769 = vmatprep.mubr.bf16.mxu0 %v9993_v58  ;;  %3810 = vmatprep.mubr.bf16.mxu1 %v9995_v59  ;;  %v162_v58 = vld [vmem:[#allocation5 + $0xf8] sm:$0xff]  ;;  %v8624_v59 = vcombine.low %v294_v19, %v298_v21 }
 0x1e0   :  { %v3447_v18 = vpop.f32.mrf.mxu0  ;;  %v3488_v24 = vpop.f32.mrf.mxu1  ;;  %v8489_v37 = vcombine.high %v158_v33, %v162_v58  ;;  %v8488_v46 = vcombine.low %v158_v33, %v162_v58  ;;  %v274_v55 = vld [vmem:[#allocation5 + $0x478] sm:$0xff]  ;;  %v8608_v57 = vcombine.low %v278_v44, %v282_v45  ;;  %v8472_v3 = vcombine.low %v142_v52, %v146_v53 }
 0x1e1   :  { %v10067_v23 = vadd.f32 %v3486_v13, %v3446_v12  ;;  %3740 = vmatpush1.bf16.msra.mxu0 %v8512_v6  ;;  %3781 = vmatpush1.bf16.msra.mxu1 %v8640_v9  ;;  %v8601_v62 = vcombine.high %v270_v54, %v274_v55  ;;  %v138_v0 = vld [vmem:[#allocation5 + $0x38] sm:$0xff]  ;;  %v8600_v4 = vcombine.low %v270_v54, %v274_v55 }
 0x1e2   :  { %v3448_v26 = vpop.f32.mrf.mxu0  ;;  %3741 = vmatprep.subr.bf16.mxu0 %v8505_v11  ;;  %v3489_v29 = vpop.f32.mrf.mxu1  ;;  %3782 = vmatprep.subr.bf16.mxu1 %v8633_v14  ;;  %v8465_v6 = vcombine.high %v134_v63, %v138_v0  ;;  %v8593_v8 = vcombine.high %v262_v1, %v266_v2  ;;  %v254_v9 = vld [vmem:[#allocation5 + $0x3d8] sm:$0xff]  ;;  %v8464_v14 = vcombine.low %v134_v63, %v138_v0 }
 0x1e3   :  { %v258_v11 = vld [vmem:[#allocation5 + $0x3f8] sm:$0xff] }
 0x1e4   :  { %v382_v12 = vld [vmem:[#allocation5 + $0x7d8] sm:$0xff]  ;;  %v8585_v17 = vcombine.high %v254_v9, %v258_v11  ;;  %v8584_v26 = vcombine.low %v254_v9, %v258_v11 }
 0x1e5   :  { %3742 = vmatpush1.bf16.msra.mxu0 %v8504_v25  ;;  %3783 = vmatpush1.bf16.msra.mxu1 %v8632_v27  ;;  %v386_v13 = vld [vmem:[#allocation5 + $0x7f8] sm:$0xff] }
 0x1e6   :  { %3743 = vmatprep.subr.bf16.mxu0 %v8497_v36  ;;  %3784 = vmatprep.subr.bf16.mxu1 %v8625_v30  ;;  %v8713_v18 = vcombine.high %v382_v12, %v386_v13  ;;  %v246_v19 = vld [vmem:[#allocation5 + $0x398] sm:$0xff]  ;;  %v8712_v27 = vcombine.low %v382_v12, %v386_v13 }
 0x1e7   :  { %v250_v21 = vld [vmem:[#allocation5 + $0x3b8] sm:$0xff] }
 0x1e8   :  { %v374_v24 = vld [vmem:[#allocation5 + $0x798] sm:$0xff]  ;;  %v8577_v36 = vcombine.high %v246_v19, %v250_v21  ;;  %v8576_v35 = vcombine.low %v246_v19, %v250_v21 }
 0x1e9   :  { %3744 = vmatpush1.bf16.msra.mxu0 %v8496_v47  ;;  %3785 = vmatpush1.bf16.msra.mxu1 %v8624_v59  ;;  %v378_v25 = vld [vmem:[#allocation5 + $0x7b8] sm:$0xff] }
 0x1ea   :  { %3745 = vmatprep.subr.bf16.mxu0 %v8489_v37  ;;  %3786 = vmatprep.subr.bf16.mxu1 %v8617_v40  ;;  %v8705_v29 = vcombine.high %v374_v24, %v378_v25  ;;  %v238_v30 = vld [vmem:[#allocation5 + $0x358] sm:$0xff]  ;;  %v8704_v47 = vcombine.low %v374_v24, %v378_v25 }
 0x1eb   :  { %v242_v33 = vld [vmem:[#allocation5 + $0x378] sm:$0xff] }
 0x1ec   :  { %v366_v58 = vld [vmem:[#allocation5 + $0x758] sm:$0xff]  ;;  %v8569_v59 = vcombine.high %v238_v30, %v242_v33  ;;  %v8568_v45 = vcombine.low %v238_v30, %v242_v33 }
 0x1ed   :  { %3746 = vmatpush1.bf16.msra.mxu0 %v8488_v46  ;;  %3787 = vmatpush1.bf16.msra.mxu1 %v8616_v49  ;;  %v8697_v37 = vcombine.high %v366_v58, %v370_v34  ;;  %v230_v40 = vld [vmem:[#allocation5 + $0x318] sm:$0xff]  ;;  %v8696_v46 = vcombine.low %v366_v58, %v370_v34 }
 0x1ee   :  { %3747 = vmatprep.subr.bf16.mxu0 %v8481_v50  ;;  %3788 = vmatprep.subr.bf16.mxu1 %v8609_v51  ;;  %v234_v41 = vld [vmem:[#allocation5 + $0x338] sm:$0xff] }
 0x1ef   :  { %v358_v42 = vld [vmem:[#allocation5 + $0x718] sm:$0xff]  ;;  %v8561_v49 = vcombine.high %v230_v40, %v234_v41  ;;  %v8560_v55 = vcombine.low %v230_v40, %v234_v41 }
 0x1f0   :  { %v362_v44 = vld [vmem:[#allocation5 + $0x738] sm:$0xff] }
 0x1f1   :  { %3748 = vmatpush1.bf16.msra.mxu0 %v8480_v56  ;;  %3789 = vmatpush1.bf16.msra.mxu1 %v8608_v57  ;;  %v8689_v50 = vcombine.high %v358_v42, %v362_v44  ;;  %v222_v51 = vld [vmem:[#allocation5 + $0x2d8] sm:$0xff]  ;;  %v8688_v56 = vcombine.low %v358_v42, %v362_v44 }
 0x1f2   :  { %3749 = vmatprep.subr.bf16.mxu0 %v8473_v61  ;;  %3790 = vmatprep.subr.bf16.mxu1 %v8601_v62  ;;  %v226_v52 = vld [vmem:[#allocation5 + $0x2f8] sm:$0xff] }
 0x1f3   :  { %v350_v53 = vld [vmem:[#allocation5 + $0x6d8] sm:$0xff]  ;;  %v8553_v57 = vcombine.high %v222_v51, %v226_v52  ;;  %v8552_v2 = vcombine.low %v222_v51, %v226_v52 }
 0x1f4   :  { %v354_v54 = vld [vmem:[#allocation5 + $0x6f8] sm:$0xff] }
 0x1f5   :  { %3750 = vmatpush1.bf16.msra.mxu0 %v8472_v3  ;;  %3791 = vmatpush1.bf16.msra.mxu1 %v8600_v4  ;;  %v8681_v61 = vcombine.high %v350_v53, %v354_v54  ;;  %v214_v62 = vld [vmem:[#allocation5 + $0x298] sm:$0xff]  ;;  %v8680_v3 = vcombine.low %v350_v53, %v354_v54 }
 0x1f6   :  { %3751 = vmatprep.subr.bf16.mxu0 %v8465_v6  ;;  %3792 = vmatprep.subr.bf16.mxu1 %v8593_v8  ;;  %v218_v63 = vld [vmem:[#allocation5 + $0x2b8] sm:$0xff] }
 0x1f7   :  { %v342_v0 = vld [vmem:[#allocation5 + $0x698] sm:$0xff]  ;;  %v8545_v4 = vcombine.high %v214_v62, %v218_v63  ;;  %v8544_v13 = vcombine.low %v214_v62, %v218_v63 }
 0x1f8   :  { %v346_v1 = vld [vmem:[#allocation5 + $0x6b8] sm:$0xff] }
 0x1f9   :  { %3752 = vmatpush1.bf16.msra.mxu0 %v8464_v14  ;;  %3793 = vmatpush1.bf16.msra.mxu1 %v8592_v15  ;;  %v8673_v6 = vcombine.high %v342_v0, %v346_v1  ;;  %v206_v8 = vld [vmem:[#allocation5 + $0x258] sm:$0xff]  ;;  %v8672_v14 = vcombine.low %v342_v0, %v346_v1 }
 0x1fa   :  { %3753 = vmatprep.subr.bf16.mxu0 %v8585_v17  ;;  %3794 = vmatprep.subr.bf16.mxu1 %v8713_v18  ;;  %v210_v9 = vld [vmem:[#allocation5 + $0x278] sm:$0xff] }
 0x1fb   :  { %v334_v11 = vld [vmem:[#allocation5 + $0x658] sm:$0xff]  ;;  %v8537_v15 = vcombine.high %v206_v8, %v210_v9  ;;  %v8536_v25 = vcombine.low %v206_v8, %v210_v9 }
 0x1fc   :  { %v338_v12 = vld [vmem:[#allocation5 + $0x678] sm:$0xff] }
 0x1fd   :  { %3754 = vmatpush2.bf16.msra.mxu0 %v8584_v26  ;;  %3795 = vmatpush2.bf16.msra.mxu1 %v8712_v27  ;;  %v8665_v17 = vcombine.high %v334_v11, %v338_v12  ;;  %v198_v18 = vld [vmem:[#allocation5 + $0x218] sm:$0xff]  ;;  %v8664_v26 = vcombine.low %v334_v11, %v338_v12 }
 0x1fe   :  { %3755 = vmatprep.subr.bf16.mxu0 %v8577_v36  ;;  %3796 = vmatprep.subr.bf16.mxu1 %v8705_v29  ;;  %v202_v19 = vld [vmem:[#allocation5 + $0x238] sm:$0xff] }
 0x1ff   :  { %v326_v21 = vld [vmem:[#allocation5 + $0x618] sm:$0xff]  ;;  %v8529_v27 = vcombine.high %v198_v18, %v202_v19  ;;  %v8528_v34 = vcombine.low %v198_v18, %v202_v19 }
 0x200   :  { %v330_v24 = vld [vmem:[#allocation5 + $0x638] sm:$0xff] }
 0x201   :  { %3756 = vmatpush2.bf16.msra.mxu0 %v8576_v35  ;;  %3797 = vmatpush2.bf16.msra.mxu1 %v8704_v47  ;;  %v8657_v36 = vcombine.high %v326_v21, %v330_v24  ;;  %v446_v29 = vld [vmem:[#allocation5 + $0x9d8] sm:$0xff]  ;;  %v8656_v35 = vcombine.low %v326_v21, %v330_v24 }
 0x202   :  { %3757 = vmatprep.subr.bf16.mxu0 %v8569_v59  ;;  %3798 = vmatprep.subr.bf16.mxu1 %v8697_v37  ;;  %v450_v30 = vld [vmem:[#allocation5 + $0x9f8] sm:$0xff] }
 0x203   :  { %v574_v33 = vld [vmem:[#allocation5 + $0xdd8] sm:$0xff]  ;;  %v8777_v47 = vcombine.high %v446_v29, %v450_v30  ;;  %v8776_v44 = vcombine.low %v446_v29, %v450_v30 }
 0x204   :  { %v578_v58 = vld [vmem:[#allocation5 + $0xdf8] sm:$0xff] }
 0x205   :  { %3758 = vmatpush2.bf16.msra.mxu0 %v8568_v45  ;;  %3799 = vmatpush2.bf16.msra.mxu1 %v8696_v46  ;;  %v8905_v59 = vcombine.high %v574_v33, %v578_v58  ;;  %v438_v37 = vld [vmem:[#allocation5 + $0x998] sm:$0xff]  ;;  %v8904_v45 = vcombine.low %v574_v33, %v578_v58 }
 0x206   :  { %3759 = vmatprep.subr.bf16.mxu0 %v8561_v49  ;;  %3800 = vmatprep.subr.bf16.mxu1 %v8689_v50  ;;  %v442_v40 = vld [vmem:[#allocation5 + $0x9b8] sm:$0xff] }
 0x207   :  { %v566_v41 = vld [vmem:[#allocation5 + $0xd98] sm:$0xff]  ;;  %v8769_v46 = vcombine.high %v438_v37, %v442_v40 }
 0x208   :  { %v570_v42 = vld [vmem:[#allocation5 + $0xdb8] sm:$0xff] }
 0x209   :  { %3760 = vmatpush2.bf16.msra.mxu0 %v8560_v55  ;;  %3801 = vmatpush2.bf16.msra.mxu1 %v8688_v56  ;;  %v8897_v49 = vcombine.high %v566_v41, %v570_v42  ;;  %v430_v50 = vld [vmem:[#allocation5 + $0x958] sm:$0xff]  ;;  %v8896_v62 = vcombine.low %v566_v41, %v570_v42 }
 0x20a   :  { %3761 = vmatprep.subr.bf16.mxu0 %v8553_v57  ;;  %3802 = vmatprep.subr.bf16.mxu1 %v8681_v61  ;;  %v434_v51 = vld [vmem:[#allocation5 + $0x978] sm:$0xff]  ;;  %v8768_v57 = vcombine.low %v438_v37, %v442_v40 }
 0x20b   :  { %v558_v53 = vld [vmem:[#allocation5 + $0xd58] sm:$0xff]  ;;  %v8761_v63 = vcombine.high %v430_v50, %v434_v51  ;;  %v8760_v8 = vcombine.low %v430_v50, %v434_v51 }
 0x20c   :  { %v562_v54 = vld [vmem:[#allocation5 + $0xd78] sm:$0xff] }
 0x20d   :  { %3762 = vmatpush2.bf16.msra.mxu0 %v8552_v2  ;;  %3803 = vmatpush2.bf16.msra.mxu1 %v8680_v3  ;;  %v422_v2 = vld [vmem:[#allocation5 + $0x918] sm:$0xff]  ;;  %v8888_v11 = vcombine.low %v558_v53, %v562_v54 }
 0x20e   :  { %3763 = vmatprep.subr.bf16.mxu0 %v8545_v4  ;;  %3804 = vmatprep.subr.bf16.mxu1 %v8673_v6  ;;  %v426_v3 = vld [vmem:[#allocation5 + $0x938] sm:$0xff] }
 0x20f   :  { %v554_v4 = vld [vmem:[#allocation5 + $0xd38] sm:$0xff]  ;;  %v8753_v12 = vcombine.high %v422_v2, %v426_v3  ;;  %v8752_v19 = vcombine.low %v422_v2, %v426_v3 }
 0x210   :  { %v542_v18 = vld [vmem:[#allocation5 + $0xcd8] sm:$0xff] }
 0x211   :  { %3764 = vmatpush2.bf16.msra.mxu0 %v8544_v13  ;;  %3805 = vmatpush2.bf16.msra.mxu1 %v8672_v14  ;;  %v502_v3 = vld [vmem:[#allocation5 + $0xb98] sm:$0xff] }
 0x212   :  { %3765 = vmatprep.subr.bf16.mxu0 %v8537_v15  ;;  %3806 = vmatprep.subr.bf16.mxu1 %v8665_v17  ;;  %v414_v15 = vld [vmem:[#allocation5 + $0x8d8] sm:$0xff] }
 0x213   :  { %v418_v17 = vld [vmem:[#allocation5 + $0x8f8] sm:$0xff] }
 0x214   :  { %v8745_v21 = vcombine.high %v414_v15, %v418_v17  ;;  %v8744_v29 = vcombine.low %v414_v15, %v418_v17  ;;  %v622_v15 = vld [vmem:[#allocation5 + $0xf58] sm:$0xff] }
 0x215   :  { %3766 = vmatpush2.bf16.msra.mxu0 %v8536_v25  ;;  %3807 = vmatpush2.bf16.msra.mxu1 %v8664_v26  ;;  %v406_v25 = vld [vmem:[#allocation5 + $0x898] sm:$0xff] }
 0x216   :  { %3767 = vmatprep.subr.bf16.mxu0 %v8529_v27  ;;  %3808 = vmatprep.subr.bf16.mxu1 %v8657_v36  ;;  %v410_v26 = vld [vmem:[#allocation5 + $0x8b8] sm:$0xff] }
 0x217   :  { %v534_v27 = vld [vmem:[#allocation5 + $0xc98] sm:$0xff]  ;;  %v8737_v33 = vcombine.high %v406_v25, %v410_v26  ;;  %v8736_v37 = vcombine.low %v406_v25, %v410_v26 }
 0x218   :  { %v538_v36 = vld [vmem:[#allocation5 + $0xcb8] sm:$0xff] }
 0x219   :  { %3768 = vmatpush2.bf16.msra.mxu0 %v8528_v34  ;;  %3809 = vmatpush2.bf16.msra.mxu1 %v8656_v35  ;;  %v8865_v58 = vcombine.high %v534_v27, %v538_v36  ;;  %v398_v34 = vld [vmem:[#allocation5 + $0x858] sm:$0xff]  ;;  %v8864_v40 = vcombine.low %v534_v27, %v538_v36 }
 0x21a   :  { %3819 = vmatprep.subr.bf16.mxu0 %v8777_v47  ;;  %3860 = vmatprep.subr.bf16.mxu1 %v8905_v59  ;;  %v402_v35 = vld [vmem:[#allocation5 + $0x878] sm:$0xff] }
 0x21b   :  { %v526_v47 = vld [vmem:[#allocation5 + $0xc58] sm:$0xff]  ;;  %v8729_v41 = vcombine.high %v398_v34, %v402_v35  ;;  %v8728_v50 = vcombine.low %v398_v34, %v402_v35 }
 0x21c   :  { %v3525_v52 = vpop.f32.mrf.mxu0  ;;  %3770 = vmatmul.mubr.bf16.vlgmr.msra.gmra.mxu0 %v9999_v16  ;;  %v3566_v56 = vpop.f32.mrf.mxu1  ;;  %3811 = vmatmul.mubr.bf16.vlgmr.msra.gmra.mxu1 %v10001_v20  ;;  %v8889_v16 = vcombine.high %v558_v53, %v562_v54  ;;  %v550_v20 = vld [vmem:[#allocation5 + $0xd18] sm:$0xff] }
 0x21d   :  { %v3526_v55 = vadd.f32 %v3525_v52, %v10063_v7  ;;  %3820 = vmatpush1.bf16.msra.mxu0 %v8776_v44  ;;  %3861 = vmatpush1.bf16.msra.mxu1 %v8904_v45  ;;  %v8881_v14 = vcombine.high %v550_v20, %v554_v4  ;;  %v530_v59 = vld [vmem:[#allocation5 + $0xc78] sm:$0xff] }
 0x21e   :  { %v10072_v61 = vpop.f32.mrf.mxu0  ;;  %3821 = vmatprep.subr.bf16.mxu0 %v8769_v46  ;;  %v10076_v1 = vpop.f32.mrf.mxu1  ;;  %3862 = vmatprep.subr.bf16.mxu1 %v8897_v49  ;;  %v8857_v42 = vcombine.high %v526_v47, %v530_v59  ;;  %v390_v44 = vld [vmem:[#allocation5 + $0x818] sm:$0xff]  ;;  %v8856_v51 = vcombine.low %v526_v47, %v530_v59 }
 0x21f   :  { %v10074_v0 = vadd.f32 %v3566_v56, %v3526_v55  ;;  %3851 = vmatprep.mubr.bf16.mxu0 %v10003_v28  ;;  %3892 = vmatprep.mubr.bf16.mxu1 %v10006_v31  ;;  %v546_v28 = vld [vmem:[#allocation5 + $0xcf8] sm:$0xff]  ;;  %v8880_v31 = vcombine.low %v550_v20, %v554_v4 }
 0x220   :  { %v3529_v7 = vpop.f32.mrf.mxu0  ;;  %v3570_v6 = vpop.f32.mrf.mxu1  ;;  %v8873_v24 = vcombine.high %v542_v18, %v546_v28  ;;  %v8872_v30 = vcombine.low %v542_v18, %v546_v28  ;;  %v394_v45 = vld [vmem:[#allocation5 + $0x838] sm:$0xff] }
 0x221   :  { %3822 = vmatpush1.bf16.msra.mxu0 %v8768_v57  ;;  %3863 = vmatpush1.bf16.msra.mxu1 %v8896_v62  ;;  %v518_v46 = vld [vmem:[#allocation5 + $0xc18] sm:$0xff]  ;;  %v8721_v52 = vcombine.high %v390_v44, %v394_v45  ;;  %v8720_v62 = vcombine.low %v390_v44, %v394_v45  ;;  %v3528_v6 = vadd.f32 %v10072_v61, %v10067_v23 }
 0x222   :  { %v3530_v9 = vpop.f32.mrf.mxu0  ;;  %3823 = vmatprep.subr.bf16.mxu0 %v8761_v63  ;;  %v3571_v13 = vpop.f32.mrf.mxu1  ;;  %3864 = vmatprep.subr.bf16.mxu1 %v8889_v16  ;;  %v522_v49 = vld [vmem:[#allocation5 + $0xc38] sm:$0xff] }
 0x223   :  { %v8849_v53 = vcombine.high %v518_v46, %v522_v49  ;;  %v510_v54 = vld [vmem:[#allocation5 + $0xbd8] sm:$0xff]  ;;  %v8848_v63 = vcombine.low %v518_v46, %v522_v49  ;;  %v3569_v18 = vadd.f32 %v10076_v1, %v3528_v6 }
 0x224   :  { %v514_v55 = vld [vmem:[#allocation5 + $0xbf8] sm:$0xff] }
 0x225   :  { %3824 = vmatpush1.bf16.msra.mxu0 %v8760_v8  ;;  %3865 = vmatpush1.bf16.msra.mxu1 %v8888_v11  ;;  %v638_v56 = vld [vmem:[#allocation5 + $0xfd8] sm:$0xff]  ;;  %v8841_v16 = vcombine.high %v510_v54, %v514_v55  ;;  %v8840_v8 = vcombine.low %v510_v54, %v514_v55  ;;  %v3904_v27 = vmul.f32 0.5, %v3569_v18 }
 0x226   :  { %3825 = vmatprep.subr.bf16.mxu0 %v8753_v12  ;;  %3866 = vmatprep.subr.bf16.mxu1 %v8881_v14  ;;  %v642_v57 = vld [vmem:[#allocation5 + $0xff8] sm:$0xff] }
 0x227   :  { %v8969_v2 = vcombine.high %v638_v56, %v642_v57  ;;  %v506_v7 = vld [vmem:[#allocation5 + $0xbb8] sm:$0xff]  ;;  %v8968_v9 = vcombine.low %v638_v56, %v642_v57 }
 0x228   :  { %v630_v20 = vld [vmem:[#allocation5 + $0xf98] sm:$0xff]  ;;  %v8833_v11 = vcombine.high %v502_v3, %v506_v7  ;;  %v8832_v28 = vcombine.low %v502_v3, %v506_v7 }
 0x229   :  { %3826 = vmatpush1.bf16.msra.mxu0 %v8752_v19  ;;  %3867 = vmatpush1.bf16.msra.mxu1 %v8880_v31  ;;  %v634_v4 = vld [vmem:[#allocation5 + $0xfb8] sm:$0xff] }
 0x22a   :  { %3827 = vmatprep.subr.bf16.mxu0 %v8745_v21  ;;  %3868 = vmatprep.subr.bf16.mxu1 %v8873_v24  ;;  %v8961_v12 = vcombine.high %v630_v20, %v634_v4  ;;  %v494_v13 = vld [vmem:[#allocation5 + $0xb58] sm:$0xff]  ;;  %v8960_v19 = vcombine.low %v630_v20, %v634_v4  ;;  %v3902_v24 = vmul.f32 0.5, %v10051_v32 }
 0x22b   :  { %v498_v14 = vld [vmem:[#allocation5 + $0xb78] sm:$0xff] }
 0x22c   :  { %v626_v17 = vld [vmem:[#allocation5 + $0xf78] sm:$0xff]  ;;  %v8825_v23 = vcombine.high %v494_v13, %v498_v14  ;;  %v8824_v36 = vcombine.low %v494_v13, %v498_v14  ;;  %9711 = vtanh.f32 %v3902_v24  ;;  %v4125_v14 = vld [vmem:[#allocation8 + $0x5c0] sm:$0xff] }
 0x22d   :  { %3828 = vmatpush1.bf16.msra.mxu0 %v8744_v29  ;;  %3869 = vmatpush1.bf16.msra.mxu1 %v8872_v30  ;;  %v8953_v61 = vcombine.high %v622_v15, %v626_v17  ;;  %v486_v31 = vld [vmem:[#allocation5 + $0xb18] sm:$0xff]  ;;  %v8952_v1 = vcombine.low %v622_v15, %v626_v17  ;;  %9713 = vtanh.f32 %v3904_v27  ;;  %v4129_v15 = vld [vmem:[#allocation8 + $0x5e0] sm:$0xff] }
 0x22e   :  { %3829 = vmatprep.subr.bf16.mxu0 %v8737_v33  ;;  %3870 = vmatprep.subr.bf16.mxu1 %v8865_v58  ;;  %v490_v21 = vld [vmem:[#allocation5 + $0xb38] sm:$0xff]  ;;  %v3993_v24 = vld [vmem:[#allocation8 + $0x1a0] sm:$0xff] }
 0x22f   :  { %v614_v25 = vld [vmem:[#allocation5 + $0xf18] sm:$0xff]  ;;  %v8817_v29 = vcombine.high %v486_v31, %v490_v21  ;;  %v8816_v47 = vcombine.low %v486_v31, %v490_v21  ;;  %v3989_v21 = vld [vmem:[#allocation8 + $0x180] sm:$0xff] }
 0x230   :  { %v618_v26 = vld [vmem:[#allocation5 + $0xf38] sm:$0xff] }
 0x231   :  { %3830 = vmatpush1.bf16.msra.mxu0 %v8736_v37  ;;  %3871 = vmatpush1.bf16.msra.mxu1 %v8864_v40  ;;  %v8945_v30 = vcombine.high %v614_v25, %v618_v26  ;;  %v478_v33 = vld [vmem:[#allocation5 + $0xad8] sm:$0xff]  ;;  %v8944_v32 = vcombine.low %v614_v25, %v618_v26  ;;  %v10085_v26 = vld [vmem:[#allocation7] sm:$0xff] }
 0x232   :  { %3831 = vmatprep.subr.bf16.mxu0 %v8729_v41  ;;  %3872 = vmatprep.subr.bf16.mxu1 %v8857_v42  ;;  %v482_v58 = vld [vmem:[#allocation5 + $0xaf8] sm:$0xff] }
 0x233   :  { %v606_v34 = vld [vmem:[#allocation5 + $0xed8] sm:$0xff]  ;;  %v8809_v59 = vcombine.high %v478_v33, %v482_v58  ;;  %v8808_v45 = vcombine.low %v478_v33, %v482_v58  ;;  %v9019_v33 = vcombine.high %v3989_v21, %v3993_v24  ;;  %v3981_v58 = vld [vmem:[#allocation8 + $0x140] sm:$0xff] }
 0x234   :  { %v610_v35 = vld [vmem:[#allocation5 + $0xef8] sm:$0xff] }
 0x235   :  { %3832 = vmatpush1.bf16.msra.mxu0 %v8728_v50  ;;  %3873 = vmatpush1.bf16.msra.mxu1 %v8856_v51  ;;  %v8937_v37 = vcombine.high %v606_v34, %v610_v35  ;;  %v470_v40 = vld [vmem:[#allocation5 + $0xa98] sm:$0xff]  ;;  %v8936_v46 = vcombine.low %v606_v34, %v610_v35  ;;  %v3985_v34 = vld [vmem:[#allocation8 + $0x160] sm:$0xff] }
 0x236   :  { %3833 = vmatprep.subr.bf16.mxu0 %v8721_v52  ;;  %3874 = vmatprep.subr.bf16.mxu1 %v8849_v53  ;;  %v474_v41 = vld [vmem:[#allocation5 + $0xab8] sm:$0xff] }
 0x237   :  { %v598_v42 = vld [vmem:[#allocation5 + $0xe98] sm:$0xff]  ;;  %v8801_v49 = vcombine.high %v470_v40, %v474_v41  ;;  %v8800_v55 = vcombine.low %v470_v40, %v474_v41 }
 0x238   :  { %v602_v44 = vld [vmem:[#allocation5 + $0xeb8] sm:$0xff] }
 0x239   :  { %3834 = vmatpush1.bf16.msra.mxu0 %v8720_v62  ;;  %3875 = vmatpush1.bf16.msra.mxu1 %v8848_v63  ;;  %v8929_v50 = vcombine.high %v598_v42, %v602_v44  ;;  %v462_v51 = vld [vmem:[#allocation5 + $0xa58] sm:$0xff]  ;;  %v8928_v56 = vcombine.low %v598_v42, %v602_v44  ;;  %v9712_v7 = vpop.eup %9711  ;;  %v9018_v44 = vcombine.low %v3989_v21, %v3993_v24  ;;  %v3953_v21 = vld [vmem:[#allocation8 + $0x60] sm:$0xff] }
 0x23a   :  { %3835 = vmatprep.subr.bf16.mxu0 %v8841_v16  ;;  %3876 = vmatprep.subr.bf16.mxu1 %v8969_v2  ;;  %v466_v52 = vld [vmem:[#allocation5 + $0xa78] sm:$0xff]  ;;  %v9714_v4 = vpop.eup %9713  ;;  %v3918_v13 = vmul.f32 0.5, %v9712_v7  ;;  %v3965_v7 = vld [vmem:[#allocation8 + $0xc0] sm:$0xff] }
 0x23b   :  { %v590_v53 = vld [vmem:[#allocation5 + $0xe58] sm:$0xff]  ;;  %v8793_v57 = vcombine.high %v462_v51, %v466_v52  ;;  %v8792_v20 = vcombine.low %v462_v51, %v466_v52  ;;  %v3920_v17 = vmul.f32 0.5, %v9714_v4  ;;  %v3973_v52 = vld [vmem:[#allocation8 + $0x100] sm:$0xff] }
 0x23c   :  { %v594_v54 = vld [vmem:[#allocation5 + $0xe78] sm:$0xff]  ;;  %v3926_v31 = vadd.f32 0.5, %v3918_v13  ;;  %v4093_v4 = vld [vmem:[#allocation8 + $0x4c0] sm:$0xff] }
 0x23d   :  { %3836 = vmatpush2.bf16.msra.mxu0 %v8840_v8  ;;  %3877 = vmatpush2.bf16.msra.mxu1 %v8968_v9  ;;  %v8921_v62 = vcombine.high %v590_v53, %v594_v54  ;;  %v454_v63 = vld [vmem:[#allocation5 + $0xa18] sm:$0xff]  ;;  %v8920_v6 = vcombine.low %v590_v53, %v594_v54  ;;  %v3928_v25 = vadd.f32 0.5, %v3920_v17  ;;  %v3977_v53 = vld [vmem:[#allocation8 + $0x120] sm:$0xff] }
 0x23e   :  { %3837 = vmatprep.subr.bf16.mxu0 %v8833_v11  ;;  %3878 = vmatprep.subr.bf16.mxu1 %v8961_v12  ;;  %v458_v16 = vld [vmem:[#allocation5 + $0xa38] sm:$0xff]  ;;  %v3997_v11 = vld [vmem:[#allocation8 + $0x1c0] sm:$0xff]  ;;  %v10090_v35 = vpack.c.bf16 %v3926_v31, %v3926_v31 }
 0x23f   :  { %v582_v2 = vld [vmem:[#allocation5 + $0xe18] sm:$0xff]  ;;  %v8785_v8 = vcombine.high %v454_v63, %v458_v16  ;;  %v4001_v12 = vld [vmem:[#allocation8 + $0x1e0] sm:$0xff]  ;;  %v8784_v18 = vcombine.low %v454_v63, %v458_v16  ;;  %v10093_v40 = vpack.c.bf16 %v3928_v25, %v3928_v25  ;;  %v9003_v16 = vcombine.high %v3973_v52, %v3977_v53 }
 0x240   :  { %v586_v3 = vld [vmem:[#allocation5 + $0xe38] sm:$0xff]  ;;  %v4101_v54 = vld [vmem:[#allocation8 + $0x500] sm:$0xff] }
 0x241   :  { %3838 = vmatpush2.bf16.msra.mxu0 %v8832_v28  ;;  %3879 = vmatpush2.bf16.msra.mxu1 %v8960_v19  ;;  %v8913_v9 = vcombine.high %v582_v2, %v586_v3  ;;  %v663_v28 = vsub.s32 4, %v10023_v60  ;;  %v8912_v19 = vcombine.low %v582_v2, %v586_v3  ;;  %v3957_v13 = vld [vmem:[#allocation8 + $0x80] sm:$0xff] }
 0x242   :  { %3839 = vmatprep.subr.bf16.mxu0 %v8825_v23  ;;  %3880 = vmatprep.subr.bf16.mxu1 %v8953_v61  ;;  %v9027_v23 = vcombine.high %v3997_v11, %v4001_v12  ;;  %v9155_v61 = vcombine.high %v4125_v14, %v4129_v15  ;;  %v4089_v17 = vld [vmem:[#allocation8 + $0x4a0] sm:$0xff] }
 0x243   :  { %v664_v27 = vrot.slane %v10085_v26, %v663_v28  ;;  %v3949_v31 = vld [vmem:[#allocation8 + $0x40] sm:$0xff] }
 0x244   :  { %v4077_v24 = vld [vmem:[#allocation8 + $0x440] sm:$0xff] }
 0x245   :  { %3840 = vmatpush2.bf16.msra.mxu0 %v8824_v36  ;;  %3881 = vmatpush2.bf16.msra.mxu1 %v8952_v1  ;;  %v9026_v36 = vcombine.low %v3997_v11, %v4001_v12  ;;  %v4117_v1 = vld [vmem:[#allocation8 + $0x580] sm:$0xff] }
 0x246   :  { %3841 = vmatprep.subr.bf16.mxu0 %v8817_v29  ;;  %3882 = vmatprep.subr.bf16.mxu1 %v8945_v30  ;;  %v4121_v29 = vld [vmem:[#allocation8 + $0x5a0] sm:$0xff]  ;;  %v9154_v30 = vcombine.low %v4125_v14, %v4129_v15 }
 0x247   :  { %v3961_v14 = vld [vmem:[#allocation8 + $0xa0] sm:$0xff] }
 0x248   :  { %v4085_v15 = vld [vmem:[#allocation8 + $0x480] sm:$0xff] }
 0x249   :  { %3842 = vmatpush2.bf16.msra.mxu0 %v8816_v47  ;;  %3883 = vmatpush2.bf16.msra.mxu1 %v8944_v32  ;;  %v9147_v32 = vcombine.high %v4117_v1, %v4121_v29  ;;  %v4081_v25 = vld [vmem:[#allocation8 + $0x460] sm:$0xff] }
 0x24a   :  { %3843 = vmatprep.subr.bf16.mxu0 %v8809_v59  ;;  %3884 = vmatprep.subr.bf16.mxu1 %v8937_v37  ;;  %v4109_v59 = vld [vmem:[#allocation8 + $0x540] sm:$0xff] }
 0x24b   :  { %v4113_v37 = vld [vmem:[#allocation8 + $0x560] sm:$0xff] }
 0x24c   :  { %v9139_v51 = vcombine.high %v4109_v59, %v4113_v37  ;;  %v9138_v63 = vcombine.low %v4109_v59, %v4113_v37 }
 0x24d   :  { %3844 = vmatpush2.bf16.msra.mxu0 %v8808_v45  ;;  %3885 = vmatpush2.bf16.msra.mxu1 %v8936_v46  ;;  %v9146_v46 = vcombine.low %v4117_v1, %v4121_v29  ;;  %v8979_v1 = vcombine.high %v3949_v31, %v3953_v21  ;;  %v9107_v29 = vcombine.high %v4077_v24, %v4081_v25 }
 0x24e   :  { %3845 = vmatprep.subr.bf16.mxu0 %v8801_v49  ;;  %3886 = vmatprep.subr.bf16.mxu1 %v8929_v50  ;;  %v9011_v49 = vcombine.high %v3981_v58, %v3985_v34 }
 0x251   :  { %3846 = vmatpush2.bf16.msra.mxu0 %v8800_v55  ;;  %3887 = vmatpush2.bf16.msra.mxu1 %v8928_v56  ;;  %v4105_v55 = vld [vmem:[#allocation8 + $0x520] sm:$0xff] }
 0x252   :  { %3847 = vmatprep.subr.bf16.mxu0 %v8793_v57  ;;  %3888 = vmatprep.subr.bf16.mxu1 %v8921_v62  ;;  %v9010_v57 = vcombine.low %v3981_v58, %v3985_v34  ;;  %v9131_v3 = vcombine.high %v4101_v54, %v4105_v55  ;;  %v4069_v58 = vld [vmem:[#allocation8 + $0x400] sm:$0xff] }
 0x253   :  { %v4073_v34 = vld [vmem:[#allocation8 + $0x420] sm:$0xff] }
 0x254   :  { %v9099_v37 = vcombine.high %v4069_v58, %v4073_v34 }
 0x255   :  { %3848 = vmatpush2.bf16.msra.mxu0 %v8792_v20  ;;  %3889 = vmatpush2.bf16.msra.mxu1 %v8920_v6  ;;  %v3969_v20 = vld [vmem:[#allocation8 + $0xe0] sm:$0xff] }
 0x256   :  { %3849 = vmatprep.subr.bf16.mxu0 %v8785_v8  ;;  %3890 = vmatprep.subr.bf16.mxu1 %v8913_v9  ;;  %v4097_v6 = vld [vmem:[#allocation8 + $0x4e0] sm:$0xff]  ;;  %v9002_v8 = vcombine.low %v3973_v52, %v3977_v53  ;;  %v9130_v9 = vcombine.low %v4101_v54, %v4105_v55  ;;  %v8995_v11 = vcombine.high %v3965_v7, %v3969_v20 }
 0x257   :  { %v9123_v12 = vcombine.high %v4093_v4, %v4097_v6  ;;  %v4057_v54 = vld [vmem:[#allocation8 + $0x3a0] sm:$0xff] }
 0x258   :  { %v4181_v55 = vld [vmem:[#allocation8 + $0x780] sm:$0xff] }
 0x259   :  { %3850 = vmatpush2.bf16.msra.mxu0 %v8784_v18  ;;  %3891 = vmatpush2.bf16.msra.mxu1 %v8912_v19  ;;  %v8994_v18 = vcombine.low %v3965_v7, %v3969_v20  ;;  %v9122_v19 = vcombine.low %v4093_v4, %v4097_v6  ;;  %v4173_v7 = vld [vmem:[#allocation8 + $0x740] sm:$0xff]  ;;  %v3901_v6 = vmul.f32 0.5, %v10046_v22 }
 0x25a   :  { %7055 = vmatprep.subr.bf16.mxu0 %v9027_v23  ;;  %7096 = vmatprep.subr.bf16.mxu1 %v9155_v61  ;;  %v8987_v23 = vcombine.high %v3957_v13, %v3961_v14  ;;  %v9115_v61 = vcombine.high %v4085_v15, %v4089_v17  ;;  %v4177_v20 = vld [vmem:[#allocation8 + $0x760] sm:$0xff] }
 0x25b   :  { %9715 = vtanh.f32 %v3901_v6  ;;  %v4381_v6 = vld [vmem:[#allocation8 + $0xdc0] sm:$0xff] }
 0x25c   :  { %v3607_v47 = vpop.f32.mrf.mxu0  ;;  %3852 = vmatmul.mubr.bf16.vlgmr.msra.gmra.mxu0 %v10011_v38  ;;  %v3648_v42 = vpop.f32.mrf.mxu1  ;;  %3893 = vmatmul.mubr.bf16.vlgmr.msra.gmra.mxu1 %v10013_v39 }
 0x25d   :  { %v3608_v41 = vadd.f32 %v3607_v47, %v664_v27  ;;  %7056 = vmatpush1.bf16.msra.mxu0 %v9026_v36  ;;  %7087 = vmatprep.mubr.bf16.mxu0 %v10090_v35  ;;  %v8986_v27 = vcombine.low %v3957_v13, %v3961_v14  ;;  %v9114_v36 = vcombine.low %v4085_v15, %v4089_v17  ;;  %v4037_v13 = vld [vmem:[#allocation8 + $0x300] sm:$0xff] }
 0x25e   :  { %7097 = vmatpush1.bf16.msra.mxu1 %v9154_v30  ;;  %v10097_v45 = vpop.f32.mrf.mxu0  ;;  %7128 = vmatprep.mubr.bf16.mxu1 %v10093_v40  ;;  %v10102_v38 = vpop.f32.mrf.mxu1  ;;  %v3941_v30 = vld [vmem:[#allocation8] sm:$0xff]  ;;  %v8978_v47 = vcombine.low %v3949_v31, %v3953_v21 }
 0x25f   :  { %v10099_v50 = vadd.f32 %v3648_v42, %v3608_v41  ;;  %7057 = vmatprep.subr.bf16.mxu0 %v9019_v33  ;;  %7098 = vmatprep.subr.bf16.mxu1 %v9147_v32  ;;  %v3945_v33 = vld [vmem:[#allocation8 + $0x20] sm:$0xff]  ;;  %v9106_v32 = vcombine.low %v4077_v24, %v4081_v25 }
 0x260   :  { %v3611_v39 = vpop.f32.mrf.mxu0  ;;  %v3652_v56 = vpop.f32.mrf.mxu1  ;;  %v8971_v59 = vcombine.high %v3941_v30, %v3945_v33  ;;  %v4061_v41 = vld [vmem:[#allocation8 + $0x3c0] sm:$0xff] }
 0x261   :  { %7058 = vmatpush1.bf16.msra.mxu0 %v9018_v44  ;;  %v4065_v42 = vld [vmem:[#allocation8 + $0x3e0] sm:$0xff] }
 0x262   :  { %7099 = vmatpush1.bf16.msra.mxu1 %v9146_v46  ;;  %v3612_v62 = vpop.f32.mrf.mxu0  ;;  %7059 = vmatprep.subr.bf16.mxu0 %v9011_v49  ;;  %v3653_v2 = vpop.f32.mrf.mxu1  ;;  %v4189_v44 = vld [vmem:[#allocation8 + $0x7c0] sm:$0xff]  ;;  %v8970_v49 = vcombine.low %v3941_v30, %v3945_v33  ;;  %v9091_v52 = vcombine.high %v4061_v41, %v4065_v42 }
 0x263   :  { %7100 = vmatprep.subr.bf16.mxu1 %v9139_v51  ;;  %v4193_v46 = vld [vmem:[#allocation8 + $0x7e0] sm:$0xff]  ;;  %v9098_v51 = vcombine.low %v4069_v58, %v4073_v34 }
 0x264   :  { %v9219_v53 = vcombine.high %v4189_v44, %v4193_v46  ;;  %v4053_v39 = vld [vmem:[#allocation8 + $0x380] sm:$0xff]  ;;  %v9218_v62 = vcombine.low %v4189_v44, %v4193_v46 }
 0x265   :  { %7060 = vmatpush1.bf16.msra.mxu0 %v9010_v57  ;;  %v4185_v56 = vld [vmem:[#allocation8 + $0x7a0] sm:$0xff]  ;;  %v9090_v57 = vcombine.low %v4061_v41, %v4065_v42  ;;  %v9082_v4 = vcombine.low %v4053_v39, %v4057_v54 }
 0x266   :  { %7101 = vmatpush1.bf16.msra.mxu1 %v9138_v63  ;;  %7061 = vmatprep.subr.bf16.mxu0 %v9003_v16  ;;  %v9083_v63 = vcombine.high %v4053_v39, %v4057_v54  ;;  %v9211_v16 = vcombine.high %v4181_v55, %v4185_v56  ;;  %v4045_v2 = vld [vmem:[#allocation8 + $0x340] sm:$0xff] }
 0x267   :  { %7102 = vmatprep.subr.bf16.mxu1 %v9131_v3  ;;  %v4049_v3 = vld [vmem:[#allocation8 + $0x360] sm:$0xff] }
 0x268   :  { %v4041_v14 = vld [vmem:[#allocation8 + $0x320] sm:$0xff] }
 0x269   :  { %7062 = vmatpush1.bf16.msra.mxu0 %v9002_v8  ;;  %v9210_v8 = vcombine.low %v4181_v55, %v4185_v56  ;;  %v4165_v15 = vld [vmem:[#allocation8 + $0x700] sm:$0xff]  ;;  %v9066_v24 = vcombine.low %v4037_v13, %v4041_v14 }
 0x26a   :  { %7103 = vmatpush1.bf16.msra.mxu1 %v9130_v9  ;;  %7063 = vmatprep.subr.bf16.mxu0 %v8995_v11  ;;  %v9075_v9 = vcombine.high %v4045_v2, %v4049_v3  ;;  %v3903_v11 = vmul.f32 0.5, %v10074_v0  ;;  %v4169_v17 = vld [vmem:[#allocation8 + $0x720] sm:$0xff] }
 0x26b   :  { %7104 = vmatprep.subr.bf16.mxu1 %v9123_v12  ;;  %v9203_v12 = vcombine.high %v4173_v7, %v4177_v20  ;;  %v9195_v22 = vcombine.high %v4165_v15, %v4169_v17  ;;  %v4033_v31 = vld [vmem:[#allocation8 + $0x2e0] sm:$0xff]  ;;  %v9194_v25 = vcombine.low %v4165_v15, %v4169_v17 }
 0x26c   :  { %9717 = vtanh.f32 %v3903_v11  ;;  %v4157_v21 = vld [vmem:[#allocation8 + $0x6c0] sm:$0xff] }
 0x26d   :  { %7064 = vmatpush1.bf16.msra.mxu0 %v8994_v18  ;;  %v9074_v18 = vcombine.low %v4045_v2, %v4049_v3  ;;  %v4161_v0 = vld [vmem:[#allocation8 + $0x6e0] sm:$0xff] }
 0x26e   :  { %7105 = vmatpush1.bf16.msra.mxu1 %v9122_v19  ;;  %7065 = vmatprep.subr.bf16.mxu0 %v8987_v23  ;;  %v9202_v19 = vcombine.low %v4173_v7, %v4177_v20  ;;  %v9067_v23 = vcombine.high %v4037_v13, %v4041_v14  ;;  %v4149_v30 = vld [vmem:[#allocation8 + $0x680] sm:$0xff]  ;;  %v9186_v34 = vcombine.low %v4157_v21, %v4161_v0 }
 0x26f   :  { %7106 = vmatprep.subr.bf16.mxu1 %v9115_v61  ;;  %v4029_v61 = vld [vmem:[#allocation8 + $0x2c0] sm:$0xff] }
 0x270   :  { %v4153_v33 = vld [vmem:[#allocation8 + $0x6a0] sm:$0xff]  ;;  %v9058_v58 = vcombine.low %v4029_v61, %v4033_v31 }
 0x271   :  { %7066 = vmatpush1.bf16.msra.mxu0 %v8986_v27  ;;  %v9059_v27 = vcombine.high %v4029_v61, %v4033_v31  ;;  %v4141_v41 = vld [vmem:[#allocation8 + $0x640] sm:$0xff]  ;;  %v9178_v46 = vcombine.low %v4149_v30, %v4153_v33 }
 0x272   :  { %7107 = vmatpush1.bf16.msra.mxu1 %v9114_v36  ;;  %7067 = vmatprep.subr.bf16.mxu0 %v8979_v1  ;;  %v9187_v36 = vcombine.high %v4157_v21, %v4161_v0  ;;  %v4021_v1 = vld [vmem:[#allocation8 + $0x280] sm:$0xff] }
 0x273   :  { %7108 = vmatprep.subr.bf16.mxu1 %v9107_v29  ;;  %v4025_v29 = vld [vmem:[#allocation8 + $0x2a0] sm:$0xff] }
 0x274   :  { %v4145_v42 = vld [vmem:[#allocation8 + $0x660] sm:$0xff]  ;;  %v9050_v44 = vcombine.low %v4021_v1, %v4025_v29 }
 0x275   :  { %7068 = vmatpush1.bf16.msra.mxu0 %v8978_v47  ;;  %v9051_v47 = vcombine.high %v4021_v1, %v4025_v29  ;;  %v4009_v39 = vld [vmem:[#allocation8 + $0x220] sm:$0xff] }
 0x276   :  { %7109 = vmatpush1.bf16.msra.mxu1 %v9106_v32  ;;  %7069 = vmatprep.subr.bf16.mxu0 %v8971_v59  ;;  %v9179_v32 = vcombine.high %v4149_v30, %v4153_v33  ;;  %v4013_v59 = vld [vmem:[#allocation8 + $0x240] sm:$0xff] }
 0x277   :  { %7110 = vmatprep.subr.bf16.mxu1 %v9099_v37  ;;  %v4017_v37 = vld [vmem:[#allocation8 + $0x260] sm:$0xff] }
 0x278   :  { %v4133_v55 = vld [vmem:[#allocation8 + $0x600] sm:$0xff] }
 0x279   :  { %7070 = vmatpush1.bf16.msra.mxu0 %v8970_v49  ;;  %v9043_v49 = vcombine.high %v4013_v59, %v4017_v37  ;;  %v4137_v56 = vld [vmem:[#allocation8 + $0x620] sm:$0xff] }
 0x27a   :  { %7111 = vmatpush1.bf16.msra.mxu1 %v9098_v51  ;;  %7071 = vmatprep.subr.bf16.mxu0 %v9091_v52  ;;  %v9716_v51 = vpop.eup %9715  ;;  %v9171_v52 = vcombine.high %v4141_v41, %v4145_v42  ;;  %v9163_v7 = vcombine.high %v4133_v55, %v4137_v56  ;;  %v4253_v20 = vld [vmem:[#allocation8 + $0x9c0] sm:$0xff]  ;;  %v9162_v13 = vcombine.low %v4133_v55, %v4137_v56 }
 0x27b   :  { %7112 = vmatprep.subr.bf16.mxu1 %v9219_v53  ;;  %v4005_v53 = vld [vmem:[#allocation8 + $0x200] sm:$0xff]  ;;  %v9718_v54 = vpop.eup %9717 }
 0x27c   :  { %v9035_v2 = vcombine.high %v4005_v53, %v4009_v39  ;;  %v3919_v3 = vmul.f32 0.5, %v9718_v54  ;;  %v9034_v11 = vcombine.low %v4005_v53, %v4009_v39  ;;  %v4245_v17 = vld [vmem:[#allocation8 + $0x980] sm:$0xff] }
 0x27d   :  { %7072 = vmatpush2.bf16.msra.mxu0 %v9090_v57  ;;  %v667_v57 = vsub.s32 5, %v10023_v60  ;;  %v4365_v29 = vld [vmem:[#allocation8 + $0xd40] sm:$0xff] }
 0x27e   :  { %7113 = vmatpush2.bf16.msra.mxu1 %v9218_v62  ;;  %7073 = vmatprep.subr.bf16.mxu0 %v9083_v63  ;;  %v9042_v62 = vcombine.low %v4013_v59, %v4017_v37  ;;  %v3917_v63 = vmul.f32 0.5, %v9716_v51  ;;  %v3927_v15 = vadd.f32 0.5, %v3919_v3  ;;  %v4349_v3 = vld [vmem:[#allocation8 + $0xcc0] sm:$0xff] }
 0x27f   :  { %7114 = vmatprep.subr.bf16.mxu1 %v9211_v16  ;;  %v9170_v16 = vcombine.low %v4141_v41, %v4145_v42  ;;  %v4229_v41 = vld [vmem:[#allocation8 + $0x900] sm:$0xff] }
 0x280   :  { %v4233_v42 = vld [vmem:[#allocation8 + $0x920] sm:$0xff] }
 0x281   :  { %7074 = vmatpush2.bf16.msra.mxu0 %v9082_v4  ;;  %v4257_v4 = vld [vmem:[#allocation8 + $0x9e0] sm:$0xff]  ;;  %v9259_v54 = vcombine.high %v4229_v41, %v4233_v42 }
 0x282   :  { %7115 = vmatpush2.bf16.msra.mxu1 %v9210_v8  ;;  %7075 = vmatprep.subr.bf16.mxu0 %v9075_v9  ;;  %v4385_v8 = vld [vmem:[#allocation8 + $0xde0] sm:$0xff]  ;;  %v668_v9 = vrot.slane %v10085_v26, %v667_v57  ;;  %v9283_v14 = vcombine.high %v4253_v20, %v4257_v4  ;;  %v9282_v31 = vcombine.low %v4253_v20, %v4257_v4 }
 0x283   :  { %7116 = vmatprep.subr.bf16.mxu1 %v9203_v12  ;;  %v3925_v12 = vadd.f32 0.5, %v3917_v63  ;;  %v9410_v0 = vcombine.low %v4381_v6, %v4385_v8  ;;  %v4221_v63 = vld [vmem:[#allocation8 + $0x8c0] sm:$0xff]  ;;  %v9258_v20 = vcombine.low %v4229_v41, %v4233_v42 }
 0x284   :  { %v3610_v61 = vadd.f32 %v10097_v45, %v668_v9  ;;  %v4369_v45 = vld [vmem:[#allocation8 + $0xd60] sm:$0xff] }
 0x285   :  { %7076 = vmatpush2.bf16.msra.mxu0 %v9074_v18  ;;  %v4249_v18 = vld [vmem:[#allocation8 + $0x9a0] sm:$0xff]  ;;  %v10111_v21 = vpack.c.bf16 %v3925_v12, %v3925_v12  ;;  %v9394_v55 = vcombine.low %v4365_v29, %v4369_v45 }
 0x286   :  { %7117 = vmatpush2.bf16.msra.mxu1 %v9202_v19  ;;  %7077 = vmatprep.subr.bf16.mxu0 %v9067_v23  ;;  %v9411_v19 = vcombine.high %v4381_v6, %v4385_v8  ;;  %v4373_v23 = vld [vmem:[#allocation8 + $0xd80] sm:$0xff]  ;;  %v9275_v26 = vcombine.high %v4245_v17, %v4249_v18  ;;  %v3651_v30 = vadd.f32 %v10102_v38, %v3610_v61 }
 0x287   :  { %7118 = vmatprep.subr.bf16.mxu1 %v9195_v22  ;;  %v4377_v22 = vld [vmem:[#allocation8 + $0xda0] sm:$0xff] }
 0x288   :  { %v4361_v38 = vld [vmem:[#allocation8 + $0xd20] sm:$0xff] }
 0x289   :  { %7078 = vmatpush2.bf16.msra.mxu0 %v9066_v24  ;;  %v10113_v24 = vpack.c.bf16 %v3927_v15, %v3927_v15  ;;  %v4213_v8 = vld [vmem:[#allocation8 + $0x880] sm:$0xff] }
 0x28a   :  { %7119 = vmatpush2.bf16.msra.mxu1 %v9194_v25  ;;  %7079 = vmatprep.subr.bf16.mxu0 %v9059_v27  ;;  %v4237_v25 = vld [vmem:[#allocation8 + $0x940] sm:$0xff] }
 0x28b   :  { %7120 = vmatprep.subr.bf16.mxu1 %v9187_v36  ;;  %v4241_v27 = vld [vmem:[#allocation8 + $0x960] sm:$0xff]  ;;  %v9403_v36 = vcombine.high %v4373_v23, %v4377_v22 }
 0x28c   :  { %v9266_v53 = vcombine.low %v4237_v25, %v4241_v27  ;;  %v4217_v9 = vld [vmem:[#allocation8 + $0x8a0] sm:$0xff] }
 0x28d   :  { %7080 = vmatpush2.bf16.msra.mxu0 %v9058_v58  ;;  %v9274_v58 = vcombine.low %v4245_v17, %v4249_v18  ;;  %v4341_v12 = vld [vmem:[#allocation8 + $0xc80] sm:$0xff]  ;;  %v9243_v15 = vcombine.high %v4213_v8, %v4217_v9 }
 0x28e   :  { %7121 = vmatpush2.bf16.msra.mxu1 %v9186_v34  ;;  %7081 = vmatprep.subr.bf16.mxu0 %v9051_v47  ;;  %v9267_v47 = vcombine.high %v4237_v25, %v4241_v27  ;;  %v4205_v18 = vld [vmem:[#allocation8 + $0x840] sm:$0xff] }
 0x28f   :  { %7122 = vmatprep.subr.bf16.mxu1 %v9179_v32  ;;  %v9402_v32 = vcombine.low %v4373_v23, %v4377_v22  ;;  %v4333_v22 = vld [vmem:[#allocation8 + $0xc40] sm:$0xff] }
 0x290   :  { %v4337_v61 = vld [vmem:[#allocation8 + $0xc60] sm:$0xff] }
 0x291   :  { %7082 = vmatpush2.bf16.msra.mxu0 %v9050_v44  ;;  %v9395_v44 = vcombine.high %v4365_v29, %v4369_v45  ;;  %v4197_v25 = vld [vmem:[#allocation8 + $0x800] sm:$0xff] }
 0x292   :  { %7123 = vmatpush2.bf16.msra.mxu1 %v9178_v46  ;;  %7083 = vmatprep.subr.bf16.mxu0 %v9043_v49  ;;  %v4357_v49 = vld [vmem:[#allocation8 + $0xd00] sm:$0xff] }
 0x293   :  { %7124 = vmatprep.subr.bf16.mxu1 %v9171_v52  ;;  %v9386_v6 = vcombine.low %v4357_v49, %v4361_v38  ;;  %v4201_v27 = vld [vmem:[#allocation8 + $0x820] sm:$0xff] }
 0x294   :  { %v4325_v29 = vld [vmem:[#allocation8 + $0xc00] sm:$0xff] }
 0x295   :  { %7084 = vmatpush2.bf16.msra.mxu0 %v9042_v62  ;;  %v4329_v45 = vld [vmem:[#allocation8 + $0xc20] sm:$0xff] }
 0x296   :  { %7125 = vmatpush2.bf16.msra.mxu1 %v9170_v16  ;;  %7085 = vmatprep.subr.bf16.mxu0 %v9035_v2  ;;  %v4225_v16 = vld [vmem:[#allocation8 + $0x8e0] sm:$0xff]  ;;  %v9387_v2 = vcombine.high %v4357_v49, %v4361_v38  ;;  %v9355_v41 = vcombine.high %v4325_v29, %v4329_v45  ;;  %v9226_v49 = vcombine.low %v4197_v25, %v4201_v27 }
 0x297   :  { %7126 = vmatprep.subr.bf16.mxu1 %v9163_v7  ;;  %v4353_v7 = vld [vmem:[#allocation8 + $0xce0] sm:$0xff]  ;;  %v9251_v4 = vcombine.high %v4221_v63, %v4225_v16 }
 0x298   :  { %v9378_v17 = vcombine.low %v4349_v3, %v4353_v7  ;;  %v4445_v42 = vld [vmem:[#allocation8 + $0xfc0] sm:$0xff] }
 0x299   :  { %7086 = vmatpush2.bf16.msra.mxu0 %v9034_v11  ;;  %v9379_v11 = vcombine.high %v4349_v3, %v4353_v7 }
 0x29a   :  { %7127 = vmatpush2.bf16.msra.mxu1 %v9162_v13  ;;  %7137 = vmatprep.subr.bf16.mxu0 %v9283_v14  ;;  %v4345_v13 = vld [vmem:[#allocation8 + $0xca0] sm:$0xff]  ;;  %v9250_v14 = vcombine.low %v4221_v63, %v4225_v16  ;;  %v10126_v63 = vld [vmem:[#allocation8 + $0x5c8] sm:$0xff] }
 0x29b   :  { %7178 = vmatprep.subr.bf16.mxu1 %v9411_v19  ;;  %v4209_v19 = vld [vmem:[#allocation8 + $0x860] sm:$0xff]  ;;  %v9371_v23 = vcombine.high %v4341_v12, %v4345_v13  ;;  %v10128_v16 = vld [vmem:[#allocation8 + $0x5e8] sm:$0xff] }
 0x29c   :  { %v10115_v1 = vpop.f32.mrf.mxu0  ;;  %7088 = vmatmul.mubr.bf16.vlgmr.msra.gmra.mxu0 %v10111_v21  ;;  %v10119_v33 = vpop.f32.mrf.mxu1 }
 0x29d   :  { %7129 = vmatmul.mubr.bf16.vlgmr.msra.gmra.mxu1 %v10113_v24  ;;  %7138 = vmatpush1.bf16.msra.mxu0 %v9282_v31  ;;  %v9242_v31 = vcombine.low %v4213_v8, %v4217_v9  ;;  %v3690_v38 = vadd.f32 %v10115_v1, %v10099_v50  ;;  %v9156_v1 = vcombine.low %v10126_v63, %v10128_v16  ;;  %v4429_v8 = vld [vmem:[#allocation8 + $0xf40] sm:$0xff] }
 0x29e   :  { %v3691_v34 = vpop.f32.mrf.mxu0  ;;  %7139 = vmatprep.subr.bf16.mxu0 %v9275_v26  ;;  %7179 = vmatpush1.bf16.msra.mxu1 %v9410_v0  ;;  %v3732_v37 = vpop.f32.mrf.mxu1  ;;  %v9235_v26 = vcombine.high %v4205_v18, %v4209_v19  ;;  %v9370_v0 = vcombine.low %v4341_v12, %v4345_v13  ;;  %v4433_v9 = vld [vmem:[#allocation8 + $0xf60] sm:$0xff] }
 0x29f   :  { %v3692_v59 = vadd.f32 %v3691_v34, %v3651_v30  ;;  %7180 = vmatprep.subr.bf16.mxu1 %v9403_v36  ;;  %v9363_v36 = vcombine.high %v4333_v22, %v4337_v61  ;;  %v9234_v30 = vcombine.low %v4205_v18, %v4209_v19  ;;  %v9227_v34 = vcombine.high %v4197_v25, %v4201_v27  ;;  %v4421_v18 = vld [vmem:[#allocation8 + $0xf00] sm:$0xff] }
 0x2a0   :  { %v3693_v46 = vpop.f32.mrf.mxu0  ;;  %v3734_v52 = vpop.f32.mrf.mxu1  ;;  %v4425_v19 = vld [vmem:[#allocation8 + $0xf20] sm:$0xff] }
 0x2a1   :  { %v3733_v51 = vadd.f32 %v3732_v37, %v3692_v59  ;;  %7140 = vmatpush1.bf16.msra.mxu0 %v9274_v58  ;;  %v4317_v59 = vld [vmem:[#allocation8 + $0xbc0] sm:$0xff]  ;;  %v9354_v52 = vcombine.low %v4325_v29, %v4329_v45  ;;  %v9450_v45 = vcombine.low %v4421_v18, %v4425_v19 }
 0x2a2   :  { %v3694_v39 = vpop.f32.mrf.mxu0  ;;  %7141 = vmatprep.subr.bf16.mxu0 %v9267_v47  ;;  %7181 = vmatpush1.bf16.msra.mxu1 %v9402_v32  ;;  %v3735_v62 = vpop.f32.mrf.mxu1  ;;  %v9362_v47 = vcombine.low %v4333_v22, %v4337_v61  ;;  %v4321_v37 = vld [vmem:[#allocation8 + $0xbe0] sm:$0xff]  ;;  %v9458_v61 = vcombine.low %v4429_v8, %v4433_v9 }
 0x2a3   :  { %v3906_v56 = vmul.f32 0.5, %v3733_v51  ;;  %7182 = vmatprep.subr.bf16.mxu1 %v9395_v44  ;;  %v4449_v44 = vld [vmem:[#allocation8 + $0xfe0] sm:$0xff]  ;;  %v9347_v51 = vcombine.high %v4317_v59, %v4321_v37  ;;  %v9346_v50 = vcombine.low %v4317_v59, %v4321_v37 }
 0x2a4   :  { %v4309_v39 = vld [vmem:[#allocation8 + $0xb80] sm:$0xff]  ;;  %v9474_v7 = vcombine.low %v4445_v42, %v4449_v44 }
 0x2a5   :  { %9719 = vtanh.f32 %v3906_v56  ;;  %7142 = vmatpush1.bf16.msra.mxu0 %v9266_v53  ;;  %v4437_v56 = vld [vmem:[#allocation8 + $0xf80] sm:$0xff] }
 0x2a6   :  { %7143 = vmatprep.subr.bf16.mxu0 %v9259_v54  ;;  %7183 = vmatpush1.bf16.msra.mxu1 %v9394_v55  ;;  %v4313_v54 = vld [vmem:[#allocation8 + $0xba0] sm:$0xff]  ;;  %v9475_v55 = vcombine.high %v4445_v42, %v4449_v44 }
 0x2a7   :  { %7184 = vmatprep.subr.bf16.mxu1 %v9387_v2  ;;  %v4441_v62 = vld [vmem:[#allocation8 + $0xfa0] sm:$0xff]  ;;  %v3731_v2 = vadd.f32 %v10119_v33, %v3690_v38  ;;  %v9339_v3 = vcombine.high %v4309_v39, %v4313_v54  ;;  %v9459_v33 = vcombine.high %v4429_v8, %v4433_v9  ;;  %v4002_v8 = vld [vmem:[#allocation8 + $0x1e8] sm:$0xff] }
 0x2a8   :  { %v4413_v25 = vld [vmem:[#allocation8 + $0xec0] sm:$0xff] }
 0x2a9   :  { %7144 = vmatpush1.bf16.msra.mxu0 %v9258_v20  ;;  %v4301_v20 = vld [vmem:[#allocation8 + $0xb40] sm:$0xff]  ;;  %v3905_v12 = vmul.f32 0.5, %v3731_v2 }
 0x2aa   :  { %7145 = vmatprep.subr.bf16.mxu0 %v9251_v4  ;;  %7185 = vmatpush1.bf16.msra.mxu1 %v9386_v6  ;;  %v4305_v4 = vld [vmem:[#allocation8 + $0xb60] sm:$0xff]  ;;  %v9467_v6 = vcombine.high %v4437_v56, %v4441_v62 }
 0x2ab   :  { %7186 = vmatprep.subr.bf16.mxu1 %v9379_v11  ;;  %v9338_v11 = vcombine.low %v4309_v39, %v4313_v54  ;;  %v9331_v13 = vcombine.high %v4301_v20, %v4305_v4  ;;  %9721 = vtanh.f32 %v3905_v12  ;;  %v4417_v27 = vld [vmem:[#allocation8 + $0xee0] sm:$0xff] }
 0x2ac   :  { %v4269_v42 = vld [vmem:[#allocation8 + $0xa40] sm:$0xff] }
 0x2ad   :  { %7146 = vmatpush1.bf16.msra.mxu0 %v9250_v14  ;;  %v9466_v14 = vcombine.low %v4437_v56, %v4441_v62  ;;  %v4273_v44 = vld [vmem:[#allocation8 + $0xa60] sm:$0xff] }
 0x2ae   :  { %7147 = vmatprep.subr.bf16.mxu0 %v9243_v15  ;;  %7187 = vmatpush1.bf16.msra.mxu1 %v9378_v17  ;;  %v4293_v15 = vld [vmem:[#allocation8 + $0xb00] sm:$0xff] }
 0x2af   :  { %7188 = vmatprep.subr.bf16.mxu1 %v9371_v23  ;;  %v4297_v17 = vld [vmem:[#allocation8 + $0xb20] sm:$0xff]  ;;  %v9330_v23 = vcombine.low %v4301_v20, %v4305_v4 }
 0x2b0   :  { %v9323_v22 = vcombine.high %v4293_v15, %v4297_v17  ;;  %v4401_v38 = vld [vmem:[#allocation8 + $0xe60] sm:$0xff] }
 0x2b1   :  { %7148 = vmatpush1.bf16.msra.mxu0 %v9242_v31  ;;  %v4285_v31 = vld [vmem:[#allocation8 + $0xac0] sm:$0xff] }
 0x2b2   :  { %v9720_v58 = vpop.eup %9719  ;;  %7149 = vmatprep.subr.bf16.mxu0 %v9235_v26  ;;  %7189 = vmatpush1.bf16.msra.mxu1 %v9370_v0  ;;  %v4289_v26 = vld [vmem:[#allocation8 + $0xae0] sm:$0xff]  ;;  %v9451_v0 = vcombine.high %v4421_v18, %v4425_v19 }
 0x2b3   :  { %v3922_v32 = vmul.f32 0.5, %v9720_v58  ;;  %7190 = vmatprep.subr.bf16.mxu1 %v9363_v36  ;;  %v9322_v36 = vcombine.low %v4293_v15, %v4297_v17  ;;  %v9315_v29 = vcombine.high %v4285_v31, %v4289_v26  ;;  %v4281_v58 = vld [vmem:[#allocation8 + $0xaa0] sm:$0xff]  ;;  %v9314_v59 = vcombine.low %v4285_v31, %v4289_v26  ;;  %v3990_v15 = vld [vmem:[#allocation8 + $0x188] sm:$0xff] }
 0x2b4   :  { %v4265_v56 = vld [vmem:[#allocation8 + $0xa20] sm:$0xff]  ;;  %v3994_v17 = vld [vmem:[#allocation8 + $0x1a8] sm:$0xff] }
 0x2b5   :  { %v3930_v46 = vadd.f32 0.5, %v3922_v32  ;;  %7150 = vmatpush1.bf16.msra.mxu0 %v9234_v30  ;;  %v4277_v30 = vld [vmem:[#allocation8 + $0xa80] sm:$0xff] }
 0x2b6   :  { %7151 = vmatprep.subr.bf16.mxu0 %v9227_v34  ;;  %7191 = vmatpush1.bf16.msra.mxu1 %v9362_v47  ;;  %v9443_v34 = vcombine.high %v4413_v25, %v4417_v27  ;;  %v4405_v47 = vld [vmem:[#allocation8 + $0xe80] sm:$0xff]  ;;  %v9307_v37 = vcombine.high %v4277_v30, %v4281_v58 }
 0x2b7   :  { %v10124_v53 = vpack.c.bf16 %v3930_v46, %v3930_v46  ;;  %7192 = vmatprep.subr.bf16.mxu1 %v9355_v41  ;;  %v4409_v32 = vld [vmem:[#allocation8 + $0xea0] sm:$0xff]  ;;  %v9442_v41 = vcombine.low %v4413_v25, %v4417_v27 }
 0x2b8   :  { %v9435_v46 = vcombine.high %v4405_v47, %v4409_v32  ;;  %v9434_v39 = vcombine.low %v4405_v47, %v4409_v32  ;;  %v9722_v54 = vpop.eup %9721  ;;  %v4393_v2 = vld [vmem:[#allocation8 + $0xe20] sm:$0xff] }
 0x2b9   :  { %7152 = vmatpush1.bf16.msra.mxu0 %v9226_v49  ;;  %7169 = vmatprep.mubr.bf16.mxu0 %v10124_v53  ;;  %v4397_v49 = vld [vmem:[#allocation8 + $0xe40] sm:$0xff] }
 0x2ba   :  { %7153 = vmatprep.subr.bf16.mxu0 %v9347_v51  ;;  %7193 = vmatpush1.bf16.msra.mxu1 %v9354_v52  ;;  %v9306_v51 = vcombine.low %v4277_v30, %v4281_v58  ;;  %v9299_v52 = vcombine.high %v4269_v42, %v4273_v44  ;;  %v9427_v62 = vcombine.high %v4397_v49, %v4401_v38 }
 0x2bb   :  { %7194 = vmatprep.subr.bf16.mxu1 %v9475_v55  ;;  %v4261_v55 = vld [vmem:[#allocation8 + $0xa00] sm:$0xff]  ;;  %v9426_v4 = vcombine.low %v4397_v49, %v4401_v38  ;;  %v3962_v49 = vld [vmem:[#allocation8 + $0xa8] sm:$0xff] }
 0x2bc   :  { %v9291_v20 = vcombine.high %v4261_v55, %v4265_v56 }
 0x2bd   :  { %7154 = vmatpush2.bf16.msra.mxu0 %v9346_v50  ;;  %v4389_v50 = vld [vmem:[#allocation8 + $0xe00] sm:$0xff] }
 0x2be   :  { %7155 = vmatprep.subr.bf16.mxu0 %v9339_v3  ;;  %7195 = vmatpush2.bf16.msra.mxu1 %v9474_v7  ;;  %v9298_v3 = vcombine.low %v4269_v42, %v4273_v44  ;;  %v3921_v7 = vmul.f32 0.5, %v9722_v54  ;;  %v9419_v9 = vcombine.high %v4389_v50, %v4393_v2 }
 0x2bf   :  { %7196 = vmatprep.subr.bf16.mxu1 %v9467_v6  ;;  %v3998_v6 = vld [vmem:[#allocation8 + $0x1c8] sm:$0xff] }
 0x2c0   :  { %v3929_v12 = vadd.f32 0.5, %v3921_v7  ;;  %v9028_v18 = vcombine.low %v3998_v6, %v4002_v8  ;;  %v4066_v7 = vld [vmem:[#allocation8 + $0x3e8] sm:$0xff] }
 0x2c1   :  { %7156 = vmatpush2.bf16.msra.mxu0 %v9338_v11  ;;  %v9290_v11 = vcombine.low %v4261_v55, %v4265_v56  ;;  %v3942_v56 = vld [vmem:[#allocation8 + $0x8] sm:$0xff] }
 0x2c2   :  { %7157 = vmatprep.subr.bf16.mxu0 %v9331_v13  ;;  %7197 = vmatpush2.bf16.msra.mxu1 %v9466_v14  ;;  %v9029_v13 = vcombine.high %v3998_v6, %v4002_v8  ;;  %v9418_v14 = vcombine.low %v4389_v50, %v4393_v2  ;;  %v10136_v19 = vpack.c.bf16 %v3929_v12, %v3929_v12  ;;  %v4054_v6 = vld [vmem:[#allocation8 + $0x388] sm:$0xff] }
 0x2c3   :  { %7198 = vmatprep.subr.bf16.mxu1 %v9459_v33  ;;  %v9157_v33 = vcombine.high %v10126_v63, %v10128_v16  ;;  %v4058_v8 = vld [vmem:[#allocation8 + $0x3a8] sm:$0xff] }
 0x2c4   :  { %v4046_v12 = vld [vmem:[#allocation8 + $0x348] sm:$0xff] }
 0x2c5   :  { %7158 = vmatpush2.bf16.msra.mxu0 %v9330_v23  ;;  %v9021_v23 = vcombine.high %v3990_v15, %v3994_v17 }
 0x2c6   :  { %7159 = vmatprep.subr.bf16.mxu0 %v9323_v22  ;;  %7199 = vmatpush2.bf16.msra.mxu1 %v9458_v61  ;;  %v3982_v22 = vld [vmem:[#allocation8 + $0x148] sm:$0xff] }
 0x2c7   :  { %7200 = vmatprep.subr.bf16.mxu1 %v9451_v0  ;;  %v3986_v61 = vld [vmem:[#allocation8 + $0x168] sm:$0xff]  ;;  %v9020_v0 = vcombine.low %v3990_v15, %v3994_v17 }
 0x2c8   :  { %v9013_v27 = vcombine.high %v3982_v22, %v3986_v61  ;;  %v4038_v17 = vld [vmem:[#allocation8 + $0x308] sm:$0xff] }
 0x2c9   :  { %7160 = vmatpush2.bf16.msra.mxu0 %v9322_v36 }
 0x2ca   :  { %7161 = vmatprep.subr.bf16.mxu0 %v9315_v29  ;;  %7201 = vmatpush2.bf16.msra.mxu1 %v9450_v45  ;;  %v3974_v29 = vld [vmem:[#allocation8 + $0x108] sm:$0xff] }
 0x2cb   :  { %7202 = vmatprep.subr.bf16.mxu1 %v9443_v34  ;;  %v3978_v45 = vld [vmem:[#allocation8 + $0x128] sm:$0xff]  ;;  %v9012_v34 = vcombine.low %v3982_v22, %v3986_v61 }
 0x2cc   :  { %v9005_v32 = vcombine.high %v3974_v29, %v3978_v45  ;;  %v9004_v42 = vcombine.low %v3974_v29, %v3978_v45  ;;  %v4030_v22 = vld [vmem:[#allocation8 + $0x2c8] sm:$0xff] }
 0x2cd   :  { %7162 = vmatpush2.bf16.msra.mxu0 %v9314_v59  ;;  %v4034_v61 = vld [vmem:[#allocation8 + $0x2e8] sm:$0xff] }
 0x2ce   :  { %7163 = vmatprep.subr.bf16.mxu0 %v9307_v37  ;;  %7203 = vmatpush2.bf16.msra.mxu1 %v9442_v41  ;;  %v3966_v37 = vld [vmem:[#allocation8 + $0xc8] sm:$0xff] }
 0x2cf   :  { %7204 = vmatprep.subr.bf16.mxu1 %v9435_v46  ;;  %v3970_v41 = vld [vmem:[#allocation8 + $0xe8] sm:$0xff] }
 0x2d0   :  { %v8997_v44 = vcombine.high %v3966_v37, %v3970_v41  ;;  %v3958_v46 = vld [vmem:[#allocation8 + $0x88] sm:$0xff]  ;;  %v8996_v38 = vcombine.low %v3966_v37, %v3970_v41  ;;  %v671_v37 = vsub.s32 6, %v10023_v60 }
 0x2d1   :  { %7164 = vmatpush2.bf16.msra.mxu0 %v9306_v51  ;;  %v8989_v51 = vcombine.high %v3958_v46, %v3962_v49  ;;  %v8988_v54 = vcombine.low %v3958_v46, %v3962_v49  ;;  %v4022_v29 = vld [vmem:[#allocation8 + $0x288] sm:$0xff] }
 0x2d2   :  { %7165 = vmatprep.subr.bf16.mxu0 %v9299_v52  ;;  %7205 = vmatpush2.bf16.msra.mxu1 %v9434_v39  ;;  %v3950_v52 = vld [vmem:[#allocation8 + $0x48] sm:$0xff] }
 0x2d3   :  { %7206 = vmatprep.subr.bf16.mxu1 %v9427_v62  ;;  %v3954_v39 = vld [vmem:[#allocation8 + $0x68] sm:$0xff] }
 0x2d4   :  { %v8981_v55 = vcombine.high %v3950_v52, %v3954_v39  ;;  %v3946_v62 = vld [vmem:[#allocation8 + $0x28] sm:$0xff]  ;;  %v8980_v50 = vcombine.low %v3950_v52, %v3954_v39 }
 0x2d5   :  { %7166 = vmatpush2.bf16.msra.mxu0 %v9298_v3  ;;  %v8973_v2 = vcombine.high %v3942_v56, %v3946_v62  ;;  %v4062_v3 = vld [vmem:[#allocation8 + $0x3c8] sm:$0xff] }
 0x2d6   :  { %7167 = vmatprep.subr.bf16.mxu0 %v9291_v20  ;;  %7207 = vmatpush2.bf16.msra.mxu1 %v9426_v4  ;;  %v8972_v20 = vcombine.low %v3942_v56, %v3946_v62  ;;  %v9093_v4 = vcombine.high %v4062_v3, %v4066_v7  ;;  %v4026_v45 = vld [vmem:[#allocation8 + $0x2a8] sm:$0xff] }
 0x2d7   :  { %7208 = vmatprep.subr.bf16.mxu1 %v9419_v9  ;;  %v9092_v9 = vcombine.low %v4062_v3, %v4066_v7  ;;  %v4006_v41 = vld [vmem:[#allocation8 + $0x208] sm:$0xff] }
 0x2d8   :  { %v4254_v52 = vld [vmem:[#allocation8 + $0x9c8] sm:$0xff] }
 0x2d9   :  { %7168 = vmatpush2.bf16.msra.mxu0 %v9290_v11  ;;  %v9085_v11 = vcombine.high %v4054_v6, %v4058_v8  ;;  %v4258_v39 = vld [vmem:[#allocation8 + $0x9e8] sm:$0xff] }
 0x2da   :  { %7219 = vmatprep.subr.bf16.mxu0 %v9029_v13  ;;  %7209 = vmatpush2.bf16.msra.mxu1 %v9418_v14  ;;  %v4050_v13 = vld [vmem:[#allocation8 + $0x368] sm:$0xff]  ;;  %v9084_v14 = vcombine.low %v4054_v6, %v4058_v8  ;;  %v9285_v56 = vcombine.high %v4254_v52, %v4258_v39  ;;  %v9284_v7 = vcombine.low %v4254_v52, %v4258_v39 }
 0x2db   :  { %7260 = vmatprep.subr.bf16.mxu1 %v9157_v33  ;;  %v9077_v15 = vcombine.high %v4046_v12, %v4050_v13  ;;  %v4042_v33 = vld [vmem:[#allocation8 + $0x328] sm:$0xff] }
 0x2dc   :  { %v10138_v31 = vpop.f32.mrf.mxu0  ;;  %7170 = vmatmul.mubr.bf16.vlgmr.msra.gmra.mxu0 %v10136_v19  ;;  %v10141_v26 = vpop.f32.mrf.mxu1  ;;  %v4238_v6 = vld [vmem:[#allocation8 + $0x948] sm:$0xff] }
 0x2dd   :  { %7220 = vmatpush1.bf16.msra.mxu0 %v9028_v18  ;;  %7251 = vmatprep.mubr.bf16.mxu0 %v10090_v35  ;;  %v9076_v18 = vcombine.low %v4046_v12, %v4050_v13  ;;  %v4242_v8 = vld [vmem:[#allocation8 + $0x968] sm:$0xff] }
 0x2de   :  { %v10144_v25 = vpop.f32.mrf.mxu0  ;;  %7221 = vmatprep.subr.bf16.mxu0 %v9021_v23  ;;  %v10146_v36 = vpop.f32.mrf.mxu1  ;;  %v9069_v23 = vcombine.high %v4038_v17, %v4042_v33  ;;  %v4198_v39 = vld [vmem:[#allocation8 + $0x808] sm:$0xff] }
 0x2e0   :  { %v3775_v30 = vpop.f32.mrf.mxu0  ;;  %v3816_v58 = vpop.f32.mrf.mxu1 }
 0x2e1   :  { %7222 = vmatpush1.bf16.msra.mxu0 %v9020_v0  ;;  %v9068_v0 = vcombine.low %v4038_v17, %v4042_v33  ;;  %v9060_v30 = vcombine.low %v4030_v22, %v4034_v61  ;;  %v9053_v58 = vcombine.high %v4022_v29, %v4026_v45 }
 0x2e2   :  { %v3776_v47 = vpop.f32.mrf.mxu0  ;;  %7223 = vmatprep.subr.bf16.mxu0 %v9013_v27  ;;  %v3817_v59 = vpop.f32.mrf.mxu1  ;;  %v9061_v27 = vcombine.high %v4030_v22, %v4034_v61 }
 0x2e3   :  { %v4018_v47 = vld [vmem:[#allocation8 + $0x268] sm:$0xff] }
 0x2e5   :  { %7224 = vmatpush1.bf16.msra.mxu0 %v9012_v34  ;;  %v4014_v34 = vld [vmem:[#allocation8 + $0x248] sm:$0xff] }
 0x2e6   :  { %7225 = vmatprep.subr.bf16.mxu0 %v9005_v32  ;;  %v9052_v32 = vcombine.low %v4022_v29, %v4026_v45  ;;  %v9045_v59 = vcombine.high %v4014_v34, %v4018_v47  ;;  %v9044_v46 = vcombine.low %v4014_v34, %v4018_v47  ;;  %v4226_v34 = vld [vmem:[#allocation8 + $0x8e8] sm:$0xff] }
 0x2e9   :  { %7226 = vmatpush1.bf16.msra.mxu0 %v9004_v42  ;;  %v4010_v42 = vld [vmem:[#allocation8 + $0x228] sm:$0xff] }
 0x2ea   :  { %7227 = vmatprep.subr.bf16.mxu0 %v8997_v44  ;;  %v675_v44 = vsub.s32 7, %v10023_v60  ;;  %v9037_v49 = vcombine.high %v4006_v41, %v4010_v42 }
 0x2ed   :  { %7228 = vmatpush1.bf16.msra.mxu0 %v8996_v38  ;;  %v9748_v38 = vld [vmem:[#allocation7] sm:$0xff] }
 0x2ee   :  { %7229 = vmatprep.subr.bf16.mxu0 %v8989_v51  ;;  %v672_v51 = vrot.slane %v9748_v38, %v671_v37 }
 0x2f0   :  { %v3772_v62 = vadd.f32 %v10138_v31, %v672_v51 }
 0x2f1   :  { %7230 = vmatpush1.bf16.msra.mxu0 %v8988_v54  ;;  %v676_v54 = vrot.slane %v9748_v38, %v675_v44  ;;  %v4210_v38 = vld [vmem:[#allocation8 + $0x868] sm:$0xff] }
 0x2f2   :  { %7231 = vmatprep.subr.bf16.mxu0 %v8981_v55  ;;  %v9036_v55 = vcombine.low %v4006_v41, %v4010_v42  ;;  %v4218_v41 = vld [vmem:[#allocation8 + $0x8a8] sm:$0xff] }
 0x2f3   :  { %v3774_v3 = vadd.f32 %v10144_v25, %v676_v54  ;;  %v4202_v54 = vld [vmem:[#allocation8 + $0x828] sm:$0xff] }
 0x2f5   :  { %7232 = vmatpush1.bf16.msra.mxu0 %v8980_v50  ;;  %v4246_v50 = vld [vmem:[#allocation8 + $0x988] sm:$0xff] }
 0x2f6   :  { %7233 = vmatprep.subr.bf16.mxu0 %v8973_v2  ;;  %v4250_v2 = vld [vmem:[#allocation8 + $0x9a8] sm:$0xff] }
 0x2f7   :  { %v9276_v31 = vcombine.low %v4246_v50, %v4250_v2 }
 0x2f9   :  { %7234 = vmatpush1.bf16.msra.mxu0 %v8972_v20  ;;  %v9277_v20 = vcombine.high %v4246_v50, %v4250_v2  ;;  %v9229_v2 = vcombine.high %v4198_v39, %v4202_v54 }
 0x2fa   :  { %7235 = vmatprep.subr.bf16.mxu0 %v9093_v4  ;;  %v3813_v4 = vadd.f32 %v10141_v26, %v3772_v62  ;;  %v4230_v26 = vld [vmem:[#allocation8 + $0x908] sm:$0xff] }
 0x2fd   :  { %7236 = vmatpush2.bf16.msra.mxu0 %v9092_v9 }
 0x2fe   :  { %7237 = vmatprep.subr.bf16.mxu0 %v9085_v11  ;;  %v3815_v11 = vadd.f32 %v10146_v36, %v3774_v3  ;;  %v9268_v36 = vcombine.low %v4238_v6, %v4242_v8 }
 0x301   :  { %7238 = vmatpush2.bf16.msra.mxu0 %v9084_v14  ;;  %v9269_v14 = vcombine.high %v4238_v6, %v4242_v8  ;;  %v9228_v8 = vcombine.low %v4198_v39, %v4202_v54  ;;  %v4278_v54 = vld [vmem:[#allocation8 + $0xa88] sm:$0xff] }
 0x302   :  { %7239 = vmatprep.subr.bf16.mxu0 %v9077_v15 }
 0x305   :  { %7240 = vmatpush2.bf16.msra.mxu0 %v9076_v18  ;;  %v4234_v18 = vld [vmem:[#allocation8 + $0x928] sm:$0xff] }
 0x306   :  { %7241 = vmatprep.subr.bf16.mxu0 %v9069_v23  ;;  %v9261_v29 = vcombine.high %v4230_v26, %v4234_v18  ;;  %v9260_v47 = vcombine.low %v4230_v26, %v4234_v18  ;;  %v4114_v26 = vld [vmem:[#allocation8 + $0x568] sm:$0xff] }
 0x309   :  { %7242 = vmatpush2.bf16.msra.mxu0 %v9068_v0 }
 0x30a   :  { %7243 = vmatprep.subr.bf16.mxu0 %v9061_v27 }
 0x30d   :  { %7244 = vmatpush2.bf16.msra.mxu0 %v9060_v30 }
 0x30e   :  { %7245 = vmatprep.subr.bf16.mxu0 %v9053_v58  ;;  %v4222_v58 = vld [vmem:[#allocation8 + $0x8c8] sm:$0xff] }
 0x30f   :  { %v9252_v42 = vcombine.low %v4222_v58, %v4226_v34 }
 0x311   :  { %7246 = vmatpush2.bf16.msra.mxu0 %v9052_v32  ;;  %v9253_v32 = vcombine.high %v4222_v58, %v4226_v34  ;;  %v4294_v58 = vld [vmem:[#allocation8 + $0xb08] sm:$0xff] }
 0x312   :  { %7247 = vmatprep.subr.bf16.mxu0 %v9045_v59  ;;  %v4214_v59 = vld [vmem:[#allocation8 + $0x888] sm:$0xff] }
 0x313   :  { %v9244_v51 = vcombine.low %v4214_v59, %v4218_v41  ;;  %v4298_v34 = vld [vmem:[#allocation8 + $0xb28] sm:$0xff] }
 0x315   :  { %7248 = vmatpush2.bf16.msra.mxu0 %v9044_v46  ;;  %v9245_v46 = vcombine.high %v4214_v59, %v4218_v41  ;;  %v4286_v41 = vld [vmem:[#allocation8 + $0xac8] sm:$0xff] }
 0x316   :  { %7249 = vmatprep.subr.bf16.mxu0 %v9037_v49  ;;  %v4206_v49 = vld [vmem:[#allocation8 + $0x848] sm:$0xff] }
 0x317   :  { %v9237_v52 = vcombine.high %v4206_v49, %v4210_v38  ;;  %v9236_v62 = vcombine.low %v4206_v49, %v4210_v38  ;;  %v9324_v49 = vcombine.low %v4294_v58, %v4298_v34  ;;  %v4086_v38 = vld [vmem:[#allocation8 + $0x488] sm:$0xff] }
 0x319   :  { %7250 = vmatpush2.bf16.msra.mxu0 %v9036_v55 }
 0x31a   :  { %7301 = vmatprep.subr.bf16.mxu0 %v9285_v56 }
 0x31c   :  { %v3853_v9 = vpop.f32.mrf.mxu0  ;;  %7252 = vmatmul.mubr.bf16.vlgmr.msra.gmra.mxu0 %v10111_v21  ;;  %v3894_v13 = vpop.f32.mrf.mxu1 }
 0x31d   :  { %v3854_v12 = vadd.f32 %v3853_v9, %v3813_v4  ;;  %7302 = vmatpush1.bf16.msra.mxu0 %v9284_v7  ;;  %7333 = vmatprep.mubr.bf16.mxu0 %v10124_v53  ;;  %v4318_v7 = vld [vmem:[#allocation8 + $0xbc8] sm:$0xff] }
 0x31e   :  { %v3855_v25 = vpop.f32.mrf.mxu0  ;;  %7303 = vmatprep.subr.bf16.mxu0 %v9277_v20  ;;  %v3896_v33 = vpop.f32.mrf.mxu1  ;;  %v4322_v20 = vld [vmem:[#allocation8 + $0xbe8] sm:$0xff] }
 0x31f   :  { %v3895_v15 = vadd.f32 %v3894_v13, %v3854_v12  ;;  %v3856_v17 = vadd.f32 %v3855_v25, %v3815_v11  ;;  %v4118_v9 = vld [vmem:[#allocation8 + $0x588] sm:$0xff]  ;;  %v9349_v12 = vcombine.high %v4318_v7, %v4322_v20 }
 0x320   :  { %v3857_v23 = vpop.f32.mrf.mxu0  ;;  %v3898_v0 = vpop.f32.mrf.mxu1  ;;  %v4122_v11 = vld [vmem:[#allocation8 + $0x5a8] sm:$0xff] }
 0x321   :  { %v3907_v22 = vmul.f32 0.5, %v3895_v15  ;;  %v3897_v61 = vadd.f32 %v3896_v33, %v3856_v17  ;;  %7304 = vmatpush1.bf16.msra.mxu0 %v9276_v31  ;;  %v4310_v31 = vld [vmem:[#allocation8 + $0xb88] sm:$0xff]  ;;  %v9149_v15 = vcombine.high %v4118_v9, %v4122_v11  ;;  %v9348_v17 = vcombine.low %v4318_v7, %v4322_v20 }
 0x322   :  { %v3858_v27 = vpop.f32.mrf.mxu0  ;;  %7305 = vmatprep.subr.bf16.mxu0 %v9269_v14  ;;  %v3899_v30 = vpop.f32.mrf.mxu1  ;;  %v4314_v25 = vld [vmem:[#allocation8 + $0xba8] sm:$0xff]  ;;  %v9148_v23 = vcombine.low %v4118_v9, %v4122_v11 }
 0x323   :  { %9723 = vtanh.f32 %v3907_v22  ;;  %v3908_v45 = vmul.f32 0.5, %v3897_v61  ;;  %v4110_v33 = vld [vmem:[#allocation8 + $0x548] sm:$0xff]  ;;  %v9341_v18 = vcombine.high %v4310_v31, %v4314_v25 }
 0x324   :  { %v4302_v22 = vld [vmem:[#allocation8 + $0xb48] sm:$0xff]  ;;  %v9141_v0 = vcombine.high %v4110_v33, %v4114_v26  ;;  %v9140_v30 = vcombine.low %v4110_v33, %v4114_v26 }
 0x325   :  { %9725 = vtanh.f32 %v3908_v45  ;;  %7306 = vmatpush1.bf16.msra.mxu0 %v9268_v36  ;;  %v4306_v61 = vld [vmem:[#allocation8 + $0xb68] sm:$0xff]  ;;  %v9340_v36 = vcombine.low %v4310_v31, %v4314_v25 }
 0x326   :  { %7307 = vmatprep.subr.bf16.mxu0 %v9261_v29  ;;  %v4102_v27 = vld [vmem:[#allocation8 + $0x508] sm:$0xff]  ;;  %v9333_v45 = vcombine.high %v4302_v22, %v4306_v61  ;;  %v9332_v16 = vcombine.low %v4302_v22, %v4306_v61  ;;  %v3999_v61 = vld [vmem:[#allocation8 + $0x1d0] sm:$0xff] }
 0x327   :  { %v4106_v29 = vld [vmem:[#allocation8 + $0x528] sm:$0xff] }
 0x328   :  { %v9133_v63 = vcombine.high %v4102_v27, %v4106_v29  ;;  %v9132_v59 = vcombine.low %v4102_v27, %v4106_v29  ;;  %v4270_v20 = vld [vmem:[#allocation8 + $0xa48] sm:$0xff] }
 0x329   :  { %7308 = vmatpush1.bf16.msra.mxu0 %v9260_v47  ;;  %v4098_v47 = vld [vmem:[#allocation8 + $0x4e8] sm:$0xff] }
 0x32a   :  { %7309 = vmatprep.subr.bf16.mxu0 %v9253_v32  ;;  %v9325_v32 = vcombine.high %v4294_v58, %v4298_v34  ;;  %v4070_v9 = vld [vmem:[#allocation8 + $0x408] sm:$0xff] }
 0x32b   :  { %v4074_v11 = vld [vmem:[#allocation8 + $0x428] sm:$0xff] }
 0x32c   :  { %v4262_v25 = vld [vmem:[#allocation8 + $0xa08] sm:$0xff]  ;;  %v9100_v22 = vcombine.low %v4070_v9, %v4074_v11 }
 0x32d   :  { %7310 = vmatpush1.bf16.msra.mxu0 %v9252_v42  ;;  %v4290_v42 = vld [vmem:[#allocation8 + $0xae8] sm:$0xff] }
 0x32e   :  { %7311 = vmatprep.subr.bf16.mxu0 %v9245_v46  ;;  %v4190_v26 = vld [vmem:[#allocation8 + $0x7c8] sm:$0xff] }
 0x32f   :  { %v4182_v29 = vld [vmem:[#allocation8 + $0x788] sm:$0xff] }
 0x330   :  { %v9724_v55 = vpop.eup %9723 }
 0x331   :  { %v3923_v56 = vmul.f32 0.5, %v9724_v55  ;;  %7312 = vmatpush1.bf16.msra.mxu0 %v9244_v51  ;;  %v4090_v51 = vld [vmem:[#allocation8 + $0x4a8] sm:$0xff] }
 0x332   :  { %v9726_v50 = vpop.eup %9725  ;;  %7313 = vmatprep.subr.bf16.mxu0 %v9237_v52  ;;  %v9317_v52 = vcombine.high %v4286_v41, %v4290_v42  ;;  %v4282_v55 = vld [vmem:[#allocation8 + $0xaa8] sm:$0xff]  ;;  %v9116_v7 = vcombine.low %v4086_v38, %v4090_v51 }
 0x333   :  { %v3924_v3 = vmul.f32 0.5, %v9726_v50  ;;  %v3931_v4 = vadd.f32 0.5, %v3923_v56  ;;  %v9117_v56 = vcombine.high %v4086_v38, %v4090_v51  ;;  %v4078_v50 = vld [vmem:[#allocation8 + $0x448] sm:$0xff]  ;;  %v3983_v38 = vld [vmem:[#allocation8 + $0x150] sm:$0xff] }
 0x334   :  { %v3987_v51 = vld [vmem:[#allocation8 + $0x170] sm:$0xff] }
 0x335   :  { %v3932_v6 = vadd.f32 0.5, %v3924_v3  ;;  %7314 = vmatpush1.bf16.msra.mxu0 %v9236_v62  ;;  %v10162_v14 = vpack.c.bf16 %v3931_v4, %v3931_v4  ;;  %v9316_v62 = vcombine.low %v4286_v41, %v4290_v42  ;;  %v9309_v3 = vcombine.high %v4278_v54, %v4282_v55  ;;  %v4274_v4 = vld [vmem:[#allocation8 + $0xa68] sm:$0xff] }
 0x336   :  { %7315 = vmatprep.subr.bf16.mxu0 %v9229_v2  ;;  %v4082_v2 = vld [vmem:[#allocation8 + $0x468] sm:$0xff]  ;;  %v9300_v33 = vcombine.low %v4270_v20, %v4274_v4 }
 0x337   :  { %v10160_v13 = vpack.c.bf16 %v3932_v6, %v3932_v6  ;;  %v9109_v6 = vcombine.high %v4078_v50, %v4082_v2  ;;  %v9108_v31 = vcombine.low %v4078_v50, %v4082_v2  ;;  %v4178_v41 = vld [vmem:[#allocation8 + $0x768] sm:$0xff]  ;;  %v9015_v2 = vcombine.high %v3983_v38, %v3987_v51 }
 0x339   :  { %7210 = vmatprep.mubr.bf16.mxu1 %v10160_v13  ;;  %7316 = vmatpush1.bf16.msra.mxu0 %v9228_v8  ;;  %v9308_v8 = vcombine.low %v4278_v54, %v4282_v55 }
 0x33a   :  { %7211 = vmatmul.mubr.bf16.vlgmr.msra.gmra.mxu1 %v10162_v14  ;;  %7317 = vmatprep.subr.bf16.mxu0 %v9349_v12  ;;  %v9301_v12 = vcombine.high %v4270_v20, %v4274_v4  ;;  %v3975_v4 = vld [vmem:[#allocation8 + $0x110] sm:$0xff] }
 0x33b   :  { %7261 = vmatpush1.bf16.msra.mxu1 %v9156_v1  ;;  %7292 = vmatprep.mubr.bf16.mxu1 %v10093_v40  ;;  %v4094_v1 = vld [vmem:[#allocation8 + $0x4c8] sm:$0xff] }
 0x33c   :  { %7262 = vmatprep.subr.bf16.mxu1 %v9149_v15  ;;  %v9125_v46 = vcombine.high %v4094_v1, %v4098_v47  ;;  %v9124_v39 = vcombine.low %v4094_v1, %v4098_v47  ;;  %v4266_v15 = vld [vmem:[#allocation8 + $0xa28] sm:$0xff] }
 0x33d   :  { %7318 = vmatpush2.bf16.msra.mxu0 %v9348_v17  ;;  %v9101_v17 = vcombine.high %v4070_v9, %v4074_v11  ;;  %v9292_v27 = vcombine.low %v4262_v25, %v4266_v15 }
 0x33e   :  { %7319 = vmatprep.subr.bf16.mxu0 %v9341_v18  ;;  %v4194_v18 = vld [vmem:[#allocation8 + $0x7e8] sm:$0xff] }
 0x33f   :  { %7263 = vmatpush1.bf16.msra.mxu1 %v9148_v23  ;;  %v9293_v23 = vcombine.high %v4262_v25, %v4266_v15  ;;  %v9220_v34 = vcombine.low %v4190_v26, %v4194_v18  ;;  %v4158_v25 = vld [vmem:[#allocation8 + $0x6c8] sm:$0xff] }
 0x340   :  { %7264 = vmatprep.subr.bf16.mxu1 %v9141_v0  ;;  %v4003_v0 = vld [vmem:[#allocation8 + $0x1f0] sm:$0xff]  ;;  %v4162_v15 = vld [vmem:[#allocation8 + $0x6e8] sm:$0xff] }
 0x341   :  { %7320 = vmatpush2.bf16.msra.mxu0 %v9340_v36  ;;  %v9221_v36 = vcombine.high %v4190_v26, %v4194_v18  ;;  %v9031_v58 = vcombine.high %v3999_v61, %v4003_v0 }
 0x342   :  { %7321 = vmatprep.subr.bf16.mxu0 %v9333_v45  ;;  %v4186_v45 = vld [vmem:[#allocation8 + $0x7a8] sm:$0xff] }
 0x343   :  { %7265 = vmatpush1.bf16.msra.mxu1 %v9140_v30  ;;  %v4453_v30 = vld [vmem:[#allocation10] sm:$0xff]  ;;  %v9213_v1 = vcombine.high %v4182_v29, %v4186_v45 }
 0x344   :  { %7266 = vmatprep.subr.bf16.mxu1 %v9133_v63  ;;  %v3991_v63 = vld [vmem:[#allocation8 + $0x190] sm:$0xff]  ;;  %v4458_v47 = vrot.slane %v4453_v30, %v647_v5 }
 0x345   :  { %7322 = vmatpush2.bf16.msra.mxu0 %v9332_v16  ;;  %v3995_v16 = vld [vmem:[#allocation8 + $0x1b0] sm:$0xff] }
 0x346   :  { %7323 = vmatprep.subr.bf16.mxu0 %v9325_v32  ;;  %v9030_v32 = vcombine.low %v3999_v61, %v4003_v0  ;;  %v9023_v42 = vcombine.high %v3991_v63, %v3995_v16  ;;  %v9022_v5 = vcombine.low %v3991_v63, %v3995_v16  ;;  %v9189_v61 = vcombine.high %v4158_v25, %v4162_v15  ;;  %v4142_v16 = vld [vmem:[#allocation8 + $0x648] sm:$0xff] }
 0x347   :  { %7267 = vmatpush1.bf16.msra.mxu1 %v9132_v59  ;;  %v4174_v59 = vld [vmem:[#allocation8 + $0x748] sm:$0xff] }
 0x348   :  { %7268 = vmatprep.subr.bf16.mxu1 %v9125_v46  ;;  %v9212_v46 = vcombine.low %v4182_v29, %v4186_v45  ;;  %v9204_v20 = vcombine.low %v4174_v59, %v4178_v41  ;;  %v9188_v45 = vcombine.low %v4158_v25, %v4162_v15  ;;  %v4059_v25 = vld [vmem:[#allocation8 + $0x3b0] sm:$0xff] }
 0x349   :  { %7324 = vmatpush2.bf16.msra.mxu0 %v9324_v49  ;;  %v4462_v49 = vrot.slane %v4453_v30, %v651_v10  ;;  %v3959_v30 = vld [vmem:[#allocation8 + $0x90] sm:$0xff] }
 0x34a   :  { %7325 = vmatprep.subr.bf16.mxu0 %v9317_v52 }
 0x34b   :  { %7269 = vmatpush1.bf16.msra.mxu1 %v9124_v39  ;;  %v9205_v39 = vcombine.high %v4174_v59, %v4178_v41  ;;  %v3951_v59 = vld [vmem:[#allocation8 + $0x50] sm:$0xff] }
 0x34c   :  { %7270 = vmatprep.subr.bf16.mxu1 %v9117_v56  ;;  %v4166_v56 = vld [vmem:[#allocation8 + $0x708] sm:$0xff]  ;;  %v3955_v41 = vld [vmem:[#allocation8 + $0x70] sm:$0xff] }
 0x34d   :  { %7326 = vmatpush2.bf16.msra.mxu0 %v9316_v62  ;;  %v4170_v62 = vld [vmem:[#allocation8 + $0x728] sm:$0xff] }
 0x34e   :  { %7327 = vmatprep.subr.bf16.mxu0 %v9309_v3  ;;  %v9197_v9 = vcombine.high %v4166_v56, %v4170_v62  ;;  %v9196_v18 = vcombine.low %v4166_v56, %v4170_v62  ;;  %v4382_v56 = vld [vmem:[#allocation8 + $0xdc8] sm:$0xff] }
 0x34f   :  { %7271 = vmatpush1.bf16.msra.mxu1 %v9116_v7  ;;  %v4386_v62 = vld [vmem:[#allocation8 + $0xde8] sm:$0xff] }
 0x350   :  { %7272 = vmatprep.subr.bf16.mxu1 %v9109_v6  ;;  %v3979_v6 = vld [vmem:[#allocation8 + $0x130] sm:$0xff] }
 0x351   :  { %7328 = vmatpush2.bf16.msra.mxu0 %v9308_v8  ;;  %v9006_v0 = vcombine.low %v3975_v4, %v3979_v6 }
 0x352   :  { %7329 = vmatprep.subr.bf16.mxu0 %v9301_v12 }
 0x353   :  { %7273 = vmatpush1.bf16.msra.mxu1 %v9108_v31  ;;  %v9014_v31 = vcombine.low %v3983_v38, %v3987_v51  ;;  %v4138_v38 = vld [vmem:[#allocation8 + $0x628] sm:$0xff]  ;;  %v8983_v51 = vcombine.high %v3951_v59, %v3955_v41 }
 0x354   :  { %7274 = vmatprep.subr.bf16.mxu1 %v9101_v17 }
 0x355   :  { %7330 = vmatpush2.bf16.msra.mxu0 %v9300_v33  ;;  %v9007_v33 = vcombine.high %v3975_v4, %v3979_v6  ;;  %v4374_v6 = vld [vmem:[#allocation8 + $0xd88] sm:$0xff] }
 0x356   :  { %7331 = vmatprep.subr.bf16.mxu0 %v9293_v23  ;;  %v3967_v23 = vld [vmem:[#allocation8 + $0xd0] sm:$0xff] }
 0x357   :  { %7275 = vmatpush1.bf16.msra.mxu1 %v9100_v22  ;;  %v3971_v22 = vld [vmem:[#allocation8 + $0xf0] sm:$0xff] }
 0x358   :  { %7276 = vmatprep.subr.bf16.mxu1 %v9221_v36  ;;  %v4150_v36 = vld [vmem:[#allocation8 + $0x688] sm:$0xff]  ;;  %v8999_v29 = vcombine.high %v3967_v23, %v3971_v22  ;;  %v8998_v63 = vcombine.low %v3967_v23, %v3971_v22  ;;  %v4047_v22 = vld [vmem:[#allocation8 + $0x350] sm:$0xff] }
 0x359   :  { %7332 = vmatpush2.bf16.msra.mxu0 %v9292_v27  ;;  %v4154_v27 = vld [vmem:[#allocation8 + $0x6a8] sm:$0xff] }
 0x35a   :  { %7383 = vmatprep.subr.bf16.mxu0 %v9031_v58  ;;  %v3963_v58 = vld [vmem:[#allocation8 + $0xb0] sm:$0xff] }
 0x35b   :  { %7277 = vmatpush2.bf16.msra.mxu1 %v9220_v34  ;;  %v9181_v34 = vcombine.high %v4150_v36, %v4154_v27 }
 0x35c   :  { %v7089_v52 = vpop.f32.mrf.mxu0  ;;  %7334 = vmatmul.mubr.bf16.vlgmr.msra.gmra.mxu0 %v10136_v19  ;;  %7278 = vmatprep.subr.bf16.mxu1 %v9213_v1  ;;  %v4146_v1 = vld [vmem:[#allocation8 + $0x668] sm:$0xff] }
 0x35d   :  { %v7090_v54 = vadd.f32 %v7089_v52, %v4458_v47  ;;  %v7130_v55 = vpop.f32.mrf.mxu1  ;;  %7384 = vmatpush1.bf16.msra.mxu0 %v9030_v32  ;;  %7415 = vmatprep.mubr.bf16.mxu0 %v10090_v35  ;;  %v8991_v47 = vcombine.high %v3959_v30, %v3963_v58  ;;  %v9180_v32 = vcombine.low %v4150_v36, %v4154_v27  ;;  %v4358_v27 = vld [vmem:[#allocation8 + $0xd08] sm:$0xff] }
 0x35e   :  { %v7091_v50 = vpop.f32.mrf.mxu0  ;;  %7385 = vmatprep.subr.bf16.mxu0 %v9023_v42  ;;  %v9173_v42 = vcombine.high %v4142_v16, %v4146_v1  ;;  %v9172_v52 = vcombine.low %v4142_v16, %v4146_v1  ;;  %v4350_v1 = vld [vmem:[#allocation8 + $0xcc8] sm:$0xff] }
 0x35f   :  { %v10176_v3 = vadd.f32 %v7130_v55, %v7090_v54  ;;  %v7092_v10 = vadd.f32 %v7091_v50, %v4462_v49  ;;  %v7132_v7 = vpop.f32.mrf.mxu1  ;;  %7279 = vmatpush2.bf16.msra.mxu1 %v9212_v46  ;;  %v8990_v46 = vcombine.low %v3959_v30, %v3963_v58  ;;  %v4134_v49 = vld [vmem:[#allocation8 + $0x608] sm:$0xff]  ;;  %v3947_v54 = vld [vmem:[#allocation8 + $0x30] sm:$0xff] }
 0x360   :  { %v7093_v8 = vpop.f32.mrf.mxu0  ;;  %7280 = vmatprep.subr.bf16.mxu1 %v9205_v39  ;;  %v3943_v39 = vld [vmem:[#allocation8 + $0x10] sm:$0xff]  ;;  %v9165_v55 = vcombine.high %v4134_v49, %v4138_v38 }
 0x361   :  { %v10178_v11 = vadd.f32 %v7132_v7, %v7092_v10  ;;  %v7134_v12 = vpop.f32.mrf.mxu1  ;;  %7386 = vmatpush1.bf16.msra.mxu0 %v9022_v5  ;;  %v8982_v5 = vcombine.low %v3951_v59, %v3955_v41  ;;  %v8975_v50 = vcombine.high %v3943_v39, %v3947_v54  ;;  %v4063_v10 = vld [vmem:[#allocation8 + $0x3d0] sm:$0xff]  ;;  %v8974_v4 = vcombine.low %v3943_v39, %v3947_v54  ;;  %v4378_v8 = vld [vmem:[#allocation8 + $0xda8] sm:$0xff] }
 0x362   :  { %v7094_v17 = vpop.f32.mrf.mxu0  ;;  %7387 = vmatprep.subr.bf16.mxu0 %v9015_v2  ;;  %v9164_v2 = vcombine.low %v4134_v49, %v4138_v38  ;;  %v4067_v7 = vld [vmem:[#allocation8 + $0x3f0] sm:$0xff]  ;;  %v9412_v12 = vcombine.low %v4382_v56, %v4386_v62  ;;  %v9405_v15 = vcombine.high %v4374_v6, %v4378_v8  ;;  %v9404_v23 = vcombine.low %v4374_v6, %v4378_v8  ;;  %v4342_v38 = vld [vmem:[#allocation8 + $0xc88] sm:$0xff] }
 0x363   :  { %v7135_v26 = vpop.f32.mrf.mxu1  ;;  %7281 = vmatpush2.bf16.msra.mxu1 %v9204_v20  ;;  %v9413_v20 = vcombine.high %v4382_v56, %v4386_v62  ;;  %v9094_v17 = vcombine.low %v4063_v10, %v4067_v7  ;;  %v4039_v58 = vld [vmem:[#allocation8 + $0x310] sm:$0xff]  ;;  %v4334_v62 = vld [vmem:[#allocation8 + $0xc48] sm:$0xff] }
 0x364   :  { %7282 = vmatprep.subr.bf16.mxu1 %v9197_v9  ;;  %v9095_v9 = vcombine.high %v4063_v10, %v4067_v7  ;;  %v4370_v26 = vld [vmem:[#allocation8 + $0xd68] sm:$0xff]  ;;  %v4031_v41 = vld [vmem:[#allocation8 + $0x2d0] sm:$0xff] }
 0x365   :  { %7388 = vmatpush1.bf16.msra.mxu0 %v9014_v31  ;;  %v4055_v31 = vld [vmem:[#allocation8 + $0x390] sm:$0xff]  ;;  %v4326_v8 = vld [vmem:[#allocation8 + $0xc08] sm:$0xff] }
 0x366   :  { %7389 = vmatprep.subr.bf16.mxu0 %v9007_v33  ;;  %v4366_v33 = vld [vmem:[#allocation8 + $0xd48] sm:$0xff]  ;;  %v9086_v36 = vcombine.low %v4055_v31, %v4059_v25  ;;  %v4023_v54 = vld [vmem:[#allocation8 + $0x290] sm:$0xff] }
 0x367   :  { %7283 = vmatpush2.bf16.msra.mxu1 %v9196_v18  ;;  %v9087_v18 = vcombine.high %v4055_v31, %v4059_v25  ;;  %v9396_v30 = vcombine.low %v4366_v33, %v4370_v26  ;;  %v4015_v7 = vld [vmem:[#allocation8 + $0x250] sm:$0xff] }
 0x368   :  { %7284 = vmatprep.subr.bf16.mxu1 %v9189_v61  ;;  %v4051_v61 = vld [vmem:[#allocation8 + $0x370] sm:$0xff] }
 0x369   :  { %7390 = vmatpush1.bf16.msra.mxu0 %v9006_v0  ;;  %v9397_v0 = vcombine.high %v4366_v33, %v4370_v26  ;;  %v9078_v16 = vcombine.low %v4047_v22, %v4051_v61  ;;  %v4007_v25 = vld [vmem:[#allocation8 + $0x210] sm:$0xff]  ;;  %v4446_v26 = vld [vmem:[#allocation8 + $0xfc8] sm:$0xff] }
 0x36a   :  { %7391 = vmatprep.subr.bf16.mxu0 %v8999_v29  ;;  %v4362_v29 = vld [vmem:[#allocation8 + $0xd28] sm:$0xff] }
 0x36b   :  { %7285 = vmatpush2.bf16.msra.mxu1 %v9188_v45  ;;  %v9079_v45 = vcombine.high %v4047_v22, %v4051_v61  ;;  %v9388_v59 = vcombine.low %v4358_v27, %v4362_v29  ;;  %v4255_v61 = vld [vmem:[#allocation8 + $0x9d0] sm:$0xff] }
 0x36c   :  { %7286 = vmatprep.subr.bf16.mxu1 %v9181_v34  ;;  %v4043_v34 = vld [vmem:[#allocation8 + $0x330] sm:$0xff] }
 0x36d   :  { %7392 = vmatpush1.bf16.msra.mxu0 %v8998_v63  ;;  %v9389_v63 = vcombine.high %v4358_v27, %v4362_v29  ;;  %v9070_v49 = vcombine.low %v4039_v58, %v4043_v34  ;;  %v4438_v29 = vld [vmem:[#allocation8 + $0xf88] sm:$0xff] }
 0x36e   :  { %7393 = vmatprep.subr.bf16.mxu0 %v8991_v47  ;;  %v4354_v47 = vld [vmem:[#allocation8 + $0xce8] sm:$0xff] }
 0x36f   :  { %7287 = vmatpush2.bf16.msra.mxu1 %v9180_v32  ;;  %v9071_v32 = vcombine.high %v4039_v58, %v4043_v34  ;;  %v9380_v39 = vcombine.low %v4350_v1, %v4354_v47  ;;  %v4247_v34 = vld [vmem:[#allocation8 + $0x990] sm:$0xff] }
 0x370   :  { %7288 = vmatprep.subr.bf16.mxu1 %v9173_v42  ;;  %v4035_v42 = vld [vmem:[#allocation8 + $0x2f0] sm:$0xff] }
 0x371   :  { %7394 = vmatpush1.bf16.msra.mxu0 %v8990_v46  ;;  %v9381_v46 = vcombine.high %v4350_v1, %v4354_v47  ;;  %v9062_v56 = vcombine.low %v4031_v41, %v4035_v42  ;;  %v4430_v47 = vld [vmem:[#allocation8 + $0xf48] sm:$0xff] }
 0x372   :  { %7395 = vmatprep.subr.bf16.mxu0 %v8983_v51  ;;  %v4346_v51 = vld [vmem:[#allocation8 + $0xca8] sm:$0xff] }
 0x373   :  { %7289 = vmatpush2.bf16.msra.mxu1 %v9172_v52  ;;  %v9063_v52 = vcombine.high %v4031_v41, %v4035_v42  ;;  %v9372_v10 = vcombine.low %v4342_v38, %v4346_v51  ;;  %v4239_v42 = vld [vmem:[#allocation8 + $0x950] sm:$0xff] }
 0x374   :  { %7290 = vmatprep.subr.bf16.mxu1 %v9165_v55  ;;  %v4027_v55 = vld [vmem:[#allocation8 + $0x2b0] sm:$0xff] }
 0x375   :  { %7396 = vmatpush1.bf16.msra.mxu0 %v8982_v5  ;;  %v9373_v5 = vcombine.high %v4342_v38, %v4346_v51  ;;  %v9054_v6 = vcombine.low %v4023_v54, %v4027_v55 }
 0x376   :  { %7397 = vmatprep.subr.bf16.mxu0 %v8975_v50  ;;  %v4338_v50 = vld [vmem:[#allocation8 + $0xc68] sm:$0xff] }
 0x377   :  { %7291 = vmatpush2.bf16.msra.mxu1 %v9164_v2  ;;  %v9055_v2 = vcombine.high %v4023_v54, %v4027_v55  ;;  %v9364_v31 = vcombine.low %v4334_v62, %v4338_v50  ;;  %v4426_v54 = vld [vmem:[#allocation8 + $0xf28] sm:$0xff] }
 0x378   :  { %7342 = vmatprep.subr.bf16.mxu1 %v9413_v20  ;;  %v4019_v20 = vld [vmem:[#allocation8 + $0x270] sm:$0xff] }
 0x379   :  { %7398 = vmatpush1.bf16.msra.mxu0 %v8974_v4  ;;  %v9365_v4 = vcombine.high %v4334_v62, %v4338_v50  ;;  %v9046_v33 = vcombine.low %v4015_v7, %v4019_v20  ;;  %v4231_v50 = vld [vmem:[#allocation8 + $0x910] sm:$0xff] }
 0x37a   :  { %7293 = vmatmul.mubr.bf16.vlgmr.msra.gmra.mxu1 %v10113_v24  ;;  %7399 = vmatprep.subr.bf16.mxu0 %v9095_v9  ;;  %v4330_v9 = vld [vmem:[#allocation8 + $0xc28] sm:$0xff] }
 0x37b   :  { %7343 = vmatpush1.bf16.msra.mxu1 %v9412_v12  ;;  %7374 = vmatprep.mubr.bf16.mxu1 %v10160_v13  ;;  %v9047_v12 = vcombine.high %v4015_v7, %v4019_v20  ;;  %v9356_v22 = vcombine.low %v4326_v8, %v4330_v9  ;;  %v4414_v20 = vld [vmem:[#allocation8 + $0xec8] sm:$0xff] }
 0x37c   :  { %7344 = vmatprep.subr.bf16.mxu1 %v9405_v15  ;;  %v4011_v15 = vld [vmem:[#allocation8 + $0x230] sm:$0xff] }
 0x37d   :  { %7400 = vmatpush2.bf16.msra.mxu0 %v9094_v17  ;;  %v9357_v17 = vcombine.high %v4326_v8, %v4330_v9  ;;  %v9038_v27 = vcombine.low %v4007_v25, %v4011_v15 }
 0x37e   :  { %7401 = vmatprep.subr.bf16.mxu0 %v9087_v18  ;;  %v4450_v18 = vld [vmem:[#allocation8 + $0xfe8] sm:$0xff] }
 0x37f   :  { %7345 = vmatpush1.bf16.msra.mxu1 %v9404_v23  ;;  %v9039_v23 = vcombine.high %v4007_v25, %v4011_v15  ;;  %v9476_v58 = vcombine.low %v4446_v26, %v4450_v18  ;;  %v4406_v15 = vld [vmem:[#allocation8 + $0xe88] sm:$0xff] }
 0x380   :  { %7346 = vmatprep.subr.bf16.mxu1 %v9397_v0  ;;  %v4259_v0 = vld [vmem:[#allocation8 + $0x9f0] sm:$0xff] }
 0x381   :  { %7402 = vmatpush2.bf16.msra.mxu0 %v9086_v36  ;;  %v9477_v36 = vcombine.high %v4446_v26, %v4450_v18  ;;  %v9286_v1 = vcombine.low %v4255_v61, %v4259_v0  ;;  %v4215_v18 = vld [vmem:[#allocation8 + $0x890] sm:$0xff] }
 0x382   :  { %7403 = vmatprep.subr.bf16.mxu0 %v9079_v45  ;;  %v4442_v45 = vld [vmem:[#allocation8 + $0xfa8] sm:$0xff] }
 0x383   :  { %7347 = vmatpush1.bf16.msra.mxu1 %v9396_v30  ;;  %v9287_v30 = vcombine.high %v4255_v61, %v4259_v0  ;;  %v9468_v41 = vcombine.low %v4438_v29, %v4442_v45  ;;  %v4398_v0 = vld [vmem:[#allocation8 + $0xe48] sm:$0xff] }
 0x384   :  { %7348 = vmatprep.subr.bf16.mxu1 %v9389_v63  ;;  %v4251_v63 = vld [vmem:[#allocation8 + $0x9b0] sm:$0xff] }
 0x385   :  { %7404 = vmatpush2.bf16.msra.mxu0 %v9078_v16  ;;  %v9469_v16 = vcombine.high %v4438_v29, %v4442_v45  ;;  %v4207_v45 = vld [vmem:[#allocation8 + $0x850] sm:$0xff] }
 0x386   :  { %7405 = vmatprep.subr.bf16.mxu0 %v9071_v32  ;;  %v4434_v32 = vld [vmem:[#allocation8 + $0xf68] sm:$0xff] }
 0x387   :  { %7349 = vmatpush1.bf16.msra.mxu1 %v9388_v59  ;;  %v9279_v59 = vcombine.high %v4247_v34, %v4251_v63  ;;  %v9461_v38 = vcombine.high %v4430_v47, %v4434_v32  ;;  %v9460_v62 = vcombine.low %v4430_v47, %v4434_v32  ;;  %v4199_v32 = vld [vmem:[#allocation8 + $0x810] sm:$0xff] }
 0x388   :  { %7350 = vmatprep.subr.bf16.mxu1 %v9381_v46  ;;  %v4243_v46 = vld [vmem:[#allocation8 + $0x970] sm:$0xff] }
 0x389   :  { %7406 = vmatpush2.bf16.msra.mxu0 %v9070_v49  ;;  %v9270_v7 = vcombine.low %v4239_v42, %v4243_v46 }
 0x38a   :  { %7407 = vmatprep.subr.bf16.mxu0 %v9063_v52  ;;  %v9278_v52 = vcombine.low %v4247_v34, %v4251_v63  ;;  %v4390_v63 = vld [vmem:[#allocation8 + $0xe08] sm:$0xff] }
 0x38b   :  { %7351 = vmatpush1.bf16.msra.mxu1 %v9380_v39  ;;  %v4422_v39 = vld [vmem:[#allocation8 + $0xf08] sm:$0xff] }
 0x38c   :  { %7352 = vmatprep.subr.bf16.mxu1 %v9373_v5  ;;  %v9271_v5 = vcombine.high %v4239_v42, %v4243_v46  ;;  %v9452_v9 = vcombine.low %v4422_v39, %v4426_v54  ;;  %v4127_v46 = vld [vmem:[#allocation8 + $0x5d0] sm:$0xff] }
 0x38d   :  { %7408 = vmatpush2.bf16.msra.mxu0 %v9062_v56 }
 0x38e   :  { %7409 = vmatprep.subr.bf16.mxu0 %v9055_v2  ;;  %v4235_v2 = vld [vmem:[#allocation8 + $0x930] sm:$0xff] }
 0x38f   :  { %7353 = vmatpush1.bf16.msra.mxu1 %v9372_v10  ;;  %v9263_v8 = vcombine.high %v4231_v50, %v4235_v2  ;;  %v9262_v25 = vcombine.low %v4231_v50, %v4235_v2  ;;  %v4123_v50 = vld [vmem:[#allocation8 + $0x5b0] sm:$0xff] }
 0x390   :  { %7354 = vmatprep.subr.bf16.mxu1 %v9365_v4  ;;  %v4418_v4 = vld [vmem:[#allocation8 + $0xee8] sm:$0xff] }
 0x391   :  { %7410 = vmatpush2.bf16.msra.mxu0 %v9054_v6  ;;  %v9444_v26 = vcombine.low %v4414_v20, %v4418_v4 }
 0x392   :  { %7411 = vmatprep.subr.bf16.mxu0 %v9047_v12  ;;  %v4223_v12 = vld [vmem:[#allocation8 + $0x8d0] sm:$0xff] }
 0x393   :  { %7355 = vmatpush1.bf16.msra.mxu1 %v9364_v31  ;;  %v4227_v31 = vld [vmem:[#allocation8 + $0x8f0] sm:$0xff] }
 0x394   :  { %7356 = vmatprep.subr.bf16.mxu1 %v9357_v17  ;;  %v4410_v17 = vld [vmem:[#allocation8 + $0xea8] sm:$0xff]  ;;  %v9254_v61 = vcombine.low %v4223_v12, %v4227_v31 }
 0x395   :  { %7412 = vmatpush2.bf16.msra.mxu0 %v9046_v33  ;;  %v9255_v33 = vcombine.high %v4223_v12, %v4227_v31  ;;  %v9436_v29 = vcombine.low %v4406_v15, %v4410_v17  ;;  %v4303_v31 = vld [vmem:[#allocation8 + $0xb50] sm:$0xff] }
 0x396   :  { %7413 = vmatprep.subr.bf16.mxu0 %v9039_v23  ;;  %v4219_v23 = vld [vmem:[#allocation8 + $0x8b0] sm:$0xff] }
 0x397   :  { %7357 = vmatpush1.bf16.msra.mxu1 %v9356_v22  ;;  %v9437_v22 = vcombine.high %v4406_v15, %v4410_v17  ;;  %v9246_v34 = vcombine.low %v4215_v18, %v4219_v23  ;;  %v4103_v17 = vld [vmem:[#allocation8 + $0x510] sm:$0xff] }
 0x398   :  { %7358 = vmatprep.subr.bf16.mxu1 %v9477_v36  ;;  %v4402_v36 = vld [vmem:[#allocation8 + $0xe68] sm:$0xff] }
 0x399   :  { %7414 = vmatpush2.bf16.msra.mxu0 %v9038_v27  ;;  %v9247_v27 = vcombine.high %v4215_v18, %v4219_v23  ;;  %v9428_v47 = vcombine.low %v4398_v0, %v4402_v36  ;;  %v4295_v23 = vld [vmem:[#allocation8 + $0xb10] sm:$0xff] }
 0x39a   :  { %7465 = vmatprep.subr.bf16.mxu0 %v9287_v30  ;;  %v4211_v30 = vld [vmem:[#allocation8 + $0x870] sm:$0xff] }
 0x39b   :  { %7359 = vmatpush2.bf16.msra.mxu1 %v9476_v58  ;;  %v9429_v58 = vcombine.high %v4398_v0, %v4402_v36  ;;  %v9238_v42 = vcombine.low %v4207_v45, %v4211_v30  ;;  %v4095_v36 = vld [vmem:[#allocation8 + $0x4d0] sm:$0xff] }
 0x39c   :  { %v7171_v49 = vpop.f32.mrf.mxu0  ;;  %7416 = vmatmul.mubr.bf16.vlgmr.msra.gmra.mxu0 %v10111_v21  ;;  %7360 = vmatprep.subr.bf16.mxu1 %v9469_v16  ;;  %v4394_v16 = vld [vmem:[#allocation8 + $0xe28] sm:$0xff] }
 0x39d   :  { %v10184_v51 = vadd.f32 %v7171_v49, %v10176_v3  ;;  %7466 = vmatpush1.bf16.msra.mxu0 %v9286_v1  ;;  %7497 = vmatprep.mubr.bf16.mxu0 %v10124_v53  ;;  %v9453_v3 = vcombine.high %v4422_v39, %v4426_v54  ;;  %v9239_v1 = vcombine.high %v4207_v45, %v4211_v30  ;;  %v4131_v49 = vld [vmem:[#allocation8 + $0x5f0] sm:$0xff] }
 0x39e   :  { %v7173_v55 = vpop.f32.mrf.mxu0  ;;  %7467 = vmatprep.subr.bf16.mxu0 %v9279_v59  ;;  %v4203_v59 = vld [vmem:[#allocation8 + $0x830] sm:$0xff] }
 0x39f   :  { %v10188_v56 = vadd.f32 %v7173_v55, %v10178_v11  ;;  %7361 = vmatpush2.bf16.msra.mxu1 %v9468_v41  ;;  %v9445_v11 = vcombine.high %v4414_v20, %v4418_v4  ;;  %v9421_v41 = vcombine.high %v4390_v63, %v4394_v16  ;;  %v4319_v39 = vld [vmem:[#allocation8 + $0xbd0] sm:$0xff]  ;;  %v9159_v55 = vcombine.high %v4127_v46, %v4131_v49 }
 0x3a0   :  { %v7175_v10 = vpop.f32.mrf.mxu0  ;;  %7362 = vmatprep.subr.bf16.mxu1 %v9461_v38  ;;  %v9231_v38 = vcombine.high %v4199_v32, %v4203_v59  ;;  %v4323_v54 = vld [vmem:[#allocation8 + $0xbf0] sm:$0xff] }
 0x3a1   :  { %7468 = vmatpush1.bf16.msra.mxu0 %v9278_v52  ;;  %v9420_v52 = vcombine.low %v4390_v63, %v4394_v16  ;;  %v9351_v2 = vcombine.high %v4319_v39, %v4323_v54  ;;  %v9158_v10 = vcombine.low %v4127_v46, %v4131_v49  ;;  %v9350_v4 = vcombine.low %v4319_v39, %v4323_v54  ;;  %v4287_v30 = vld [vmem:[#allocation8 + $0xad0] sm:$0xff] }
 0x3a2   :  { %v7176_v6 = vpop.f32.mrf.mxu0  ;;  %7469 = vmatprep.subr.bf16.mxu0 %v9271_v5  ;;  %v9230_v5 = vcombine.low %v4199_v32, %v4203_v59  ;;  %v4087_v16 = vld [vmem:[#allocation8 + $0x490] sm:$0xff] }
 0x3a3   :  { %7363 = vmatpush2.bf16.msra.mxu1 %v9460_v62  ;;  %v4119_v62 = vld [vmem:[#allocation8 + $0x590] sm:$0xff] }
 0x3a4   :  { %7364 = vmatprep.subr.bf16.mxu1 %v9453_v3  ;;  %v4311_v3 = vld [vmem:[#allocation8 + $0xb90] sm:$0xff]  ;;  %v9151_v20 = vcombine.high %v4119_v62, %v4123_v50  ;;  %v9150_v12 = vcombine.low %v4119_v62, %v4123_v50 }
 0x3a5   :  { %7470 = vmatpush1.bf16.msra.mxu0 %v9270_v7  ;;  %v4315_v7 = vld [vmem:[#allocation8 + $0xbb0] sm:$0xff] }
 0x3a6   :  { %7471 = vmatprep.subr.bf16.mxu0 %v9263_v8  ;;  %v4111_v6 = vld [vmem:[#allocation8 + $0x550] sm:$0xff]  ;;  %v9342_v15 = vcombine.low %v4311_v3, %v4315_v7 }
 0x3a7   :  { %7365 = vmatpush2.bf16.msra.mxu1 %v9452_v9  ;;  %v4115_v8 = vld [vmem:[#allocation8 + $0x570] sm:$0xff]  ;;  %v9343_v9 = vcombine.high %v4311_v3, %v4315_v7 }
 0x3a8   :  { %7366 = vmatprep.subr.bf16.mxu1 %v9445_v11  ;;  %v4307_v11 = vld [vmem:[#allocation8 + $0xb70] sm:$0xff]  ;;  %v9142_v18 = vcombine.low %v4111_v6, %v4115_v8 }
 0x3a9   :  { %7472 = vmatpush1.bf16.msra.mxu0 %v9262_v25  ;;  %v9143_v25 = vcombine.high %v4111_v6, %v4115_v8  ;;  %v9334_v0 = vcombine.low %v4303_v31, %v4307_v11  ;;  %v4279_v59 = vld [vmem:[#allocation8 + $0xa90] sm:$0xff] }
 0x3aa   :  { %7473 = vmatprep.subr.bf16.mxu0 %v9255_v33  ;;  %v4107_v33 = vld [vmem:[#allocation8 + $0x530] sm:$0xff] }
 0x3ab   :  { %7367 = vmatpush2.bf16.msra.mxu1 %v9444_v26  ;;  %v9335_v26 = vcombine.high %v4303_v31, %v4307_v11  ;;  %v9134_v45 = vcombine.low %v4103_v17, %v4107_v33  ;;  %v4079_v49 = vld [vmem:[#allocation8 + $0x450] sm:$0xff]  ;;  %v4000_v11 = vld [vmem:[#allocation8 + $0x1d8] sm:$0xff] }
 0x3ac   :  { %7368 = vmatprep.subr.bf16.mxu1 %v9437_v22  ;;  %v4299_v22 = vld [vmem:[#allocation8 + $0xb30] sm:$0xff] }
 0x3ad   :  { %7474 = vmatpush1.bf16.msra.mxu0 %v9254_v61  ;;  %v9135_v61 = vcombine.high %v4103_v17, %v4107_v33  ;;  %v9326_v63 = vcombine.low %v4295_v23, %v4299_v22  ;;  %v4271_v54 = vld [vmem:[#allocation8 + $0xa50] sm:$0xff] }
 0x3ae   :  { %7475 = vmatprep.subr.bf16.mxu0 %v9247_v27  ;;  %v4099_v27 = vld [vmem:[#allocation8 + $0x4f0] sm:$0xff] }
 0x3af   :  { %7369 = vmatpush2.bf16.msra.mxu1 %v9436_v29  ;;  %v9327_v29 = vcombine.high %v4295_v23, %v4299_v22  ;;  %v9126_v32 = vcombine.low %v4095_v36, %v4099_v27  ;;  %v4071_v50 = vld [vmem:[#allocation8 + $0x410] sm:$0xff]  ;;  %v3992_v22 = vld [vmem:[#allocation8 + $0x198] sm:$0xff] }
 0x3b0   :  { %7370 = vmatprep.subr.bf16.mxu1 %v9429_v58  ;;  %v4291_v58 = vld [vmem:[#allocation8 + $0xaf0] sm:$0xff] }
 0x3b1   :  { %7476 = vmatpush1.bf16.msra.mxu0 %v9246_v34  ;;  %v9127_v34 = vcombine.high %v4095_v36, %v4099_v27  ;;  %v9318_v46 = vcombine.low %v4287_v30, %v4291_v58  ;;  %v4263_v7 = vld [vmem:[#allocation8 + $0xa10] sm:$0xff] }
 0x3b2   :  { %7477 = vmatprep.subr.bf16.mxu0 %v9239_v1  ;;  %v4091_v1 = vld [vmem:[#allocation8 + $0x4b0] sm:$0xff] }
 0x3b3   :  { %7371 = vmatpush2.bf16.msra.mxu1 %v9428_v47  ;;  %v9319_v47 = vcombine.high %v4287_v30, %v4291_v58  ;;  %v9118_v39 = vcombine.low %v4087_v16, %v4091_v1  ;;  %v4191_v8 = vld [vmem:[#allocation8 + $0x7d0] sm:$0xff]  ;;  %v3984_v58 = vld [vmem:[#allocation8 + $0x158] sm:$0xff] }
 0x3b4   :  { %7372 = vmatprep.subr.bf16.mxu1 %v9421_v41  ;;  %v4283_v41 = vld [vmem:[#allocation8 + $0xab0] sm:$0xff] }
 0x3b5   :  { %7478 = vmatpush1.bf16.msra.mxu0 %v9238_v42  ;;  %v9119_v42 = vcombine.high %v4087_v16, %v4091_v1  ;;  %v9310_v62 = vcombine.low %v4279_v59, %v4283_v41  ;;  %v4183_v33 = vld [vmem:[#allocation8 + $0x790] sm:$0xff] }
 0x3b6   :  { %7479 = vmatprep.subr.bf16.mxu0 %v9231_v38  ;;  %v4083_v38 = vld [vmem:[#allocation8 + $0x470] sm:$0xff] }
 0x3b7   :  { %7373 = vmatpush2.bf16.msra.mxu1 %v9420_v52  ;;  %v9311_v52 = vcombine.high %v4279_v59, %v4283_v41  ;;  %v9110_v3 = vcombine.low %v4079_v49, %v4083_v38  ;;  %v4175_v27 = vld [vmem:[#allocation8 + $0x750] sm:$0xff] }
 0x3b8   :  { %7424 = vmatprep.subr.bf16.mxu1 %v9159_v55  ;;  %v4275_v55 = vld [vmem:[#allocation8 + $0xa70] sm:$0xff] }
 0x3b9   :  { %7480 = vmatpush1.bf16.msra.mxu0 %v9230_v5  ;;  %v9111_v5 = vcombine.high %v4079_v49, %v4083_v38  ;;  %v9302_v6 = vcombine.low %v4271_v54, %v4275_v55  ;;  %v3980_v49 = vld [vmem:[#allocation8 + $0x138] sm:$0xff] }
 0x3ba   :  { %7375 = vmatmul.mubr.bf16.vlgmr.msra.gmra.mxu1 %v10162_v14  ;;  %7481 = vmatprep.subr.bf16.mxu0 %v9351_v2  ;;  %v4075_v2 = vld [vmem:[#allocation8 + $0x430] sm:$0xff] }
 0x3bb   :  { %7425 = vmatpush1.bf16.msra.mxu1 %v9158_v10  ;;  %7456 = vmatprep.mubr.bf16.mxu1 %v10093_v40  ;;  %v9303_v10 = vcombine.high %v4271_v54, %v4275_v55  ;;  %v9102_v31 = vcombine.low %v4071_v50, %v4075_v2  ;;  %v4159_v54 = vld [vmem:[#allocation8 + $0x6d0] sm:$0xff] }
 0x3bc   :  { %7426 = vmatprep.subr.bf16.mxu1 %v9151_v20  ;;  %v4267_v20 = vld [vmem:[#allocation8 + $0xa30] sm:$0xff] }
 0x3bd   :  { %7482 = vmatpush2.bf16.msra.mxu0 %v9350_v4  ;;  %v9103_v4 = vcombine.high %v4071_v50, %v4075_v2  ;;  %v9294_v17 = vcombine.low %v4263_v7, %v4267_v20  ;;  %v4163_v55 = vld [vmem:[#allocation8 + $0x6f0] sm:$0xff]  ;;  %v3968_v50 = vld [vmem:[#allocation8 + $0xd8] sm:$0xff] }
 0x3be   :  { %7483 = vmatprep.subr.bf16.mxu0 %v9343_v9  ;;  %v4195_v9 = vld [vmem:[#allocation8 + $0x7f0] sm:$0xff]  ;;  %v3972_v2 = vld [vmem:[#allocation8 + $0xf8] sm:$0xff] }
 0x3bf   :  { %7427 = vmatpush1.bf16.msra.mxu1 %v9150_v12  ;;  %v9295_v12 = vcombine.high %v4263_v7, %v4267_v20  ;;  %v9222_v23 = vcombine.low %v4191_v8, %v4195_v9  ;;  %v4151_v7 = vld [vmem:[#allocation8 + $0x690] sm:$0xff] }
 0x3c0   :  { %7428 = vmatprep.subr.bf16.mxu1 %v9143_v25  ;;  %v4004_v25 = vld [vmem:[#allocation8 + $0x1f8] sm:$0xff]  ;;  %v4155_v20 = vld [vmem:[#allocation8 + $0x6b0] sm:$0xff] }
 0x3c1   :  { %7484 = vmatpush2.bf16.msra.mxu0 %v9342_v15  ;;  %v9223_v15 = vcombine.high %v4191_v8, %v4195_v9  ;;  %v9032_v36 = vcombine.low %v4000_v11, %v4004_v25  ;;  %v3960_v8 = vld [vmem:[#allocation8 + $0x98] sm:$0xff] }
 0x3c2   :  { %7485 = vmatprep.subr.bf16.mxu0 %v9335_v26  ;;  %v4187_v26 = vld [vmem:[#allocation8 + $0x7b0] sm:$0xff]  ;;  %v3964_v9 = vld [vmem:[#allocation8 + $0xb8] sm:$0xff] }
 0x3c3   :  { %7429 = vmatpush1.bf16.msra.mxu1 %v9142_v18  ;;  %v9033_v18 = vcombine.high %v4000_v11, %v4004_v25  ;;  %v9214_v30 = vcombine.low %v4183_v33, %v4187_v26  ;;  %v4143_v11 = vld [vmem:[#allocation8 + $0x650] sm:$0xff] }
 0x3c4   :  { %7430 = vmatprep.subr.bf16.mxu1 %v9135_v61  ;;  %v3996_v61 = vld [vmem:[#allocation8 + $0x1b8] sm:$0xff]  ;;  %v4147_v25 = vld [vmem:[#allocation8 + $0x670] sm:$0xff] }
 0x3c5   :  { %7486 = vmatpush2.bf16.msra.mxu0 %v9334_v0  ;;  %v9215_v0 = vcombine.high %v4183_v33, %v4187_v26  ;;  %v9024_v1 = vcombine.low %v3992_v22, %v3996_v61  ;;  %v3952_v33 = vld [vmem:[#allocation8 + $0x58] sm:$0xff] }
 0x3c6   :  { %7487 = vmatprep.subr.bf16.mxu0 %v9327_v29  ;;  %v4179_v29 = vld [vmem:[#allocation8 + $0x770] sm:$0xff]  ;;  %v3956_v26 = vld [vmem:[#allocation8 + $0x78] sm:$0xff] }
 0x3c7   :  { %7431 = vmatpush1.bf16.msra.mxu1 %v9134_v45  ;;  %v9025_v45 = vcombine.high %v3992_v22, %v3996_v61  ;;  %v9207_v16 = vcombine.high %v4175_v27, %v4179_v29  ;;  %v4135_v22 = vld [vmem:[#allocation8 + $0x610] sm:$0xff] }
 0x3c8   :  { %7432 = vmatprep.subr.bf16.mxu1 %v9127_v34  ;;  %v3988_v34 = vld [vmem:[#allocation8 + $0x178] sm:$0xff]  ;;  %v4139_v61 = vld [vmem:[#allocation8 + $0x630] sm:$0xff] }
 0x3c9   :  { %7488 = vmatpush2.bf16.msra.mxu0 %v9326_v63  ;;  %v9017_v41 = vcombine.high %v3984_v58, %v3988_v34 }
 0x3ca   :  { %7489 = vmatprep.subr.bf16.mxu0 %v9319_v47  ;;  %v4167_v47 = vld [vmem:[#allocation8 + $0x710] sm:$0xff] }
 0x3cb   :  { %7433 = vmatpush1.bf16.msra.mxu1 %v9126_v32  ;;  %v4171_v32 = vld [vmem:[#allocation8 + $0x730] sm:$0xff] }
 0x3cc   :  { %7434 = vmatprep.subr.bf16.mxu1 %v9119_v42  ;;  %v9206_v42 = vcombine.low %v4175_v27, %v4179_v29  ;;  %v3944_v27 = vld [vmem:[#allocation8 + $0x18] sm:$0xff] }
 0x3cd   :  { %7490 = vmatpush2.bf16.msra.mxu0 %v9318_v46  ;;  %v3976_v46 = vld [vmem:[#allocation8 + $0x118] sm:$0xff] }
 0x3ce   :  { %7491 = vmatprep.subr.bf16.mxu0 %v9311_v52  ;;  %v9199_v52 = vcombine.high %v4167_v47, %v4171_v32  ;;  %v3948_v29 = vld [vmem:[#allocation8 + $0x38] sm:$0xff] }
 0x3cf   :  { %7435 = vmatpush1.bf16.msra.mxu1 %v9118_v39  ;;  %v9016_v39 = vcombine.low %v3984_v58, %v3988_v34  ;;  %v4383_v58 = vld [vmem:[#allocation8 + $0xdd0] sm:$0xff] }
 0x3d0   :  { %7436 = vmatprep.subr.bf16.mxu1 %v9111_v5  ;;  %v4387_v34 = vld [vmem:[#allocation8 + $0xdf0] sm:$0xff] }
 0x3d1   :  { %7492 = vmatpush2.bf16.msra.mxu0 %v9310_v62  ;;  %v9198_v62 = vcombine.low %v4167_v47, %v4171_v32  ;;  %v4064_v47 = vld [vmem:[#allocation8 + $0x3d8] sm:$0xff] }
 0x3d2   :  { %7493 = vmatprep.subr.bf16.mxu0 %v9303_v10  ;;  %v9191_v10 = vcombine.high %v4159_v54, %v4163_v55  ;;  %v4068_v32 = vld [vmem:[#allocation8 + $0x3f8] sm:$0xff] }
 0x3d3   :  { %7437 = vmatpush1.bf16.msra.mxu1 %v9110_v3  ;;  %v9008_v3 = vcombine.low %v3976_v46, %v3980_v49 }
 0x3d4   :  { %7438 = vmatprep.subr.bf16.mxu1 %v9103_v4  ;;  %v9001_v4 = vcombine.high %v3968_v50, %v3972_v2 }
 0x3d5   :  { %7494 = vmatpush2.bf16.msra.mxu0 %v9302_v6  ;;  %v9190_v6 = vcombine.low %v4159_v54, %v4163_v55  ;;  %v4060_v54 = vld [vmem:[#allocation8 + $0x3b8] sm:$0xff] }
 0x3d6   :  { %7495 = vmatprep.subr.bf16.mxu0 %v9295_v12  ;;  %v9183_v12 = vcombine.high %v4151_v7, %v4155_v20 }
 0x3d7   :  { %7439 = vmatpush1.bf16.msra.mxu1 %v9102_v31  ;;  %v9000_v31 = vcombine.low %v3968_v50, %v3972_v2 }
 0x3d8   :  { %7440 = vmatprep.subr.bf16.mxu1 %v9223_v15  ;;  %v8993_v15 = vcombine.high %v3960_v8, %v3964_v9 }
 0x3d9   :  { %7496 = vmatpush2.bf16.msra.mxu0 %v9294_v17  ;;  %v9182_v17 = vcombine.low %v4151_v7, %v4155_v20  ;;  %v4048_v7 = vld [vmem:[#allocation8 + $0x358] sm:$0xff] }
 0x3da   :  { %7547 = vmatprep.subr.bf16.mxu0 %v9033_v18  ;;  %v9175_v18 = vcombine.high %v4143_v11, %v4147_v25  ;;  %v4052_v20 = vld [vmem:[#allocation8 + $0x378] sm:$0xff] }
 0x3db   :  { %7441 = vmatpush2.bf16.msra.mxu1 %v9222_v23  ;;  %v8992_v23 = vcombine.low %v3960_v8, %v3964_v9 }
 0x3dc   :  { %v10192_v63 = vpop.f32.mrf.mxu0  ;;  %7498 = vmatmul.mubr.bf16.vlgmr.msra.gmra.mxu0 %v10136_v19  ;;  %7442 = vmatprep.subr.bf16.mxu1 %v9215_v0  ;;  %v8985_v0 = vcombine.high %v3952_v33, %v3956_v26 }
 0x3dd   :  { %7548 = vmatpush1.bf16.msra.mxu0 %v9032_v36  ;;  %7579 = vmatprep.mubr.bf16.mxu0 %v10090_v35  ;;  %v9009_v35 = vcombine.high %v3976_v46, %v3980_v49  ;;  %v9174_v36 = vcombine.low %v4143_v11, %v4147_v25  ;;  %v4375_v46 = vld [vmem:[#allocation8 + $0xd90] sm:$0xff] }
 0x3de   :  { %v10196_v59 = vpop.f32.mrf.mxu0  ;;  %7549 = vmatprep.subr.bf16.mxu0 %v9025_v45  ;;  %v9167_v45 = vcombine.high %v4135_v22, %v4139_v61  ;;  %v4379_v49 = vld [vmem:[#allocation8 + $0xdb0] sm:$0xff] }
 0x3df   :  { %7443 = vmatpush2.bf16.msra.mxu1 %v9214_v30  ;;  %v8984_v30 = vcombine.low %v3952_v33, %v3956_v26  ;;  %v9407_v55 = vcombine.high %v4375_v46, %v4379_v49 }
 0x3e0   :  { %v7257_v38 = vpop.f32.mrf.mxu0  ;;  %7444 = vmatprep.subr.bf16.mxu1 %v9207_v16  ;;  %v8977_v16 = vcombine.high %v3944_v27, %v3948_v29 }
 0x3e1   :  { %7550 = vmatpush1.bf16.msra.mxu0 %v9024_v1  ;;  %v9166_v1 = vcombine.low %v4135_v22, %v4139_v61  ;;  %v9097_v38 = vcombine.high %v4064_v47, %v4068_v32  ;;  %v4355_v22 = vld [vmem:[#allocation8 + $0xcf0] sm:$0xff] }
 0x3e2   :  { %v7258_v5 = vpop.f32.mrf.mxu0  ;;  %7551 = vmatprep.subr.bf16.mxu0 %v9017_v41  ;;  %v9415_v41 = vcombine.high %v4383_v58, %v4387_v34 }
 0x3e3   :  { %7445 = vmatpush2.bf16.msra.mxu1 %v9206_v42  ;;  %v8976_v42 = vcombine.low %v3944_v27, %v3948_v29  ;;  %v9096_v5 = vcombine.low %v4064_v47, %v4068_v32 }
 0x3e4   :  { %7446 = vmatprep.subr.bf16.mxu1 %v9199_v52  ;;  %v9414_v52 = vcombine.low %v4383_v58, %v4387_v34 }
 0x3e5   :  { %7552 = vmatpush1.bf16.msra.mxu0 %v9016_v39  ;;  %v4056_v39 = vld [vmem:[#allocation8 + $0x398] sm:$0xff] }
 0x3e6   :  { %7553 = vmatprep.subr.bf16.mxu0 %v9009_v35  ;;  %v4367_v35 = vld [vmem:[#allocation8 + $0xd50] sm:$0xff]  ;;  %v9089_v2 = vcombine.high %v4056_v39, %v4060_v54  ;;  %v9088_v9 = vcombine.low %v4056_v39, %v4060_v54 }
 0x3e7   :  { %7447 = vmatpush2.bf16.msra.mxu1 %v9198_v62  ;;  %v4371_v62 = vld [vmem:[#allocation8 + $0xd70] sm:$0xff] }
 0x3e8   :  { %7448 = vmatprep.subr.bf16.mxu1 %v9191_v10  ;;  %v9398_v25 = vcombine.low %v4367_v35, %v4371_v62 }
 0x3e9   :  { %7554 = vmatpush1.bf16.msra.mxu0 %v9008_v3  ;;  %v9406_v3 = vcombine.low %v4375_v46, %v4379_v49 }
 0x3ea   :  { %7555 = vmatprep.subr.bf16.mxu0 %v9001_v4 }
 0x3eb   :  { %7449 = vmatpush2.bf16.msra.mxu1 %v9190_v6  ;;  %v9399_v6 = vcombine.high %v4367_v35, %v4371_v62 }
 0x3ec   :  { %7450 = vmatprep.subr.bf16.mxu1 %v9183_v12  ;;  %v4359_v12 = vld [vmem:[#allocation8 + $0xd10] sm:$0xff] }
 0x3ed   :  { %7556 = vmatpush1.bf16.msra.mxu0 %v9000_v31  ;;  %v4363_v31 = vld [vmem:[#allocation8 + $0xd30] sm:$0xff] }
 0x3ee   :  { %7557 = vmatprep.subr.bf16.mxu0 %v8993_v15  ;;  %v4040_v15 = vld [vmem:[#allocation8 + $0x318] sm:$0xff]  ;;  %v9391_v26 = vcombine.high %v4359_v12, %v4363_v31  ;;  %v9390_v61 = vcombine.low %v4359_v12, %v4363_v31 }
 0x3ef   :  { %7451 = vmatpush2.bf16.msra.mxu1 %v9182_v17  ;;  %v4044_v17 = vld [vmem:[#allocation8 + $0x338] sm:$0xff] }
 0x3f0   :  { %7452 = vmatprep.subr.bf16.mxu1 %v9175_v18  ;;  %v9080_v18 = vcombine.low %v4048_v7, %v4052_v20  ;;  %v9072_v29 = vcombine.low %v4040_v15, %v4044_v17  ;;  %v4256_v12 = vld [vmem:[#allocation8 + $0x9d8] sm:$0xff] }
 0x3f1   :  { %7558 = vmatpush1.bf16.msra.mxu0 %v8992_v23  ;;  %v4351_v23 = vld [vmem:[#allocation8 + $0xcd0] sm:$0xff]  ;;  %v4260_v31 = vld [vmem:[#allocation8 + $0x9f8] sm:$0xff] }
 0x3f2   :  { %7559 = vmatprep.subr.bf16.mxu0 %v8985_v0  ;;  %v4032_v0 = vld [vmem:[#allocation8 + $0x2d8] sm:$0xff]  ;;  %v9383_v27 = vcombine.high %v4351_v23, %v4355_v22  ;;  %v9382_v34 = vcombine.low %v4351_v23, %v4355_v22  ;;  %v9288_v22 = vcombine.low %v4256_v12, %v4260_v31 }
 0x3f3   :  { %7453 = vmatpush2.bf16.msra.mxu1 %v9174_v36  ;;  %v4036_v36 = vld [vmem:[#allocation8 + $0x2f8] sm:$0xff] }
 0x3f4   :  { %7454 = vmatprep.subr.bf16.mxu1 %v9167_v45  ;;  %v4343_v45 = vld [vmem:[#allocation8 + $0xc90] sm:$0xff]  ;;  %v9065_v58 = vcombine.high %v4032_v0, %v4036_v36  ;;  %v9064_v32 = vcombine.low %v4032_v0, %v4036_v36 }
 0x3f5   :  { %7560 = vmatpush1.bf16.msra.mxu0 %v8984_v30  ;;  %v4347_v30 = vld [vmem:[#allocation8 + $0xcb0] sm:$0xff] }
 0x3f6   :  { %7561 = vmatprep.subr.bf16.mxu0 %v8977_v16  ;;  %v4024_v16 = vld [vmem:[#allocation8 + $0x298] sm:$0xff]  ;;  %v9375_v47 = vcombine.high %v4343_v45, %v4347_v30  ;;  %v9374_v49 = vcombine.low %v4343_v45, %v4347_v30 }
 0x3f7   :  { %7455 = vmatpush2.bf16.msra.mxu1 %v9166_v1  ;;  %v4028_v1 = vld [vmem:[#allocation8 + $0x2b8] sm:$0xff] }
 0x3f8   :  { %7506 = vmatprep.subr.bf16.mxu1 %v9415_v41  ;;  %v4335_v41 = vld [vmem:[#allocation8 + $0xc50] sm:$0xff]  ;;  %v9057_v46 = vcombine.high %v4024_v16, %v4028_v1  ;;  %v9056_v54 = vcombine.low %v4024_v16, %v4028_v1 }
 0x3f9   :  { %7562 = vmatpush1.bf16.msra.mxu0 %v8976_v42  ;;  %v4339_v42 = vld [vmem:[#allocation8 + $0xc70] sm:$0xff] }
 0x3fa   :  { %7457 = vmatmul.mubr.bf16.vlgmr.msra.gmra.mxu1 %v10113_v24  ;;  %v7212_v50 = vpop.f32.mrf.mxu1  ;;  %7563 = vmatprep.subr.bf16.mxu0 %v9097_v38  ;;  %v4016_v38 = vld [vmem:[#allocation8 + $0x258] sm:$0xff]  ;;  %v9367_v39 = vcombine.high %v4335_v41, %v4339_v42  ;;  %v9366_v62 = vcombine.low %v4335_v41, %v4339_v42  ;;  %v4427_v16 = vld [vmem:[#allocation8 + $0xf30] sm:$0xff] }
 0x3fb   :  { %v10200_v10 = vadd.f32 %v7212_v50, %v10184_v51  ;;  %7507 = vmatpush1.bf16.msra.mxu1 %v9414_v52  ;;  %7538 = vmatprep.mubr.bf16.mxu1 %v10160_v13  ;;  %v9081_v51 = vcombine.high %v4048_v7, %v4052_v20  ;;  %v4020_v52 = vld [vmem:[#allocation8 + $0x278] sm:$0xff]  ;;  %v4447_v20 = vld [vmem:[#allocation8 + $0xfd0] sm:$0xff] }
 0x3fc   :  { %v7214_v4 = vpop.f32.mrf.mxu1  ;;  %7508 = vmatprep.subr.bf16.mxu1 %v9407_v55  ;;  %v4327_v55 = vld [vmem:[#allocation8 + $0xc10] sm:$0xff]  ;;  %v9049_v35 = vcombine.high %v4016_v38, %v4020_v52  ;;  %v4008_v50 = vld [vmem:[#allocation8 + $0x218] sm:$0xff]  ;;  %v9048_v7 = vcombine.low %v4016_v38, %v4020_v52 }
 0x3fd   :  { %v10204_v8 = vadd.f32 %v7214_v4, %v10188_v56  ;;  %7564 = vmatpush2.bf16.msra.mxu0 %v9096_v5  ;;  %v9073_v56 = vcombine.high %v4040_v15, %v4044_v17  ;;  %v4331_v5 = vld [vmem:[#allocation8 + $0xc30] sm:$0xff]  ;;  %v9289_v17 = vcombine.high %v4256_v12, %v4260_v31  ;;  %v4232_v41 = vld [vmem:[#allocation8 + $0x918] sm:$0xff] }
 0x3fe   :  { %v7216_v11 = vpop.f32.mrf.mxu1  ;;  %7565 = vmatprep.subr.bf16.mxu0 %v9089_v2  ;;  %v4012_v2 = vld [vmem:[#allocation8 + $0x238] sm:$0xff]  ;;  %v4451_v4 = vld [vmem:[#allocation8 + $0xff0] sm:$0xff] }
 0x3ff   :  { %7509 = vmatpush1.bf16.msra.mxu1 %v9406_v3  ;;  %v9359_v3 = vcombine.high %v4327_v55, %v4331_v5  ;;  %v9479_v11 = vcombine.high %v4447_v20, %v4451_v4  ;;  %v4443_v15 = vld [vmem:[#allocation8 + $0xfb0] sm:$0xff]  ;;  %v4236_v42 = vld [vmem:[#allocation8 + $0x938] sm:$0xff] }
 0x400   :  { %v7217_v33 = vpop.f32.mrf.mxu1  ;;  %7510 = vmatprep.subr.bf16.mxu1 %v9399_v6  ;;  %v9041_v6 = vcombine.high %v4008_v50, %v4012_v2  ;;  %v4415_v38 = vld [vmem:[#allocation8 + $0xed0] sm:$0xff] }
 0x401   :  { %7566 = vmatpush2.bf16.msra.mxu0 %v9088_v9  ;;  %v9358_v9 = vcombine.low %v4327_v55, %v4331_v5  ;;  %v9478_v33 = vcombine.low %v4447_v20, %v4451_v4  ;;  %v4419_v52 = vld [vmem:[#allocation8 + $0xef0] sm:$0xff]  ;;  %v4224_v55 = vld [vmem:[#allocation8 + $0x8d8] sm:$0xff] }
 0x402   :  { %7567 = vmatprep.subr.bf16.mxu0 %v9081_v51  ;;  %v9040_v51 = vcombine.low %v4008_v50, %v4012_v2  ;;  %v4228_v5 = vld [vmem:[#allocation8 + $0x8f8] sm:$0xff]  ;;  %v4407_v50 = vld [vmem:[#allocation8 + $0xe90] sm:$0xff] }
 0x403   :  { %7511 = vmatpush1.bf16.msra.mxu1 %v9398_v25  ;;  %v4439_v25 = vld [vmem:[#allocation8 + $0xf90] sm:$0xff]  ;;  %v4216_v20 = vld [vmem:[#allocation8 + $0x898] sm:$0xff] }
 0x404   :  { %7512 = vmatprep.subr.bf16.mxu1 %v9391_v26  ;;  %v4248_v26 = vld [vmem:[#allocation8 + $0x998] sm:$0xff]  ;;  %v9471_v23 = vcombine.high %v4439_v25, %v4443_v15  ;;  %v9470_v36 = vcombine.low %v4439_v25, %v4443_v15  ;;  %v4411_v2 = vld [vmem:[#allocation8 + $0xeb0] sm:$0xff] }
 0x405   :  { %7568 = vmatpush2.bf16.msra.mxu0 %v9080_v18  ;;  %v4252_v18 = vld [vmem:[#allocation8 + $0x9b8] sm:$0xff]  ;;  %v4399_v12 = vld [vmem:[#allocation8 + $0xe50] sm:$0xff] }
 0x406   :  { %7569 = vmatprep.subr.bf16.mxu0 %v9073_v56  ;;  %v4431_v56 = vld [vmem:[#allocation8 + $0xf50] sm:$0xff]  ;;  %v9281_v0 = vcombine.high %v4248_v26, %v4252_v18  ;;  %v4220_v4 = vld [vmem:[#allocation8 + $0x8b8] sm:$0xff] }
 0x407   :  { %7513 = vmatpush1.bf16.msra.mxu1 %v9390_v61  ;;  %v4435_v61 = vld [vmem:[#allocation8 + $0xf70] sm:$0xff]  ;;  %v4208_v25 = vld [vmem:[#allocation8 + $0x858] sm:$0xff] }
 0x408   :  { %7514 = vmatprep.subr.bf16.mxu1 %v9383_v27  ;;  %v4240_v27 = vld [vmem:[#allocation8 + $0x958] sm:$0xff]  ;;  %v9463_v30 = vcombine.high %v4431_v56, %v4435_v61  ;;  %v4403_v31 = vld [vmem:[#allocation8 + $0xe70] sm:$0xff] }
 0x409   :  { %7570 = vmatpush2.bf16.msra.mxu0 %v9072_v29  ;;  %v4244_v29 = vld [vmem:[#allocation8 + $0x978] sm:$0xff] }
 0x40a   :  { %7571 = vmatprep.subr.bf16.mxu0 %v9065_v58  ;;  %v9280_v58 = vcombine.low %v4248_v26, %v4252_v18  ;;  %v4212_v15 = vld [vmem:[#allocation8 + $0x878] sm:$0xff]  ;;  %v4391_v26 = vld [vmem:[#allocation8 + $0xe10] sm:$0xff] }
 0x40b   :  { %7515 = vmatpush1.bf16.msra.mxu1 %v9382_v34  ;;  %v4423_v34 = vld [vmem:[#allocation8 + $0xf10] sm:$0xff] }
 0x40c   :  { %7516 = vmatprep.subr.bf16.mxu1 %v9375_v47  ;;  %v9273_v47 = vcombine.high %v4240_v27, %v4244_v29  ;;  %v4395_v18 = vld [vmem:[#allocation8 + $0xe30] sm:$0xff] }
 0x40d   :  { %7572 = vmatpush2.bf16.msra.mxu0 %v9064_v32  ;;  %v9462_v32 = vcombine.low %v4431_v56, %v4435_v61  ;;  %v4200_v56 = vld [vmem:[#allocation8 + $0x818] sm:$0xff] }
 0x40e   :  { %7573 = vmatprep.subr.bf16.mxu0 %v9057_v46  ;;  %v4204_v61 = vld [vmem:[#allocation8 + $0x838] sm:$0xff] }
 0x40f   :  { %7517 = vmatpush1.bf16.msra.mxu1 %v9374_v49  ;;  %v9455_v49 = vcombine.high %v4423_v34, %v4427_v16 }
 0x410   :  { %7518 = vmatprep.subr.bf16.mxu1 %v9367_v39 }
 0x411   :  { %7574 = vmatpush2.bf16.msra.mxu0 %v9056_v54  ;;  %v9454_v54 = vcombine.low %v4423_v34, %v4427_v16  ;;  %v4320_v34 = vld [vmem:[#allocation8 + $0xbd8] sm:$0xff] }
 0x412   :  { %7575 = vmatprep.subr.bf16.mxu0 %v9049_v35  ;;  %v9447_v35 = vcombine.high %v4415_v38, %v4419_v52  ;;  %v4324_v16 = vld [vmem:[#allocation8 + $0xbf8] sm:$0xff] }
 0x413   :  { %7519 = vmatpush1.bf16.msra.mxu1 %v9366_v62  ;;  %v9264_v62 = vcombine.low %v4232_v41, %v4236_v42 }
 0x414   :  { %7520 = vmatprep.subr.bf16.mxu1 %v9359_v3  ;;  %v9257_v3 = vcombine.high %v4224_v55, %v4228_v5 }
 0x415   :  { %7576 = vmatpush2.bf16.msra.mxu0 %v9048_v7  ;;  %v9446_v7 = vcombine.low %v4415_v38, %v4419_v52 }
 0x416   :  { %7577 = vmatprep.subr.bf16.mxu0 %v9041_v6  ;;  %v9439_v6 = vcombine.high %v4407_v50, %v4411_v2 }
 0x417   :  { %7521 = vmatpush1.bf16.msra.mxu1 %v9358_v9  ;;  %v9256_v9 = vcombine.low %v4224_v55, %v4228_v5  ;;  %v4112_v5 = vld [vmem:[#allocation8 + $0x558] sm:$0xff] }
 0x418   :  { %7522 = vmatprep.subr.bf16.mxu1 %v9479_v11  ;;  %v9249_v11 = vcombine.high %v4216_v20, %v4220_v4 }
 0x419   :  { %7578 = vmatpush2.bf16.msra.mxu0 %v9040_v51  ;;  %v9438_v51 = vcombine.low %v4407_v50, %v4411_v2 }
 0x41a   :  { %7629 = vmatprep.subr.bf16.mxu0 %v9289_v17  ;;  %v9431_v17 = vcombine.high %v4399_v12, %v4403_v31 }
 0x41b   :  { %7523 = vmatpush2.bf16.msra.mxu1 %v9478_v33  ;;  %v9248_v33 = vcombine.low %v4216_v20, %v4220_v4  ;;  %v4308_v20 = vld [vmem:[#allocation8 + $0xb78] sm:$0xff] }
 0x41c   :  { %v10206_v45 = vpop.f32.mrf.mxu0  ;;  %7580 = vmatmul.mubr.bf16.vlgmr.msra.gmra.mxu0 %v10111_v21  ;;  %7524 = vmatprep.subr.bf16.mxu1 %v9471_v23  ;;  %v9272_v21 = vcombine.low %v4240_v27, %v4244_v29  ;;  %v9241_v23 = vcombine.high %v4208_v25, %v4212_v15  ;;  %v4128_v27 = vld [vmem:[#allocation8 + $0x5d8] sm:$0xff] }
 0x41d   :  { %7630 = vmatpush1.bf16.msra.mxu0 %v9288_v22  ;;  %7661 = vmatprep.mubr.bf16.mxu0 %v10124_v53  ;;  %v9265_v53 = vcombine.high %v4232_v41, %v4236_v42  ;;  %v9430_v22 = vcombine.low %v4399_v12, %v4403_v31  ;;  %v4132_v29 = vld [vmem:[#allocation8 + $0x5f8] sm:$0xff]  ;;  %v9232_v42 = vcombine.low %v4200_v56, %v4204_v61 }
 0x41e   :  { %v10210_v1 = vpop.f32.mrf.mxu0  ;;  %7631 = vmatprep.subr.bf16.mxu0 %v9281_v0  ;;  %v9423_v0 = vcombine.high %v4391_v26, %v4395_v18  ;;  %v9160_v52 = vcombine.low %v4128_v27, %v4132_v29  ;;  %v4104_v12 = vld [vmem:[#allocation8 + $0x518] sm:$0xff] }
 0x41f   :  { %7525 = vmatpush2.bf16.msra.mxu1 %v9470_v36  ;;  %v9240_v36 = vcombine.low %v4208_v25, %v4212_v15  ;;  %v4108_v31 = vld [vmem:[#allocation8 + $0x538] sm:$0xff]  ;;  %v7712_v25 = vmul.f32 0.5, %v10204_v8 }
 0x420   :  { %v7339_v46 = vpop.f32.mrf.mxu0  ;;  %7526 = vmatprep.subr.bf16.mxu1 %v9463_v30  ;;  %v9233_v30 = vcombine.high %v4200_v56, %v4204_v61  ;;  %v4296_v15 = vld [vmem:[#allocation8 + $0xb18] sm:$0xff]  ;;  %v9136_v61 = vcombine.low %v4104_v12, %v4108_v31 }
 0x421   :  { %7632 = vmatpush1.bf16.msra.mxu0 %v9280_v58  ;;  %v9422_v58 = vcombine.low %v4391_v26, %v4395_v18  ;;  %v4120_v46 = vld [vmem:[#allocation8 + $0x598] sm:$0xff]  ;;  %v9137_v18 = vcombine.high %v4104_v12, %v4108_v31  ;;  %9727 = vtanh.f32 %v7712_v25 }
 0x422   :  { %v7340_v39 = vpop.f32.mrf.mxu0  ;;  %7633 = vmatprep.subr.bf16.mxu0 %v9273_v47  ;;  %v9161_v47 = vcombine.high %v4128_v27, %v4132_v29  ;;  %v4288_v8 = vld [vmem:[#allocation8 + $0xad8] sm:$0xff] }
 0x423   :  { %7527 = vmatpush2.bf16.msra.mxu1 %v9462_v32  ;;  %v10212_v32 = vld [vmem:[#allocation10] sm:$0xff]  ;;  %v4312_v39 = vld [vmem:[#allocation8 + $0xb98] sm:$0xff] }
 0x424   :  { %7528 = vmatprep.subr.bf16.mxu1 %v9455_v49  ;;  %v4466_v41 = vrot.slane %v10212_v32, %v655_v43  ;;  %v4124_v49 = vld [vmem:[#allocation8 + $0x5b8] sm:$0xff]  ;;  %v4470_v38 = vrot.slane %v10212_v32, %v659_v48  ;;  %v9352_v43 = vcombine.low %v4320_v34, %v4324_v16 }
 0x425   :  { %7634 = vmatpush1.bf16.msra.mxu0 %v9272_v21  ;;  %v9353_v21 = vcombine.high %v4320_v34, %v4324_v16  ;;  %v4092_v29 = vld [vmem:[#allocation8 + $0x4b8] sm:$0xff] }
 0x426   :  { %7635 = vmatprep.subr.bf16.mxu0 %v9265_v53  ;;  %v4316_v53 = vld [vmem:[#allocation8 + $0xbb8] sm:$0xff]  ;;  %v7254_v55 = vadd.f32 %v10192_v63, %v4466_v41  ;;  %v7256_v2 = vadd.f32 %v10196_v59, %v4470_v38 }
 0x427   :  { %7529 = vmatpush2.bf16.msra.mxu1 %v9454_v54  ;;  %v9153_v54 = vcombine.high %v4120_v46, %v4124_v49  ;;  %v9345_v50 = vcombine.high %v4312_v39, %v4316_v53  ;;  %v4280_v34 = vld [vmem:[#allocation8 + $0xa98] sm:$0xff] }
 0x428   :  { %7530 = vmatprep.subr.bf16.mxu1 %v9447_v35  ;;  %v4116_v35 = vld [vmem:[#allocation8 + $0x578] sm:$0xff] }
 0x429   :  { %7636 = vmatpush1.bf16.msra.mxu0 %v9264_v62  ;;  %v9145_v63 = vcombine.high %v4112_v5, %v4116_v35  ;;  %v4284_v16 = vld [vmem:[#allocation8 + $0xab8] sm:$0xff] }
 0x42a   :  { %7637 = vmatprep.subr.bf16.mxu0 %v9257_v3  ;;  %v9152_v3 = vcombine.low %v4120_v46, %v4124_v49  ;;  %v4084_v46 = vld [vmem:[#allocation8 + $0x478] sm:$0xff]  ;;  %v9313_v49 = vcombine.high %v4280_v34, %v4284_v16 }
 0x42b   :  { %7531 = vmatpush2.bf16.msra.mxu1 %v9446_v7  ;;  %v4304_v7 = vld [vmem:[#allocation8 + $0xb58] sm:$0xff] }
 0x42c   :  { %7532 = vmatprep.subr.bf16.mxu1 %v9439_v6  ;;  %v9337_v59 = vcombine.high %v4304_v7, %v4308_v20  ;;  %v4272_v38 = vld [vmem:[#allocation8 + $0xa58] sm:$0xff] }
 0x42d   :  { %7638 = vmatpush1.bf16.msra.mxu0 %v9256_v9  ;;  %v9344_v9 = vcombine.low %v4312_v39, %v4316_v53  ;;  %v9312_v53 = vcombine.low %v4280_v34, %v4284_v16  ;;  %v4184_v12 = vld [vmem:[#allocation8 + $0x798] sm:$0xff] }
 0x42e   :  { %7639 = vmatprep.subr.bf16.mxu0 %v9249_v11  ;;  %v4188_v31 = vld [vmem:[#allocation8 + $0x7b8] sm:$0xff] }
 0x42f   :  { %7533 = vmatpush2.bf16.msra.mxu1 %v9438_v51  ;;  %v4160_v34 = vld [vmem:[#allocation8 + $0x6d8] sm:$0xff] }
 0x430   :  { %7534 = vmatprep.subr.bf16.mxu1 %v9431_v17  ;;  %v4300_v17 = vld [vmem:[#allocation8 + $0xb38] sm:$0xff] }
 0x431   :  { %7640 = vmatpush1.bf16.msra.mxu0 %v9248_v33  ;;  %v9329_v56 = vcombine.high %v4296_v15, %v4300_v17  ;;  %v9328_v27 = vcombine.low %v4296_v15, %v4300_v17  ;;  %v9648_v15 = vld [vmem:[#allocation11 + $0x38] sm:$0xff]   ;;  %v4176_v17 = vld [vmem:[#allocation8 + $0x758] sm:$0xff] }
 0x432   :  { %7641 = vmatprep.subr.bf16.mxu0 %v9241_v23  ;;  %v9336_v23 = vcombine.low %v4304_v7, %v4308_v20  ;;  %v4196_v7 = vld [vmem:[#allocation8 + $0x7f8] sm:$0xff] }
 0x433   :  { %7535 = vmatpush2.bf16.msra.mxu1 %v9430_v22  ;;  %v4096_v22 = vld [vmem:[#allocation8 + $0x4d8] sm:$0xff] }
 0x434   :  { %7536 = vmatprep.subr.bf16.mxu1 %v9423_v0  ;;  %v4292_v0 = vld [vmem:[#allocation8 + $0xaf8] sm:$0xff] }
 0x435   :  { %7642 = vmatpush1.bf16.msra.mxu0 %v9240_v36  ;;  %v9320_v41 = vcombine.low %v4288_v8, %v4292_v0  ;;  %v4164_v16 = vld [vmem:[#allocation8 + $0x6f8] sm:$0xff] }
 0x436   :  { %7643 = vmatprep.subr.bf16.mxu0 %v9233_v30  ;;  %v9321_v30 = vcombine.high %v4288_v8, %v4292_v0  ;;  %v4168_v8 = vld [vmem:[#allocation8 + $0x718] sm:$0xff] }
 0x437   :  { %7537 = vmatpush2.bf16.msra.mxu1 %v9422_v58  ;;  %v4172_v0 = vld [vmem:[#allocation8 + $0x738] sm:$0xff] }
 0x438   :  { %7588 = vmatprep.subr.bf16.mxu1 %v9161_v47 }
 0x439   :  { %7644 = vmatpush1.bf16.msra.mxu0 %v9232_v42  ;;  %v4080_v42 = vld [vmem:[#allocation8 + $0x458] sm:$0xff] }
 0x43a   :  { %v7294_v62 = vpop.f32.mrf.mxu1  ;;  %7539 = vmatmul.mubr.bf16.vlgmr.msra.gmra.mxu1 %v10162_v14  ;;  %7645 = vmatprep.subr.bf16.mxu0 %v9353_v21  ;;  %v9113_v39 = vcombine.high %v4080_v42, %v4084_v46 }
 0x43b   :  { %v7295_v48 = vadd.f32 %v7294_v62, %v7254_v55  ;;  %7589 = vmatpush1.bf16.msra.mxu1 %v9160_v52  ;;  %7620 = vmatprep.mubr.bf16.mxu1 %v10093_v40  ;;  %v9144_v40 = vcombine.low %v4112_v5, %v4116_v35  ;;  %v4276_v52 = vld [vmem:[#allocation8 + $0xa78] sm:$0xff]  ;;  %v9112_v5 = vcombine.low %v4080_v42, %v4084_v46  ;;  %v9654_v46 = vld [vmem:[#allocation11 + $0x20] sm:$0xff]  }
 0x43c   :  { %v7296_v4 = vpop.f32.mrf.mxu1  ;;  %7590 = vmatprep.subr.bf16.mxu1 %v9153_v54  ;;  %v4072_v54 = vld [vmem:[#allocation8 + $0x418] sm:$0xff]  ;;  %v9200_v42 = vcombine.low %v4168_v8, %v4172_v0 }
 0x43d   :  { %v7297_v6 = vadd.f32 %v7296_v4, %v7256_v2  ;;  %7646 = vmatpush2.bf16.msra.mxu0 %v9352_v43  ;;  %v10225_v11 = vadd.f32 %v10206_v45, %v7295_v48  ;;  %v4100_v45 = vld [vmem:[#allocation8 + $0x4f8] sm:$0xff]  ;;  %v9305_v43 = vcombine.high %v4272_v38, %v4276_v52  ;;  %v9304_v48 = vcombine.low %v4272_v38, %v4276_v52  ;;  %v9655_v38 = vld [vmem:[#allocation11 + $0x58] sm:$0xff]  }
 0x43e   :  { %v7298_v51 = vpop.f32.mrf.mxu1  ;;  %7647 = vmatprep.subr.bf16.mxu0 %v9345_v50  ;;  %v9129_v36 = vcombine.high %v4096_v22, %v4100_v45  ;;  %v9128_v58 = vcombine.low %v4096_v22, %v4100_v45  ;;  %v4076_v55 = vld [vmem:[#allocation8 + $0x438] sm:$0xff]  ;;  %v9728_v50 = vpop.eup %9727  ;;  %v9192_v52 = vcombine.low %v4160_v34, %v4164_v16 }
 0x43f   :  { %7591 = vmatpush1.bf16.msra.mxu1 %v9152_v3  ;;  %v10229_v33 = vadd.f32 %v10210_v1, %v7297_v6  ;;  %v4088_v1 = vld [vmem:[#allocation8 + $0x498] sm:$0xff]  ;;  %v9105_v2 = vcombine.high %v4072_v54, %v4076_v55  ;;  %v9104_v4 = vcombine.low %v4072_v54, %v4076_v55  ;;  %v9647_v51 = vld [vmem:[#allocation11 + $0x78] sm:$0xff]  }
 0x440   :  { %v7299_v26 = vpop.f32.mrf.mxu1  ;;  %7592 = vmatprep.subr.bf16.mxu1 %v9145_v63  ;;  %v9121_v47 = vcombine.high %v4088_v1, %v4092_v29  ;;  %v9120_v21 = vcombine.low %v4088_v1, %v4092_v29  ;;  %v4264_v35 = vld [vmem:[#allocation8 + $0xa18] sm:$0xff]  ;;  %v7728_v63 = vmul.f32 0.5, %v9728_v50  ;;  %v9651_v1 = vld [vmem:[#allocation11 + $0x68] sm:$0xff]  }
 0x441   :  { %7648 = vmatpush2.bf16.msra.mxu0 %v9344_v9  ;;  %v4268_v62 = vld [vmem:[#allocation8 + $0xa38] sm:$0xff] }
 0x442   :  { %7649 = vmatprep.subr.bf16.mxu0 %v9337_v59  ;;  %v4192_v3 = vld [vmem:[#allocation8 + $0x7d8] sm:$0xff]  ;;  %v9297_v20 = vcombine.high %v4264_v35, %v4268_v62  ;;  %v9296_v9 = vcombine.low %v4264_v35, %v4268_v62  ;;  %v7736_v25 = vadd.f32 0.5, %v7728_v63 }
 0x443   :  { %7593 = vmatpush1.bf16.msra.mxu1 %v9144_v40  ;;  %v9225_v6 = vcombine.high %v4192_v3, %v4196_v7  ;;  %v9224_v59 = vcombine.low %v4192_v3, %v4196_v7  ;;  %v9217_v40 = vcombine.high %v4184_v12, %v4188_v31  ;;  %v4180_v26 = vld [vmem:[#allocation8 + $0x778] sm:$0xff] }
 0x444   :  { %7594 = vmatprep.subr.bf16.mxu1 %v9137_v18  ;;  %v9649_v18 = vld [vmem:[#allocation11 + $0x70] sm:$0xff]   ;;  %v7744_v22 = vpack.c.bf16 %v7736_v25, %v7736_v25  ;;  %v9208_v29 = vcombine.low %v4176_v17, %v4180_v26 }
 0x445   :  { %7650 = vmatpush2.bf16.msra.mxu0 %v9336_v23  ;;  %v9216_v23 = vcombine.low %v4184_v12, %v4188_v31  ;;  %v4144_v54 = vld [vmem:[#allocation8 + $0x658] sm:$0xff]  ;;  %v9661_v12 = vld [vmem:[#allocation11 + $0x40] sm:$0xff]  }
 0x446   :  { %7651 = vmatprep.subr.bf16.mxu0 %v9329_v56  ;;  %v9209_v56 = vcombine.high %v4176_v17, %v4180_v26  ;;  %v4148_v55 = vld [vmem:[#allocation8 + $0x678] sm:$0xff]  ;;  %v9679_v17 = vld [vmem:[#allocation11 + $0x178] sm:$0xff]  }
 0x447   :  { %7595 = vmatpush1.bf16.msra.mxu1 %v9136_v61  ;;  %v9650_v61 = vld [vmem:[#allocation11 + $0x30] sm:$0xff]   ;;  %v9177_v35 = vcombine.high %v4144_v54, %v4148_v55  ;;  %v9176_v7 = vcombine.low %v4144_v54, %v4148_v55 }
 0x448   :  { %7596 = vmatprep.subr.bf16.mxu1 %v9129_v36  ;;  %v7711_v36 = vmul.f32 0.5, %v10200_v10  ;;  %v9193_v10 = vcombine.high %v4160_v34, %v4164_v16  ;;  %v9658_v62 = vld [vmem:[#allocation11 + $0x10] sm:$0xff]  }
 0x449   :  { %7652 = vmatpush2.bf16.msra.mxu0 %v9328_v27  ;;  %v4136_v50 = vld [vmem:[#allocation8 + $0x618] sm:$0xff] }
 0x44a   :  { %7653 = vmatprep.subr.bf16.mxu0 %v9321_v30  ;;  %9729 = vtanh.f32 %v7711_v36  ;;  %v4384_v63 = vld [vmem:[#allocation8 + $0xdd8] sm:$0xff] }
 0x44b   :  { %7597 = vmatpush1.bf16.msra.mxu1 %v9128_v58  ;;  %v9201_v58 = vcombine.high %v4168_v8, %v4172_v0  ;;  %v4376_v25 = vld [vmem:[#allocation8 + $0xd98] sm:$0xff] }
 0x44c   :  { %7598 = vmatprep.subr.bf16.mxu1 %v9121_v47  ;;  %v9681_v0 = vld [vmem:[#allocation11 + $0x170] sm:$0xff]  }
 0x44d   :  { %7654 = vmatpush2.bf16.msra.mxu0 %v9320_v41  ;;  %v9653_v41 = vld [vmem:[#allocation11 + $0x60] sm:$0xff]   ;;  %v9682_v34 = vld [vmem:[#allocation11 + $0x130] sm:$0xff]  }
 0x44e   :  { %7655 = vmatprep.subr.bf16.mxu0 %v9313_v49  ;;  %v4152_v49 = vld [vmem:[#allocation8 + $0x698] sm:$0xff] }
 0x44f   :  { %7599 = vmatpush1.bf16.msra.mxu1 %v9120_v21  ;;  %v4156_v21 = vld [vmem:[#allocation8 + $0x6b8] sm:$0xff] }
 0x450   :  { %7600 = vmatprep.subr.bf16.mxu1 %v9113_v39  ;;  %v9185_v39 = vcombine.high %v4152_v49, %v4156_v21 }
 0x451   :  { %7656 = vmatpush2.bf16.msra.mxu0 %v9312_v53  ;;  %v9656_v53 = vld [vmem:[#allocation11 + $0x18] sm:$0xff]  }
 0x452   :  { %7657 = vmatprep.subr.bf16.mxu0 %v9305_v43  ;;  %v9657_v43 = vld [vmem:[#allocation11 + $0x50] sm:$0xff]  }
 0x453   :  { %7601 = vmatpush1.bf16.msra.mxu1 %v9112_v5  ;;  %v9184_v5 = vcombine.low %v4152_v49, %v4156_v21 }
 0x454   :  { %7602 = vmatprep.subr.bf16.mxu1 %v9105_v2  ;;  %v4140_v2 = vld [vmem:[#allocation8 + $0x638] sm:$0xff] }
 0x455   :  { %7658 = vmatpush2.bf16.msra.mxu0 %v9304_v48  ;;  %v9659_v48 = vld [vmem:[#allocation11 + $0x48] sm:$0xff]   ;;  %v9168_v31 = vcombine.low %v4136_v50, %v4140_v2 }
 0x456   :  { %7659 = vmatprep.subr.bf16.mxu0 %v9297_v20  ;;  %v9169_v20 = vcombine.high %v4136_v50, %v4140_v2 }
 0x457   :  { %7603 = vmatpush1.bf16.msra.mxu1 %v9104_v4  ;;  %v9730_v3 = vpop.eup %9729  ;;  %v9660_v4 = vld [vmem:[#allocation11 + $0x8] sm:$0xff]  }
 0x458   :  { %7604 = vmatprep.subr.bf16.mxu1 %v9225_v6  ;;  %v4388_v6 = vld [vmem:[#allocation8 + $0xdf8] sm:$0xff] }
 0x459   :  { %7660 = vmatpush2.bf16.msra.mxu0 %v9296_v9  ;;  %v7727_v9 = vmul.f32 0.5, %v9730_v3  ;;  %v9416_v26 = vcombine.low %v4384_v63, %v4388_v6  ;;  %v4332_v3 = vld [vmem:[#allocation8 + $0xc38] sm:$0xff] }
 0x45a   :  { %9547 = vmatprep.subr.bf16.mxu0 %v9647_v51  ;;  %v9417_v51 = vcombine.high %v4384_v63, %v4388_v6  ;;  %v4448_v6 = vld [vmem:[#allocation8 + $0xfd8] sm:$0xff] }
 0x45b   :  { %7605 = vmatpush2.bf16.msra.mxu1 %v9224_v59  ;;  %v9662_v59 = vld [vmem:[#allocation11] sm:$0xff]  }
 0x45c   :  { %v10231_v45 = vpop.f32.mrf.mxu0  ;;  %7662 = vmatmul.mubr.bf16.vlgmr.msra.gmra.mxu0 %v10136_v19  ;;  %7606 = vmatprep.subr.bf16.mxu1 %v9217_v40  ;;  %v9652_v19 = vld [vmem:[#allocation11 + $0x28] sm:$0xff]   ;;  %v4380_v40 = vld [vmem:[#allocation8 + $0xdb8] sm:$0xff] }
 0x45d   :  { %9548 = vmatpush3.bf16.msra.mxu0 %v9648_v15  ;;  %8302 = vmatprep.mubr.bf16.mxu0 %v7744_v22  ;;  %v7735_v15 = vadd.f32 0.5, %v7727_v9  ;;  %v4372_v22 = vld [vmem:[#allocation8 + $0xd78] sm:$0xff] }
 0x45e   :  { %v10235_v27 = vpop.f32.mrf.mxu0  ;;  %9549 = vmatprep.subr.bf16.mxu0 %v9649_v18  ;;  %v9409_v18 = vcombine.high %v4376_v25, %v4380_v40  ;;  %v4452_v9 = vld [vmem:[#allocation8 + $0xff8] sm:$0xff] }
 0x45f   :  { %7607 = vmatpush2.bf16.msra.mxu1 %v9216_v23  ;;  %v4368_v23 = vld [vmem:[#allocation8 + $0xd58] sm:$0xff] }
 0x460   :  { %v7421_v30 = vpop.f32.mrf.mxu0  ;;  %7608 = vmatprep.subr.bf16.mxu1 %v9209_v56  ;;  %v9680_v56 = vld [vmem:[#allocation11 + $0x138] sm:$0xff]  }
 0x461   :  { %9550 = vmatpush3.bf16.msra.mxu0 %v9650_v61  ;;  %v7743_v61 = vpack.c.bf16 %v7735_v15, %v7735_v15  ;;  %v9401_v30 = vcombine.high %v4368_v23, %v4372_v22  ;;  %v9694_v15 = vld [vmem:[#allocation11 + $0x100] sm:$0xff]  }
 0x462   :  { %v7422_v47 = vpop.f32.mrf.mxu0  ;;  %9551 = vmatprep.subr.bf16.mxu0 %v9651_v1  ;;  %v9408_v1 = vcombine.low %v4376_v25, %v4380_v40  ;;  %v4440_v25 = vld [vmem:[#allocation8 + $0xf98] sm:$0xff] }
 0x463   :  { %7609 = vmatpush2.bf16.msra.mxu1 %v9208_v29  ;;  %v9400_v47 = vcombine.low %v4368_v23, %v4372_v22  ;;  %v4444_v40 = vld [vmem:[#allocation8 + $0xfb8] sm:$0xff] }
 0x464   :  { %7610 = vmatprep.subr.bf16.mxu1 %v9201_v58  ;;  %v4360_v58 = vld [vmem:[#allocation8 + $0xd18] sm:$0xff] }
 0x465   :  { %9552 = vmatpush3.bf16.msra.mxu0 %v9652_v19  ;;  %v4364_v19 = vld [vmem:[#allocation8 + $0xd38] sm:$0xff] }
 0x466   :  { %9553 = vmatprep.subr.bf16.mxu0 %v9653_v41  ;;  %v9393_v41 = vcombine.high %v4360_v58, %v4364_v19  ;;  %v9392_v49 = vcombine.low %v4360_v58, %v4364_v19  ;;  %v4432_v23 = vld [vmem:[#allocation8 + $0xf58] sm:$0xff] }
 0x467   :  { %7611 = vmatpush2.bf16.msra.mxu1 %v9200_v42  ;;  %v4352_v42 = vld [vmem:[#allocation8 + $0xcd8] sm:$0xff] }
 0x468   :  { %7612 = vmatprep.subr.bf16.mxu1 %v9193_v10  ;;  %v9684_v10 = vld [vmem:[#allocation11 + $0x128] sm:$0xff]   ;;  %v4436_v22 = vld [vmem:[#allocation8 + $0xf78] sm:$0xff] }
 0x469   :  { %9554 = vmatpush3.bf16.msra.mxu0 %v9654_v46  ;;  %v9685_v46 = vld [vmem:[#allocation11 + $0x160] sm:$0xff]   ;;  %v9464_v19 = vcombine.low %v4432_v23, %v4436_v22 }
 0x46a   :  { %9555 = vmatprep.subr.bf16.mxu0 %v9655_v38  ;;  %v4344_v38 = vld [vmem:[#allocation8 + $0xc98] sm:$0xff] }
 0x46b   :  { %7613 = vmatpush2.bf16.msra.mxu1 %v9192_v52  ;;  %v4348_v52 = vld [vmem:[#allocation8 + $0xcb8] sm:$0xff] }
 0x46c   :  { %7614 = vmatprep.subr.bf16.mxu1 %v9185_v39  ;;  %v9686_v39 = vld [vmem:[#allocation11 + $0x120] sm:$0xff]   ;;  %v9377_v55 = vcombine.high %v4344_v38, %v4348_v52  ;;  %v9376_v50 = vcombine.low %v4344_v38, %v4348_v52  ;;  %v4392_v52 = vld [vmem:[#allocation8 + $0xe18] sm:$0xff] }
 0x46d   :  { %9556 = vmatpush3.bf16.msra.mxu0 %v9656_v53  ;;  %v9687_v53 = vld [vmem:[#allocation11 + $0x158] sm:$0xff]  }
 0x46e   :  { %9557 = vmatprep.subr.bf16.mxu0 %v9657_v43  ;;  %v4336_v43 = vld [vmem:[#allocation8 + $0xc58] sm:$0xff] }
 0x46f   :  { %7615 = vmatpush2.bf16.msra.mxu1 %v9184_v5  ;;  %v4340_v5 = vld [vmem:[#allocation8 + $0xc78] sm:$0xff] }
 0x470   :  { %7616 = vmatprep.subr.bf16.mxu1 %v9177_v35  ;;  %v9688_v35 = vld [vmem:[#allocation11 + $0x118] sm:$0xff]   ;;  %v9369_v2 = vcombine.high %v4336_v43, %v4340_v5 }
 0x471   :  { %9558 = vmatpush3.bf16.msra.mxu0 %v9658_v62  ;;  %v9689_v62 = vld [vmem:[#allocation11 + $0x150] sm:$0xff]  }
 0x472   :  { %9559 = vmatprep.subr.bf16.mxu0 %v9659_v48  ;;  %v4328_v48 = vld [vmem:[#allocation8 + $0xc18] sm:$0xff] }
 0x473   :  { %7617 = vmatpush2.bf16.msra.mxu1 %v9176_v7  ;;  %v9690_v7 = vld [vmem:[#allocation11 + $0x110] sm:$0xff]   ;;  %v9361_v63 = vcombine.high %v4328_v48, %v4332_v3 }
 0x474   :  { %7618 = vmatprep.subr.bf16.mxu1 %v9169_v20  ;;  %v9691_v20 = vld [vmem:[#allocation11 + $0x148] sm:$0xff]  }
 0x475   :  { %9560 = vmatpush3.bf16.msra.mxu0 %v9660_v4  ;;  %v9368_v4 = vcombine.low %v4336_v43, %v4340_v5 }
 0x476   :  { %9561 = vmatprep.subr.bf16.mxu0 %v9661_v12  ;;  %v9692_v12 = vld [vmem:[#allocation11 + $0x108] sm:$0xff]  }
 0x477   :  { %7619 = vmatpush2.bf16.msra.mxu1 %v9168_v31  ;;  %v9693_v31 = vld [vmem:[#allocation11 + $0x140] sm:$0xff]  }
 0x478   :  { %7670 = vmatprep.subr.bf16.mxu1 %v9417_v51  ;;  %v9360_v51 = vcombine.low %v4328_v48, %v4332_v3  ;;  %v9664_v48 = vld [vmem:[#allocation11 + $0xb8] sm:$0xff]   ;;  %v9665_v3 = vld [vmem:[#allocation11 + $0xf0] sm:$0xff]  }
 0x479   :  { %9562 = vmatpush3.bf16.msra.mxu0 %v9662_v59  ;;  %v9481_v59 = vcombine.high %v4448_v6, %v4452_v9 }
 0x47a   :  { %v7376_v8 = vpop.f32.mrf.mxu1  ;;  %7621 = vmatmul.mubr.bf16.vlgmr.msra.gmra.mxu1 %v10113_v24  ;;  %9591 = vmatprep.subr.bf16.mxu0 %v9679_v17  ;;  %v9683_v24 = vld [vmem:[#allocation11 + $0x168] sm:$0xff]   ;;  %v9480_v17 = vcombine.low %v4448_v6, %v4452_v9 }
 0x47b   :  { %v10239_v36 = vadd.f32 %v7376_v8, %v10225_v11  ;;  %7671 = vmatpush1.bf16.msra.mxu1 %v9416_v26  ;;  %7702 = vmatprep.mubr.bf16.mxu1 %v10160_v13  ;;  %v4356_v13 = vld [vmem:[#allocation8 + $0xcf8] sm:$0xff]  ;;  %v9473_v26 = vcombine.high %v4440_v25, %v4444_v40  ;;  %v9465_v8 = vcombine.high %v4432_v23, %v4436_v22  ;;  %v9676_v22 = vld [vmem:[#allocation11 + $0x88] sm:$0xff]  }
 0x47c   :  { %v10242_v29 = vpop.f32.mrf.mxu1  ;;  %8303 = vmatmul.mubr.bf16.vlgmr.msra.gmra.mxu0 %v7743_v61  ;;  %7672 = vmatprep.subr.bf16.mxu1 %v9409_v18  ;;  %v9385_v21 = vcombine.high %v4352_v42, %v4356_v13  ;;  %v9384_v54 = vcombine.low %v4352_v42, %v4356_v13  ;;  %v4412_v42 = vld [vmem:[#allocation8 + $0xeb8] sm:$0xff] }
 0x47d   :  { %9592 = vmatpush3.bf16.msra.mxu0 %v9680_v56  ;;  %v7379_v18 = vadd.f32 %v10242_v29, %v10229_v33  ;;  %v9472_v56 = vcombine.low %v4440_v25, %v4444_v40  ;;  %v4416_v33 = vld [vmem:[#allocation8 + $0xed8] sm:$0xff]  ;;  %v7713_v9 = vmul.f32 0.5, %v10239_v36  ;;  %v9670_v40 = vld [vmem:[#allocation11 + $0xa0] sm:$0xff]   ;;  %v9672_v36 = vld [vmem:[#allocation11 + $0x98] sm:$0xff]  }
 0x47e   :  { %v7380_v16 = vpop.f32.mrf.mxu1  ;;  %9593 = vmatprep.subr.bf16.mxu0 %v9681_v0  ;;  %v4420_v29 = vld [vmem:[#allocation8 + $0xef8] sm:$0xff] }
 0x47f   :  { %7673 = vmatpush1.bf16.msra.mxu1 %v9408_v1  ;;  %v7714_v0 = vmul.f32 0.5, %v7379_v18  ;;  %v4424_v1 = vld [vmem:[#allocation8 + $0xf18] sm:$0xff]  ;;  %v9448_v13 = vcombine.low %v4416_v33, %v4420_v29  ;;  %v9675_v18 = vld [vmem:[#allocation11 + $0xc8] sm:$0xff]  }
 0x480   :  { %v7381_v11 = vpop.f32.mrf.mxu1  ;;  %7674 = vmatprep.subr.bf16.mxu1 %v9401_v30  ;;  %v4428_v30 = vld [vmem:[#allocation8 + $0xf38] sm:$0xff] }
 0x481   :  { %9594 = vmatpush3.bf16.msra.mxu0 %v9682_v34  ;;  %v9457_v16 = vcombine.high %v4424_v1, %v4428_v30  ;;  %9731 = vtanh.f32 %v7714_v0  ;;  %v9449_v11 = vcombine.high %v4416_v33, %v4420_v29  ;;  %v9697_v29 = vld [vmem:[#allocation11 + $0x1f0] sm:$0xff]  }
 0x482   :  { %9595 = vmatprep.subr.bf16.mxu0 %v9683_v24  ;;  %9733 = vtanh.f32 %v7713_v9 }
 0x483   :  { %7675 = vmatpush1.bf16.msra.mxu1 %v9400_v47  ;;  %v9456_v47 = vcombine.low %v4424_v1, %v4428_v30  ;;  %v9695_v1 = vld [vmem:[#allocation11 + $0x1f8] sm:$0xff]  }
 0x484   :  { %7676 = vmatprep.subr.bf16.mxu1 %v9393_v41  ;;  %v4408_v41 = vld [vmem:[#allocation8 + $0xe98] sm:$0xff]  ;;  %v9696_v30 = vld [vmem:[#allocation11 + $0x1b8] sm:$0xff]  }
 0x485   :  { %9596 = vmatpush3.bf16.msra.mxu0 %v9684_v10  ;;  %v9441_v10 = vcombine.high %v4408_v41, %v4412_v42 }
 0x486   :  { %9597 = vmatprep.subr.bf16.mxu0 %v9685_v46  ;;  %v4400_v46 = vld [vmem:[#allocation8 + $0xe58] sm:$0xff] }
 0x487   :  { %7677 = vmatpush1.bf16.msra.mxu1 %v9392_v49  ;;  %v4404_v49 = vld [vmem:[#allocation8 + $0xe78] sm:$0xff] }
 0x488   :  { %7678 = vmatprep.subr.bf16.mxu1 %v9385_v21  ;;  %v9440_v21 = vcombine.low %v4408_v41, %v4412_v42  ;;  %v9433_v38 = vcombine.high %v4400_v46, %v4404_v49 }
 0x489   :  { %9598 = vmatpush3.bf16.msra.mxu0 %v9686_v39  ;;  %v4396_v39 = vld [vmem:[#allocation8 + $0xe38] sm:$0xff] }
 0x48a   :  { %9599 = vmatprep.subr.bf16.mxu0 %v9687_v53  ;;  %v9424_v5 = vcombine.low %v4392_v52, %v4396_v39 }
 0x48b   :  { %7679 = vmatpush1.bf16.msra.mxu1 %v9384_v54  ;;  %v9432_v54 = vcombine.low %v4400_v46, %v4404_v49  ;;  %v9700_v49 = vld [vmem:[#allocation11 + $0x1a8] sm:$0xff]  }
 0x48c   :  { %7680 = vmatprep.subr.bf16.mxu1 %v9377_v55  ;;  %v9425_v55 = vcombine.high %v4392_v52, %v4396_v39  ;;  %v9701_v52 = vld [vmem:[#allocation11 + $0x1e0] sm:$0xff]  }
 0x48d   :  { %9600 = vmatpush3.bf16.msra.mxu0 %v9688_v35  ;;  %v9663_v35 = vld [vmem:[#allocation11 + $0xf8] sm:$0xff]   ;;  %v9702_v39 = vld [vmem:[#allocation11 + $0x1a0] sm:$0xff]  }
 0x48e   :  { %9601 = vmatprep.subr.bf16.mxu0 %v9689_v62  ;;  %v9732_v53 = vpop.eup %9731  ;;  %v4474_v62 = vrot.slane %v10212_v32, %v663_v28  ;;  %v9666_v28 = vld [vmem:[#allocation11 + $0xb0] sm:$0xff]  }
 0x48f   :  { %7681 = vmatpush1.bf16.msra.mxu1 %v9376_v50  ;;  %v7730_v43 = vmul.f32 0.5, %v9732_v53  ;;  %v9734_v23 = vpop.eup %9733  ;;  %v9703_v53 = vld [vmem:[#allocation11 + $0x1d8] sm:$0xff]  }
 0x490   :  { %7682 = vmatprep.subr.bf16.mxu1 %v9369_v2  ;;  %v4478_v2 = vrot.slane %v10212_v32, %v667_v57  ;;  %v9667_v57 = vld [vmem:[#allocation11 + $0xe8] sm:$0xff]  }
 0x491   :  { %9602 = vmatpush3.bf16.msra.mxu0 %v9690_v7  ;;  %v7738_v50 = vadd.f32 0.5, %v7730_v43  ;;  %v7418_v7 = vadd.f32 %v10231_v45, %v4474_v62  ;;  %v9668_v45 = vld [vmem:[#allocation11 + $0xa8] sm:$0xff]   ;;  %v9706_v43 = vld [vmem:[#allocation11 + $0x190] sm:$0xff]  }
 0x492   :  { %9603 = vmatprep.subr.bf16.mxu0 %v9691_v20  ;;  %v9707_v62 = vld [vmem:[#allocation11 + $0x1c8] sm:$0xff]  }
 0x493   :  { %7683 = vmatpush1.bf16.msra.mxu1 %v9368_v4  ;;  %v7746_v20 = vpack.c.bf16 %v7738_v50, %v7738_v50 }
 0x494   :  { %7684 = vmatprep.subr.bf16.mxu1 %v9361_v63  ;;  %v7420_v63 = vadd.f32 %v10235_v27, %v4478_v2  ;;  %v9669_v27 = vld [vmem:[#allocation11 + $0xe0] sm:$0xff]   ;;  %v9708_v2 = vld [vmem:[#allocation11 + $0x188] sm:$0xff]  }
 0x495   :  { %9604 = vmatpush3.bf16.msra.mxu0 %v9692_v12 }
 0x496   :  { %9605 = vmatprep.subr.bf16.mxu0 %v9693_v31 }
 0x497   :  { %7685 = vmatpush1.bf16.msra.mxu1 %v9360_v51 }
 0x498   :  { %7686 = vmatprep.subr.bf16.mxu1 %v9481_v59 }
 0x499   :  { %9606 = vmatpush3.bf16.msra.mxu0 %v9694_v15  ;;  %v9671_v15 = vld [vmem:[#allocation11 + $0xd8] sm:$0xff]  }
 0x49b   :  { %7687 = vmatpush2.bf16.msra.mxu1 %v9480_v17  ;;  %v9673_v17 = vld [vmem:[#allocation11 + $0xd0] sm:$0xff]  }
 0x49c   :  { %v10246_v61 = vpop.f32.mrf.mxu0  ;;  %7688 = vmatprep.subr.bf16.mxu1 %v9473_v26  ;;  %v9674_v26 = vld [vmem:[#allocation11 + $0x90] sm:$0xff]  }
 0x49e   :  { %v10248_v58 = vpop.f32.mrf.mxu0 }
 0x49f   :  { %7689 = vmatpush2.bf16.msra.mxu1 %v9472_v56  ;;  %v7729_v56 = vmul.f32 0.5, %v9734_v23 }
 0x4a0   :  { %v7503_v34 = vpop.f32.mrf.mxu0  ;;  %7690 = vmatprep.subr.bf16.mxu1 %v9465_v8  ;;  %v9678_v8 = vld [vmem:[#allocation11 + $0x80] sm:$0xff]  }
 0x4a1   :  { %v7737_v0 = vadd.f32 0.5, %v7729_v56 }
 0x4a2   :  { %v7504_v24 = vpop.f32.mrf.mxu0 }
 0x4a3   :  { %7691 = vmatpush2.bf16.msra.mxu1 %v9464_v19 }
 0x4a4   :  { %7692 = vmatprep.subr.bf16.mxu1 %v9457_v16 }
 0x4a7   :  { %7693 = vmatpush2.bf16.msra.mxu1 %v9456_v47  ;;  %v9698_v47 = vld [vmem:[#allocation11 + $0x1b0] sm:$0xff]  }
 0x4a8   :  { %7694 = vmatprep.subr.bf16.mxu1 %v9449_v11 }
 0x4ab   :  { %7695 = vmatpush2.bf16.msra.mxu1 %v9448_v13 }
 0x4ac   :  { %7696 = vmatprep.subr.bf16.mxu1 %v9441_v10  ;;  %v9699_v10 = vld [vmem:[#allocation11 + $0x1e8] sm:$0xff]  }
 0x4af   :  { %7697 = vmatpush2.bf16.msra.mxu1 %v9440_v21 }
 0x4b0   :  { %7698 = vmatprep.subr.bf16.mxu1 %v9433_v38 }
 0x4b3   :  { %7699 = vmatpush2.bf16.msra.mxu1 %v9432_v54  ;;  %v9704_v54 = vld [vmem:[#allocation11 + $0x198] sm:$0xff]  }
 0x4b4   :  { %7700 = vmatprep.subr.bf16.mxu1 %v9425_v55  ;;  %v9705_v55 = vld [vmem:[#allocation11 + $0x1d0] sm:$0xff]  }
 0x4b7   :  { %7701 = vmatpush2.bf16.msra.mxu1 %v9424_v5 }
 0x4b8   :  { %9569 = vmatprep.subr.bf16.mxu1 %v9663_v35 }
 0x4ba   :  { %v7458_v4 = vpop.f32.mrf.mxu1  ;;  %7703 = vmatmul.mubr.bf16.vlgmr.msra.gmra.mxu1 %v10162_v14 }
 0x4bb   :  { %v7459_v6 = vadd.f32 %v7458_v4, %v7418_v7  ;;  %9570 = vmatpush3.bf16.msra.mxu1 %v9664_v48  ;;  %8342 = vmatprep.mubr.bf16.mxu1 %v7746_v20  ;;  %v9709_v20 = vld [vmem:[#allocation11 + $0x1c0] sm:$0xff]  }
 0x4bc   :  { %v7460_v12 = vpop.f32.mrf.mxu1  ;;  %9571 = vmatprep.subr.bf16.mxu1 %v9665_v3  ;;  %v9710_v4 = vld [vmem:[#allocation11 + $0x180] sm:$0xff]  }
 0x4bd   :  { %v7461_v31 = vadd.f32 %v7460_v12, %v7420_v63  ;;  %v7500_v51 = vadd.f32 %v10246_v61, %v7459_v6  ;;  %v9677_v61 = vld [vmem:[#allocation11 + $0xc0] sm:$0xff]  }
 0x4be   :  { %v7462_v59 = vpop.f32.mrf.mxu1 }
 0x4bf   :  { %9572 = vmatpush3.bf16.msra.mxu1 %v9666_v28  ;;  %v7502_v25 = vadd.f32 %v10248_v58, %v7461_v31  ;;  %v7745_v58 = vpack.c.bf16 %v7737_v0, %v7737_v0  ;;  %v4482_v31 = vrot.slane %v10212_v32, %v671_v37 }
 0x4c0   :  { %v7463_v14 = vpop.f32.mrf.mxu1  ;;  %9573 = vmatprep.subr.bf16.mxu1 %v9667_v57 }
 0x4c3   :  { %9574 = vmatpush3.bf16.msra.mxu1 %v9668_v45 }
 0x4c4   :  { %9575 = vmatprep.subr.bf16.mxu1 %v9669_v27 }
 0x4c7   :  { %9576 = vmatpush3.bf16.msra.mxu1 %v9670_v40 }
 0x4c8   :  { %9577 = vmatprep.subr.bf16.mxu1 %v9671_v15 }
 0x4cb   :  { %9578 = vmatpush3.bf16.msra.mxu1 %v9672_v36 }
 0x4cc   :  { %9579 = vmatprep.subr.bf16.mxu1 %v9673_v17 }
 0x4cf   :  { %9580 = vmatpush3.bf16.msra.mxu1 %v9674_v26 }
 0x4d0   :  { %9581 = vmatprep.subr.bf16.mxu1 %v9675_v18 }
 0x4d3   :  { %9582 = vmatpush3.bf16.msra.mxu1 %v9676_v22 }
 0x4d4   :  { %9583 = vmatprep.subr.bf16.mxu1 %v9677_v61 }
 0x4d7   :  { %9584 = vmatpush3.bf16.msra.mxu1 %v9678_v8 }
 0x4d8   :  { %9613 = vmatprep.subr.bf16.mxu1 %v9695_v1 }
 0x4da   :  { %8343 = vmatmul.mubr.bf16.vlgmr.msra.gmra.mxu1 %v7745_v58 }
 0x4db   :  { %9614 = vmatpush3.bf16.msra.mxu1 %v9696_v30 }
 0x4dc   :  { %v7581_v19 = vpop.f32.mrf.mxu0  ;;  %9615 = vmatprep.subr.bf16.mxu1 %v9697_v29 }
 0x4dd   :  { %v7582_v59 = vadd.f32 %v7581_v19, %v4482_v31 }
 0x4de   :  { %v7583_v34 = vpop.f32.mrf.mxu0 }
 0x4df   :  { %9616 = vmatpush3.bf16.msra.mxu1 %v9698_v47 }
 0x4e0   :  { %v7585_v16 = vpop.f32.mrf.mxu0  ;;  %9617 = vmatprep.subr.bf16.mxu1 %v9699_v10 }
 0x4e2   :  { %v7586_v33 = vpop.f32.mrf.mxu0 }
 0x4e3   :  { %9618 = vmatpush3.bf16.msra.mxu1 %v9700_v49 }
 0x4e4   :  { %9619 = vmatprep.subr.bf16.mxu1 %v9701_v52 }
 0x4e7   :  { %9620 = vmatpush3.bf16.msra.mxu1 %v9702_v39 }
 0x4e8   :  { %9621 = vmatprep.subr.bf16.mxu1 %v9703_v53 }
 0x4eb   :  { %9622 = vmatpush3.bf16.msra.mxu1 %v9704_v54 }
 0x4ec   :  { %9623 = vmatprep.subr.bf16.mxu1 %v9705_v55 }
 0x4ef   :  { %9624 = vmatpush3.bf16.msra.mxu1 %v9706_v43 }
 0x4f0   :  { %9625 = vmatprep.subr.bf16.mxu1 %v9707_v62 }
 0x4f3   :  { %9626 = vmatpush3.bf16.msra.mxu1 %v9708_v2 }
 0x4f4   :  { %9627 = vmatprep.subr.bf16.mxu1 %v9709_v20 }
 0x4f7   :  { %9628 = vmatpush3.bf16.msra.mxu1 %v9710_v4 }
 0x4fa   :  { %v7540_v24 = vpop.f32.mrf.mxu1 }
 0x4fb   :  { %v7541_v11 = vadd.f32 %v7540_v24, %v7500_v51  ;;  %v4486_v51 = vrot.slane %v10212_v32, %v675_v44 }
 0x4fc   :  { %v7542_v41 = vpop.f32.mrf.mxu1 }
 0x4fd   :  { %v7715_v42 = vmul.f32 0.5, %v7541_v11  ;;  %v7543_v13 = vadd.f32 %v7542_v41, %v7502_v25  ;;  %v7584_v25 = vadd.f32 %v7583_v34, %v4486_v51  ;;  %v9482_v11 = vld [vmem:[#allocation13] ss:$0 sm:$0xff] }
 0x4fe   :  { %v7544_v46 = vpop.f32.mrf.mxu1 }
 0x4ff   :  { %9735 = vtanh.f32 %v7715_v42  ;;  %v7716_v21 = vmul.f32 0.5, %v7543_v13 }
 0x500   :  { %v7545_v38 = vpop.f32.mrf.mxu1 }
 0x501   :  { %9737 = vtanh.f32 %v7716_v21 }
 0x50c   :  { %v9736_v5 = vpop.eup %9735 }
 0x50d   :  { %v7731_v35 = vmul.f32 0.5, %v9736_v5 }
 0x50e   :  { %v9738_v50 = vpop.eup %9737 }
 0x50f   :  { %v7732_v48 = vmul.f32 0.5, %v9738_v50  ;;  %v7739_v3 = vadd.f32 0.5, %v7731_v35 }
 0x511   :  { %v7740_v7 = vadd.f32 0.5, %v7732_v48  ;;  %v7747_v6 = vpack.c.bf16 %v7739_v3, %v7739_v3 }
 0x513   :  { %v7748_v63 = vpack.c.bf16 %v7740_v7, %v7740_v7 }
 0x515   :  { %8382 = vmatprep.mubr.bf16.mxu0 %v7748_v63 }
 0x516   :  { %8383 = vmatmul.mubr.bf16.vlgmr.msra.gmra.mxu0 %v7747_v6 }
 0x51c   :  { %v7663_v28 = vpop.f32.mrf.mxu0 }
 0x51e   :  { %v7665_v9 = vpop.f32.mrf.mxu0 }
 0x520   :  { %v7667_v12 = vpop.f32.mrf.mxu0 }
 0x522   :  { %v7668_v57 = vpop.f32.mrf.mxu0 }
 0x53a   :  { %v7622_v45 = vpop.f32.mrf.mxu1 }
 0x53b   :  { %v7623_v14 = vadd.f32 %v7622_v45, %v7582_v59 }
 0x53c   :  { %v7624_v27 = vpop.f32.mrf.mxu1  ;;  %v9563_v40 = vpop.f32.mrf.mxu0 }
 0x53d   :  { %v7625_v15 = vadd.f32 %v7624_v27, %v7584_v25  ;;  %v7664_v36 = vadd.f32 %v7663_v28, %v7623_v14 }
 0x53e   :  { %v7626_v17 = vpop.f32.mrf.mxu1  ;;  %v9564_v26 = vpop.f32.mrf.mxu0 }
 0x53f   :  { %v9565_v18 = vadd.f32 %v9564_v26, %v9563_v40  ;;  %v7666_v23 = vadd.f32 %v7665_v9, %v7625_v15 }
 0x540   :  { %v7627_v22 = vpop.f32.mrf.mxu1  ;;  %v9566_v56 = vpop.f32.mrf.mxu0 }
 0x541   :  { %v8305_v13 = vadd.f32 %v9565_v18, %v9482_v11 }
 0x542   :  { %v9567_v61 = vpop.f32.mrf.mxu0 }
 0x57a   :  { %v7704_v37 = vpop.f32.mrf.mxu1 }
 0x57b   :  { %v7705_v8 = vadd.f32 %v7704_v37, %v7664_v36 }
 0x57c   :  { %v7706_v60 = vpop.f32.mrf.mxu1 }
 0x57d   :  { %v7717_v0 = vmul.f32 0.5, %v7705_v8  ;;  %v7707_v44 = vadd.f32 %v7706_v60, %v7666_v23 }
 0x57e   :  { %v7708_v32 = vpop.f32.mrf.mxu1 }
 0x57f   :  { %9739 = vtanh.f32 %v7717_v0  ;;  %v7718_v1 = vmul.f32 0.5, %v7707_v44 }
 0x580   :  { %v7709_v30 = vpop.f32.mrf.mxu1 }
 0x581   :  { %9741 = vtanh.f32 %v7718_v1 }
 0x58c   :  { %v9740_v58 = vpop.eup %9739 }
 0x58d   :  { %v7733_v19 = vmul.f32 0.5, %v9740_v58 }
 0x58e   :  { %v9742_v34 = vpop.eup %9741 }
 0x58f   :  { %v7734_v16 = vmul.f32 0.5, %v9742_v34  ;;  %v7741_v33 = vadd.f32 0.5, %v7733_v19 }
 0x591   :  { %v7742_v29 = vadd.f32 0.5, %v7734_v16  ;;  %v7749_v47 = vpack.c.bf16 %v7741_v33, %v7741_v33 }
 0x593   :  { %v7750_v24 = vpack.c.bf16 %v7742_v29, %v7742_v29 }
 0x595   :  { %8422 = vmatprep.mubr.bf16.mxu1 %v7750_v24 }
 0x596   :  { %8423 = vmatmul.mubr.bf16.vlgmr.msra.gmra.mxu1 %v7749_v47 }
 0x59a   :  { %v9585_v41 = vpop.f32.mrf.mxu1 }
 0x59c   :  { %v9586_v42 = vpop.f32.mrf.mxu1 }
 0x59d   :  { %v9587_v10 = vadd.f32 %v9586_v42, %v9585_v41 }
 0x59e   :  { %v9588_v46 = vpop.f32.mrf.mxu1 }
 0x59f   :  { %v8345_v49 = vadd.f32 %v9587_v10, %v8305_v13 }
 0x5a0   :  { %v9589_v21 = vpop.f32.mrf.mxu1 }
 0x5d6   :  { %v9607_v38 = vpop.f32.mrf.mxu0 }
 0x5d8   :  { %v9608_v52 = vpop.f32.mrf.mxu0 }
 0x5d9   :  { %v9609_v39 = vadd.f32 %v9608_v52, %v9607_v38 }
 0x5da   :  { %v9610_v53 = vpop.f32.mrf.mxu0 }
 0x5db   :  { %v8385_v54 = vadd.f32 %v9609_v39, %v8345_v49 }
 0x5dc   :  { %v9611_v55 = vpop.f32.mrf.mxu0 }
 0x656   :  { %v9629_v43 = vpop.f32.mrf.mxu1 }
 0x658   :  { %v9630_v5 = vpop.f32.mrf.mxu1 }
 0x659   :  { %v9631_v35 = vadd.f32 %v9630_v5, %v9629_v43 }
 0x65a   :  { %v9632_v62 = vpop.f32.mrf.mxu1 }
 0x65b   :  { %v8425_v50 = vadd.f32 %v9631_v35, %v8385_v54 }
 0x65c   :  { %v9633_v2 = vpop.f32.mrf.mxu1 }
 0x65d   :  { %8430 = vmax.xlane.f32.xlu0 %v8425_v50 }
 0x6e6   :  { %v8431_v48 = vpop.xlane.xlu0 %8430 }
 0x6e7   :  { %v8432_v3 = vsub.f32 %v8425_v50, %v8431_v48 }
 0x6e9   :  { %v8433_v7 = vmul.f32 1.442695, %v8432_v3 }
 0x6eb   :  { %9743 = vpow2.f32 %v8433_v7 }
 0x6f8   :  { %v9744_v20 = vpop.eup %9743 }
 0x6f9   :  { %8435 = vadd.xlane.f32.xlu0 %v9744_v20 }
 0x782   :  { %v8436_v4 = vpop.xlane.xlu0 %8435 }
 0x783   :  { %9745 = vrcp.f32 %v8436_v4 }
 0x790   :  { %v9746_v63 = vpop.eup %9745 }
 0x791   :  { %v8438_v6 = vmul.f32 %v9746_v63, %v9744_v20 }
 0x793   :  { %8439 = vst [vmem:[#allocation14] sm:$0xff] %v8438_v6 }
 0x794   :  { %9901 = shalt.err (!%p9898_p11)
}
 0x795   :  { %8449 = dma.vmem_to_hbm [thread:$0]  %s8447_s6, 128, %s10278_s7, [#allocation4]  }
 0x796   :  { %9918 = dma.done.wait [#allocation4], 128  }
 0x797   :  { %9919 = vsyncadd [#allocation4], 4294967168 }
 0x798   :  { %8453 = vsyncpa [#allocation3], 1 }
 0x799   :  { %8454 = vsyncpa [#allocation6], 1 }
 0x79a   :  { %8455 = vsyncpa [#allocation9], 1 }
 0x79b   :  { %8456 = vsyncpa [#allocation12], 1 }
 0x79c   :  { %8457 = vsyncpa [#allocation4], 1 }

</bundles_post_ra>
